<compile_context>
chip_gen: v7x
topology: tpu7x:2x2x1
jax: 0.10.0
libtpu: 0.0.40
codegen_flags: <defaults>
</compile_context>

<pallas_src>
import functools

import jax
import jax.numpy as jnp
from jax.experimental import pallas as pl
from jax.experimental.pallas import tpu as pltpu


MATMUL_DTYPE = jnp.bfloat16      # MXU operands (f32 accumulation)
ACT_DTYPE = jnp.bfloat16         # inter-op activation storage
VMEM_LIMIT = 48 * 1024 * 1024    # <= 64 MiB (v7x); raise toward ~96 MiB on v5e/v6e


def _cparams(sem=None):
    return pltpu.CompilerParams(dimension_semantics=sem,
                                vmem_limit_bytes=VMEM_LIMIT)


def _img_spec(shape):
    dims = tuple(shape[1:])
    return pl.BlockSpec((1,) + dims, lambda n: (n,) + (0,) * len(dims))


def _vec_spec(C):
    return pl.BlockSpec((1, C), lambda n: (0, 0))


def _phase_split(xp):
    """(N, 2*Ha, 2*Wa, C) -> (N, 4, Ha, Wa, C); plane p = (dh % 2) * 2 + (dw % 2)."""
    N, H2, W2, C = xp.shape
    ha, wa = H2 // 2, W2 // 2
    xp = xp.reshape(N, ha, 2, wa, 2, C)
    xp = jnp.transpose(xp, (0, 2, 4, 1, 3, 5))
    return xp.reshape(N, 4, ha, wa, C)


# ----------------------------------------------------------------------------
# Weight preparation (done once, outside the forward pass)
# ----------------------------------------------------------------------------
def _group_size(k, cin):
    """Taps per K-group so that group K = gs*Cin >= 128 when Cin < 128."""
    if k == 1 or cin >= 128:
        return 1
    return -(-128 // cin)


def prep_conv_weight(w):
    """PyTorch (Cout, Cin, k, k) -> grouped (G, gs*Cin, Cout) bf16 (taps row-major,
    zero-padded to a multiple of the group size)."""
    Cout, Cin, kh, kw = w.shape
    assert kh == kw
    k = kh
    T = k * k
    gs = _group_size(k, Cin)
    G = -(-T // gs)
    wt = jnp.transpose(w, (2, 3, 1, 0)).reshape(T, Cin, Cout)
    if G * gs != T:
        wt = jnp.pad(wt, ((0, G * gs - T), (0, 0), (0, 0)))
    return wt.reshape(G, gs * Cin, Cout).astype(MATMUL_DTYPE)


# ----------------------------------------------------------------------------
# Direct convolution kernel with fused BN-statistics epilogue
# ----------------------------------------------------------------------------
def _conv_kernel(x_ref, w_ref, o_ref, st_ref, *, tap_groups, l_out, ho, wo, wa,
                 flat_out):
    """x_ref: (1, P, L_in, Cin) bf16; w_ref: (G, gs*Cin, Cout) bf16;
    o_ref: conv output f32; st_ref: (1, 2, Cout) per-image [sum, sum_sq]."""
    acc = None
    for g, taps in enumerate(tap_groups):
        if len(taps) == 1:
            p, off = taps[0]
            a = x_ref[0, p, off:off + l_out, :]
        else:
            # in-VMEM K-packing of shifted windows (K = gs*Cin >= 128)
            a = jnp.concatenate(
                [x_ref[0, p, off:off + l_out, :] for (p, off) in taps], axis=-1)
        d = jnp.dot(a, w_ref[g], preferred_element_type=jnp.float32)
        acc = d if acc is None else acc + d

    if flat_out:
        s = jnp.sum(acc, axis=0, keepdims=True)
        sq = jnp.sum(acc * acc, axis=0, keepdims=True)
        o_ref[0] = acc.astype(o_ref.dtype)
    else:
        # mask out the padded-width columns of the flat window output
        col = jax.lax.broadcasted_iota(jnp.int32, (l_out, 1), 0) % wa
        m = (col < wo).astype(jnp.float32)
        s = jnp.sum(acc * m, axis=0, keepdims=True)
        sq = jnp.sum(acc * acc * m, axis=0, keepdims=True)
        # static per-row stores -- no full reshape/crop copy in VMEM
        for r in range(ho):
            o_ref[0, r] = acc[r * wa:r * wa + wo, :].astype(o_ref.dtype)
    st_ref[0] = jnp.concatenate([s, sq], axis=0)


def conv2d(x, w_grouped, k, stride, padding):
    """x: (N, H, W, Cin) NHWC (cast to bf16 if needed); w_grouped from
    prep_conv_weight. Returns (out_f32 (N,Ho,Wo,Cout), stats (N,2,Cout))."""
    if x.dtype != MATMUL_DTYPE:
        x = x.astype(MATMUL_DTYPE)
    N, H, W, Cin = x.shape
    G, Kg, Cout = w_grouped.shape
    assert Kg % Cin == 0 and stride in (1, 2)
    gs = Kg // Cin
    assert G * gs >= k * k

    if k == 1:
        xs = x[:, ::stride, ::stride, :] if stride > 1 else x
        _, Ho, Wo, _ = xs.shape
        wa = Wo
        planes = xs.reshape(N, 1, Ho * Wo, Cin)
        taps = [(0, 0)]
        flat_out = True
    elif stride == 1:
        Ho = H + 2 * padding - k + 1
        Wo = W + 2 * padding - k + 1
        wa = W + 2 * padding
        ha = Ho + k                      # extra zero rows for the flat-window overrun
        xp = jnp.pad(x, ((0, 0), (padding, ha - H - padding),
                         (padding, padding), (0, 0)))
        planes = xp.reshape(N, 1, ha * wa, Cin)
        taps = [(0, di * wa + dj) for di in range(k) for dj in range(k)]
        flat_out = False
    else:  # stride == 2, k > 1: space-to-depth phase split, then unstrided taps
        Hp0, Wp0 = H + 2 * padding, W + 2 * padding
        Ho = (Hp0 - k) // 2 + 1
        Wo = (Wp0 - k) // 2 + 1
        ha = Ho + (k - 1) // 2 + 1
        wa = Wo + (k - 1) // 2
        xp = jnp.pad(x, ((0, 0), (padding, 2 * ha - H - padding),
                         (padding, 2 * wa - W - padding), (0, 0)))
        planes = _phase_split(xp).reshape(N, 4, ha * wa, Cin)
        taps = [((di % 2) * 2 + (dj % 2), (di // 2) * wa + (dj // 2))
                for di in range(k) for dj in range(k)]
        flat_out = False

    # pad tap list to G*gs (dummy windows pair with zero weight rows)
    taps = taps + [(0, 0)] * (G * gs - len(taps))
    tap_groups = [tuple(taps[g * gs:(g + 1) * gs]) for g in range(G)]

    l_out = Ho * wa
    P, L_in = planes.shape[1], planes.shape[2]

    if flat_out:
        out_shape = jax.ShapeDtypeStruct((N, l_out, Cout), jnp.float32)
        out_spec = pl.BlockSpec((1, l_out, Cout), lambda n: (n, 0, 0))
    else:
        out_shape = jax.ShapeDtypeStruct((N, Ho, Wo, Cout), jnp.float32)
        out_spec = pl.BlockSpec((1, Ho, Wo, Cout), lambda n: (n, 0, 0, 0))

    kern = functools.partial(_conv_kernel, tap_groups=tap_groups, l_out=l_out,
                             ho=Ho, wo=Wo, wa=wa, flat_out=flat_out)
    out, stats = pl.pallas_call(
        kern,
        out_shape=(out_shape, jax.ShapeDtypeStruct((N, 2, Cout), jnp.float32)),
        grid=(N,),
        in_specs=[
            pl.BlockSpec((1, P, L_in, Cin), lambda n: (n, 0, 0, 0)),
            pl.BlockSpec((G, Kg, Cout), lambda n: (0, 0, 0)),
        ],
        out_specs=(out_spec, pl.BlockSpec((1, 2, Cout), lambda n: (n, 0, 0))),
        compiler_params=_cparams(("parallel",)),
    )(planes, w_grouped)
    if flat_out:
        out = out.reshape(N, Ho, Wo, Cout)     # contiguous: free reshape
    return out, stats


# ----------------------------------------------------------------------------
# BN scale/shift from fused per-image statistics (C-length math: plain JAX)
# ----------------------------------------------------------------------------
def bn_from_stats(stats, count, gamma, beta, eps=1e-5):
    """Training-mode batch statistics (biased variance, like PyTorch norm)."""
    s = jnp.sum(stats, axis=0)                       # (2, C)
    mean = s[0] / count
    # TODO(synk): one-pass E[x^2]-E[x]^2 (clamped); Welford would be safer.
    var = jnp.maximum(s[1] / count - mean * mean, 0.0)
    scale = gamma * jax.lax.rsqrt(var + eps)
    shift = beta - mean * scale
    C = gamma.shape[0]
    return scale.reshape(1, C), shift.reshape(1, C)


# ----------------------------------------------------------------------------
# Fused BN-affine / residual / ReLU elementwise kernels (bf16 outputs)
# ----------------------------------------------------------------------------
def _bn_relu_kernel(x_ref, s_ref, b_ref, o_ref):
    o_ref[0] = jnp.maximum(x_ref[0] * s_ref[0] + b_ref[0], 0.0).astype(o_ref.dtype)


def _bn_add_relu_kernel(x_ref, s_ref, b_ref, r_ref, o_ref):
    v = x_ref[0] * s_ref[0] + b_ref[0] + r_ref[0].astype(jnp.float32)
    o_ref[0] = jnp.maximum(v, 0.0).astype(o_ref.dtype)


def _bn2_add_relu_kernel(x_ref, sx_ref, bx_ref, y_ref, sy_ref, by_ref, o_ref):
    v = (x_ref[0] * sx_ref[0] + bx_ref[0]) + (y_ref[0] * sy_ref[0] + by_ref[0])
    o_ref[0] = jnp.maximum(v, 0.0).astype(o_ref.dtype)


def bn_relu(x, scale, shift):
    N, _, _, C = x.shape
    return pl.pallas_call(
        _bn_relu_kernel,
        out_shape=jax.ShapeDtypeStruct(x.shape, ACT_DTYPE),
        grid=(N,),
        in_specs=[_img_spec(x.shape), _vec_spec(C), _vec_spec(C)],
        out_specs=_img_spec(x.shape),
        compiler_params=_cparams(("parallel",)),
    )(x, scale, shift)


def bn_add_relu(x, scale, shift, res):
    N, _, _, C = x.shape
    return pl.pallas_call(
        _bn_add_relu_kernel,
        out_shape=jax.ShapeDtypeStruct(x.shape, ACT_DTYPE),
        grid=(N,),
        in_specs=[_img_spec(x.shape), _vec_spec(C), _vec_spec(C), _img_spec(res.shape)],
        out_specs=_img_spec(x.shape),
        compiler_params=_cparams(("parallel",)),
    )(x, scale, shift, res)


def bn2_add_relu(x, sx, bx, y, sy, by):
    """relu( BN(x) + BN(y) ): main-path BN3 fused with downsample-path BN."""
    N, _, _, C = x.shape
    return pl.pallas_call(
        _bn2_add_relu_kernel,
        out_shape=jax.ShapeDtypeStruct(x.shape, ACT_DTYPE),
        grid=(N,),
        in_specs=[_img_spec(x.shape), _vec_spec(C), _vec_spec(C),
                  _img_spec(y.shape), _vec_spec(C), _vec_spec(C)],
        out_specs=_img_spec(x.shape),
        compiler_params=_cparams(("parallel",)),
    )(x, sx, bx, y, sy, by)


# ----------------------------------------------------------------------------
# MaxPool 3x3 / stride 2 / pad 1 (phase-split, in-kernel 9-tap max, bf16)
# ----------------------------------------------------------------------------
def _maxpool_kernel(x_ref, o_ref, *, taps, ho, wo):
    r = None
    for (p, oh, ow) in taps:
        v = x_ref[0, p, oh:oh + ho, ow:ow + wo, :]
        r = v if r is None else jnp.maximum(r, v)
    o_ref[0] = r


def maxpool2d(x, k=3, stride=2, pad=1):
    assert k == 3 and stride == 2
    N, H, W, C = x.shape
    Hp0, Wp0 = H + 2 * pad, W + 2 * pad
    Ho = (Hp0 - k) // 2 + 1
    Wo = (Wp0 - k) // 2 + 1
    ha, wa = Ho + 1, Wo + 1
    xp = jnp.pad(x, ((0, 0), (pad, 2 * ha - H - pad), (pad, 2 * wa - W - pad), (0, 0)),
                 constant_values=float("-inf"))
    planes = _phase_split(xp)                              # (N, 4, ha, wa, C)
    taps = [((di % 2) * 2 + (dj % 2), di // 2, dj // 2)
            for di in range(k) for dj in range(k)]
    kern = functools.partial(_maxpool_kernel, taps=taps, ho=Ho, wo=Wo)
    return pl.pallas_call(
        kern,
        out_shape=jax.ShapeDtypeStruct((N, Ho, Wo, C), x.dtype),
        grid=(N,),
        in_specs=[pl.BlockSpec((1, 4, ha, wa, C), lambda n: (n, 0, 0, 0, 0))],
        out_specs=pl.BlockSpec((1, Ho, Wo, C), lambda n: (n, 0, 0, 0)),
        compiler_params=_cparams(("parallel",)),
    )(planes)


# ----------------------------------------------------------------------------
# FC head (classes padded to 128 for a lane-dense store, sliced back outside)
# ----------------------------------------------------------------------------
def _fc_kernel(a_ref, w_ref, b_ref, o_ref):
    o_ref[...] = jnp.dot(a_ref[...], w_ref[...],
                         preferred_element_type=jnp.float32) + b_ref[...]


def fc_forward(features, fc_wt_pad, fc_b_pad, num_classes):
    N = features.shape[0]
    Cp = fc_wt_pad.shape[1]
    out = pl.pallas_call(
        _fc_kernel,
        out_shape=jax.ShapeDtypeStruct((N, Cp), jnp.float32),
        compiler_params=_cparams(),
    )(features, fc_wt_pad, fc_b_pad)
    return out[:, :num_classes]


# ----------------------------------------------------------------------------
# ResNet forward
# ----------------------------------------------------------------------------
def block_forward(x, bp):
    stride = bp["stride"]
    identity = x                                            # bf16

    out, st = conv2d(x, bp["conv1_w"], k=1, stride=1, padding=0)
    cnt = float(out.shape[0] * out.shape[1] * out.shape[2])
    s1, b1 = bn_from_stats(st, cnt, bp["bn1_g"], bp["bn1_b"])
    out = bn_relu(out, s1, b1)

    out, st = conv2d(out, bp["conv2_w"], k=3, stride=stride, padding=1)
    cnt = float(out.shape[0] * out.shape[1] * out.shape[2])
    s2, b2 = bn_from_stats(st, cnt, bp["bn2_g"], bp["bn2_b"])
    out = bn_relu(out, s2, b2)

    out, st = conv2d(out, bp["conv3_w"], k=1, stride=1, padding=0)
    cnt = float(out.shape[0] * out.shape[1] * out.shape[2])
    s3, b3 = bn_from_stats(st, cnt, bp["bn3_g"], bp["bn3_b"])

    if "ds_w" in bp:
        idn, std = conv2d(identity, bp["ds_w"], k=1, stride=stride, padding=0)
        sd, bd = bn_from_stats(std, cnt, bp["ds_g"], bp["ds_b"])
        out = bn2_add_relu(out, s3, b3, idn, sd, bd)        # fused residual + both BNs
    else:
        out = bn_add_relu(out, s3, b3, identity)
    return out


def resnet_forward(params, x_nchw):
    x = jnp.transpose(x_nchw, (0, 2, 3, 1)).astype(ACT_DTYPE)   # NCHW -> NHWC bf16

    x, st = conv2d(x, params["conv1_w"], k=5, stride=2, padding=3)
    cnt = float(x.shape[0] * x.shape[1] * x.shape[2])
    s, b = bn_from_stats(st, cnt, params["bn1_g"], params["bn1_b"])
    x = bn_relu(x, s, b)
    x = maxpool2d(x)

    for layer_blocks in params["layers"]:
        for bp in layer_blocks:
            x = block_forward(x, bp)

    # TODO(synk): AdaptiveAvgPool2d((1,1)) kept as a tiny plain-JAX mean.
    features = jnp.mean(x.astype(jnp.float32), axis=(1, 2))
    logits = fc_forward(features, params["fc_wt"], params["fc_b"],
                        params["num_classes"])
    return logits, features


# ----------------------------------------------------------------------------
# Parameter init (PyTorch-layout shapes) and one-time preparation
# ----------------------------------------------------------------------------
def init_params(key, image_channels, num_classes, layers=(1, 1, 1, 1)):
    keys = iter(jax.random.split(key, 256))

    def conv_w(shape):
        return jax.random.normal(next(keys), shape, jnp.float32) * 0.05

    params = {
        "conv1_w": conv_w((64, image_channels, 5, 5)),
        "bn1_g": jnp.ones((64,), jnp.float32),
        "bn1_b": jnp.zeros((64,), jnp.float32),
    }
    in_ch = 64
    layer_params = []
    for li, (nblocks, inter) in enumerate(zip(layers, (64, 128, 256, 512))):
        layer_stride = 1 if li == 0 else 2
        blocks = []
        for bi in range(nblocks):
            s = layer_stride if bi == 0 else 1
            bp = {
                "stride": s,
                "conv1_w": conv_w((inter, in_ch, 1, 1)),
                "bn1_g": jnp.ones((inter,), jnp.float32),
                "bn1_b": jnp.zeros((inter,), jnp.float32),
                "conv2_w": conv_w((inter, inter, 3, 3)),
                "bn2_g": jnp.ones((inter,), jnp.float32),
                "bn2_b": jnp.zeros((inter,), jnp.float32),
                "conv3_w": conv_w((inter * 4, inter, 1, 1)),
                "bn3_g": jnp.ones((inter * 4,), jnp.float32),
                "bn3_b": jnp.zeros((inter * 4,), jnp.float32),
            }
            if s != 1 or in_ch != inter * 4:
                bp["ds_w"] = conv_w((inter * 4, in_ch, 1, 1))
                bp["ds_g"] = jnp.ones((inter * 4,), jnp.float32)
                bp["ds_b"] = jnp.zeros((inter * 4,), jnp.float32)
            blocks.append(bp)
            in_ch = inter * 4
        layer_params.append(blocks)
    params["layers"] = layer_params
    params["fc_w"] = conv_w((num_classes, 512 * 4))
    params["fc_b"] = jnp.zeros((num_classes,), jnp.float32)
    return params


def prepare_params(raw):
    """One-time weight relayout: grouped bf16 conv weights, padded FC."""
    num_classes = raw["fc_w"].shape[0]
    cp = -(-num_classes // 128) * 128
    prepared = {
        "conv1_w": prep_conv_weight(raw["conv1_w"]),
        "bn1_g": raw["bn1_g"], "bn1_b": raw["bn1_b"],
        "layers": [],
        "fc_wt": jnp.pad(raw["fc_w"].T, ((0, 0), (0, cp - num_classes))),
        "fc_b": jnp.pad(raw["fc_b"], (0, cp - num_classes)).reshape(1, cp),
        "num_classes": num_classes,
    }
    for layer in raw["layers"]:
        blocks = []
        for bp in layer:
            nb = {
                "stride": bp["stride"],
                "conv1_w": prep_conv_weight(bp["conv1_w"]),
                "bn1_g": bp["bn1_g"], "bn1_b": bp["bn1_b"],
                "conv2_w": prep_conv_weight(bp["conv2_w"]),
                "bn2_g": bp["bn2_g"], "bn2_b": bp["bn2_b"],
                "conv3_w": prep_conv_weight(bp["conv3_w"]),
                "bn3_g": bp["bn3_g"], "bn3_b": bp["bn3_b"],
            }
            if "ds_w" in bp:
                nb["ds_w"] = prep_conv_weight(bp["ds_w"])
                nb["ds_g"] = bp["ds_g"]
                nb["ds_b"] = bp["ds_b"]
            blocks.append(nb)
        prepared["layers"].append(blocks)
    return prepared


# ----------------------------------------------------------------------------
if __name__ == "__main__":
    key = jax.random.PRNGKey(0)
    kx, kp = jax.random.split(key)

    batch, image_channels, spatial, num_classes = 2, 4, 16, 10
    x = jax.random.normal(kx, (batch, image_channels, spatial, spatial), jnp.float32)

    raw_params = init_params(kp, image_channels, num_classes, layers=(1, 1, 1, 1))
    params = prepare_params(raw_params)

    logits, features = resnet_forward(params, x)
    jax.block_until_ready((logits, features))

    assert logits.shape == (batch, num_classes)
    assert features.shape == (batch, 512 * 4)
    assert bool(jnp.all(jnp.isfinite(logits)))
    print("KERNEL_OK")
</pallas_src>

<mosaic_0001>
module attributes {stable_mosaic.version = 11 : i64} {
  func.func @_conv_kernel(%arg0: i32, %arg1: memref<1x4x132x4xbf16, #tpu.memory_space<vmem>>, %arg2: memref<1x128x64xbf16, #tpu.memory_space<vmem>>, %arg3: memref<1x9x9x64xf32, #tpu.memory_space<vmem>>, %arg4: memref<1x2x64xf32, #tpu.memory_space<vmem>>) attributes {dimension_semantics = [#tpu.dimension_semantics<parallel>], iteration_bounds = array<i64: 2>, scalar_prefetch = 0 : i64, scratch_operands = 0 : i64, tpu.core_type = #tpu.core_type<tc>, window_params = [{transform_indices = @transform_0, window_bounds = array<i64: 1, 4, 132, 4>}, {pipeline_mode = #tpu.pipeline_mode<synchronous>, transform_indices = @transform_1, window_bounds = array<i64: 1, 128, 64>}, {transform_indices = @transform_2, window_bounds = array<i64: 1, 9, 9, 64>}, {transform_indices = @transform_3, window_bounds = array<i64: 1, 2, 64>}]} {
    %c0 = arith.constant 0 : index
    %c0_0 = arith.constant 0 : index
    %c0_1 = arith.constant 0 : index
    %c0_2 = arith.constant 0 : index
    %0 = vector.load %arg1[%c0, %c0_0, %c0_1, %c0_2] : memref<1x4x132x4xbf16, #tpu.memory_space<vmem>>, vector<1x1x99x4xbf16>
    %1 = vector.shape_cast %0 : vector<1x1x99x4xbf16> to vector<99x4xbf16>
    %c0_3 = arith.constant 0 : index
    %c1 = arith.constant 1 : index
    %c0_4 = arith.constant 0 : index
    %c0_5 = arith.constant 0 : index
    %2 = vector.load %arg1[%c0_3, %c1, %c0_4, %c0_5] : memref<1x4x132x4xbf16, #tpu.memory_space<vmem>>, vector<1x1x99x4xbf16>
    %3 = vector.shape_cast %2 : vector<1x1x99x4xbf16> to vector<99x4xbf16>
    %c0_6 = arith.constant 0 : index
    %c0_7 = arith.constant 0 : index
    %c1_8 = arith.constant 1 : index
    %c0_9 = arith.constant 0 : index
    %4 = vector.load %arg1[%c0_6, %c0_7, %c1_8, %c0_9] : memref<1x4x132x4xbf16, #tpu.memory_space<vmem>>, vector<1x1x99x4xbf16>
    %5 = vector.shape_cast %4 : vector<1x1x99x4xbf16> to vector<99x4xbf16>
    %c0_10 = arith.constant 0 : index
    %c1_11 = arith.constant 1 : index
    %c1_12 = arith.constant 1 : index
    %c0_13 = arith.constant 0 : index
    %6 = vector.load %arg1[%c0_10, %c1_11, %c1_12, %c0_13] : memref<1x4x132x4xbf16, #tpu.memory_space<vmem>>, vector<1x1x99x4xbf16>
    %7 = vector.shape_cast %6 : vector<1x1x99x4xbf16> to vector<99x4xbf16>
    %c0_14 = arith.constant 0 : index
    %c0_15 = arith.constant 0 : index
    %c2 = arith.constant 2 : index
    %c0_16 = arith.constant 0 : index
    %8 = vector.load %arg1[%c0_14, %c0_15, %c2, %c0_16] : memref<1x4x132x4xbf16, #tpu.memory_space<vmem>>, vector<1x1x99x4xbf16>
    %9 = vector.shape_cast %8 : vector<1x1x99x4xbf16> to vector<99x4xbf16>
    %c0_17 = arith.constant 0 : index
    %c2_18 = arith.constant 2 : index
    %c0_19 = arith.constant 0 : index
    %c0_20 = arith.constant 0 : index
    %10 = vector.load %arg1[%c0_17, %c2_18, %c0_19, %c0_20] : memref<1x4x132x4xbf16, #tpu.memory_space<vmem>>, vector<1x1x99x4xbf16>
    %11 = vector.shape_cast %10 : vector<1x1x99x4xbf16> to vector<99x4xbf16>
    %c0_21 = arith.constant 0 : index
    %c3 = arith.constant 3 : index
    %c0_22 = arith.constant 0 : index
    %c0_23 = arith.constant 0 : index
    %12 = vector.load %arg1[%c0_21, %c3, %c0_22, %c0_23] : memref<1x4x132x4xbf16, #tpu.memory_space<vmem>>, vector<1x1x99x4xbf16>
    %13 = vector.shape_cast %12 : vector<1x1x99x4xbf16> to vector<99x4xbf16>
    %c0_24 = arith.constant 0 : index
    %c2_25 = arith.constant 2 : index
    %c1_26 = arith.constant 1 : index
    %c0_27 = arith.constant 0 : index
    %14 = vector.load %arg1[%c0_24, %c2_25, %c1_26, %c0_27] : memref<1x4x132x4xbf16, #tpu.memory_space<vmem>>, vector<1x1x99x4xbf16>
    %15 = vector.shape_cast %14 : vector<1x1x99x4xbf16> to vector<99x4xbf16>
    %c0_28 = arith.constant 0 : index
    %c3_29 = arith.constant 3 : index
    %c1_30 = arith.constant 1 : index
    %c0_31 = arith.constant 0 : index
    %16 = vector.load %arg1[%c0_28, %c3_29, %c1_30, %c0_31] : memref<1x4x132x4xbf16, #tpu.memory_space<vmem>>, vector<1x1x99x4xbf16>
    %17 = vector.shape_cast %16 : vector<1x1x99x4xbf16> to vector<99x4xbf16>
    %c0_32 = arith.constant 0 : index
    %c2_33 = arith.constant 2 : index
    %c2_34 = arith.constant 2 : index
    %c0_35 = arith.constant 0 : index
    %18 = vector.load %arg1[%c0_32, %c2_33, %c2_34, %c0_35] : memref<1x4x132x4xbf16, #tpu.memory_space<vmem>>, vector<1x1x99x4xbf16>
    %19 = vector.shape_cast %18 : vector<1x1x99x4xbf16> to vector<99x4xbf16>
    %c0_36 = arith.constant 0 : index
    %c0_37 = arith.constant 0 : index
    %c11 = arith.constant 11 : index
    %c0_38 = arith.constant 0 : index
    %20 = vector.load %arg1[%c0_36, %c0_37, %c11, %c0_38] : memref<1x4x132x4xbf16, #tpu.memory_space<vmem>>, vector<1x1x99x4xbf16>
    %21 = vector.shape_cast %20 : vector<1x1x99x4xbf16> to vector<99x4xbf16>
    %c0_39 = arith.constant 0 : index
    %c1_40 = arith.constant 1 : index
    %c11_41 = arith.constant 11 : index
    %c0_42 = arith.constant 0 : index
    %22 = vector.load %arg1[%c0_39, %c1_40, %c11_41, %c0_42] : memref<1x4x132x4xbf16, #tpu.memory_space<vmem>>, vector<1x1x99x4xbf16>
    %23 = vector.shape_cast %22 : vector<1x1x99x4xbf16> to vector<99x4xbf16>
    %c0_43 = arith.constant 0 : index
    %c0_44 = arith.constant 0 : index
    %c12 = arith.constant 12 : index
    %c0_45 = arith.constant 0 : index
    %24 = vector.load %arg1[%c0_43, %c0_44, %c12, %c0_45] : memref<1x4x132x4xbf16, #tpu.memory_space<vmem>>, vector<1x1x99x4xbf16>
    %25 = vector.shape_cast %24 : vector<1x1x99x4xbf16> to vector<99x4xbf16>
    %c0_46 = arith.constant 0 : index
    %c1_47 = arith.constant 1 : index
    %c12_48 = arith.constant 12 : index
    %c0_49 = arith.constant 0 : index
    %26 = vector.load %arg1[%c0_46, %c1_47, %c12_48, %c0_49] : memref<1x4x132x4xbf16, #tpu.memory_space<vmem>>, vector<1x1x99x4xbf16>
    %27 = vector.shape_cast %26 : vector<1x1x99x4xbf16> to vector<99x4xbf16>
    %c0_50 = arith.constant 0 : index
    %c0_51 = arith.constant 0 : index
    %c13 = arith.constant 13 : index
    %c0_52 = arith.constant 0 : index
    %28 = vector.load %arg1[%c0_50, %c0_51, %c13, %c0_52] : memref<1x4x132x4xbf16, #tpu.memory_space<vmem>>, vector<1x1x99x4xbf16>
    %29 = vector.shape_cast %28 : vector<1x1x99x4xbf16> to vector<99x4xbf16>
    %c0_53 = arith.constant 0 : index
    %c2_54 = arith.constant 2 : index
    %c11_55 = arith.constant 11 : index
    %c0_56 = arith.constant 0 : index
    %30 = vector.load %arg1[%c0_53, %c2_54, %c11_55, %c0_56] : memref<1x4x132x4xbf16, #tpu.memory_space<vmem>>, vector<1x1x99x4xbf16>
    %31 = vector.shape_cast %30 : vector<1x1x99x4xbf16> to vector<99x4xbf16>
    %c0_57 = arith.constant 0 : index
    %c3_58 = arith.constant 3 : index
    %c11_59 = arith.constant 11 : index
    %c0_60 = arith.constant 0 : index
    %32 = vector.load %arg1[%c0_57, %c3_58, %c11_59, %c0_60] : memref<1x4x132x4xbf16, #tpu.memory_space<vmem>>, vector<1x1x99x4xbf16>
    %33 = vector.shape_cast %32 : vector<1x1x99x4xbf16> to vector<99x4xbf16>
    %c0_61 = arith.constant 0 : index
    %c2_62 = arith.constant 2 : index
    %c12_63 = arith.constant 12 : index
    %c0_64 = arith.constant 0 : index
    %34 = vector.load %arg1[%c0_61, %c2_62, %c12_63, %c0_64] : memref<1x4x132x4xbf16, #tpu.memory_space<vmem>>, vector<1x1x99x4xbf16>
    %35 = vector.shape_cast %34 : vector<1x1x99x4xbf16> to vector<99x4xbf16>
    %c0_65 = arith.constant 0 : index
    %c3_66 = arith.constant 3 : index
    %c12_67 = arith.constant 12 : index
    %c0_68 = arith.constant 0 : index
    %36 = vector.load %arg1[%c0_65, %c3_66, %c12_67, %c0_68] : memref<1x4x132x4xbf16, #tpu.memory_space<vmem>>, vector<1x1x99x4xbf16>
    %37 = vector.shape_cast %36 : vector<1x1x99x4xbf16> to vector<99x4xbf16>
    %c0_69 = arith.constant 0 : index
    %c2_70 = arith.constant 2 : index
    %c13_71 = arith.constant 13 : index
    %c0_72 = arith.constant 0 : index
    %38 = vector.load %arg1[%c0_69, %c2_70, %c13_71, %c0_72] : memref<1x4x132x4xbf16, #tpu.memory_space<vmem>>, vector<1x1x99x4xbf16>
    %39 = vector.shape_cast %38 : vector<1x1x99x4xbf16> to vector<99x4xbf16>
    %c0_73 = arith.constant 0 : index
    %c0_74 = arith.constant 0 : index
    %c22 = arith.constant 22 : index
    %c0_75 = arith.constant 0 : index
    %40 = vector.load %arg1[%c0_73, %c0_74, %c22, %c0_75] : memref<1x4x132x4xbf16, #tpu.memory_space<vmem>>, vector<1x1x99x4xbf16>
    %41 = vector.shape_cast %40 : vector<1x1x99x4xbf16> to vector<99x4xbf16>
    %c0_76 = arith.constant 0 : index
    %c1_77 = arith.constant 1 : index
    %c22_78 = arith.constant 22 : index
    %c0_79 = arith.constant 0 : index
    %42 = vector.load %arg1[%c0_76, %c1_77, %c22_78, %c0_79] : memref<1x4x132x4xbf16, #tpu.memory_space<vmem>>, vector<1x1x99x4xbf16>
    %43 = vector.shape_cast %42 : vector<1x1x99x4xbf16> to vector<99x4xbf16>
    %c0_80 = arith.constant 0 : index
    %c0_81 = arith.constant 0 : index
    %c23 = arith.constant 23 : index
    %c0_82 = arith.constant 0 : index
    %44 = vector.load %arg1[%c0_80, %c0_81, %c23, %c0_82] : memref<1x4x132x4xbf16, #tpu.memory_space<vmem>>, vector<1x1x99x4xbf16>
    %45 = vector.shape_cast %44 : vector<1x1x99x4xbf16> to vector<99x4xbf16>
    %c0_83 = arith.constant 0 : index
    %c1_84 = arith.constant 1 : index
    %c23_85 = arith.constant 23 : index
    %c0_86 = arith.constant 0 : index
    %46 = vector.load %arg1[%c0_83, %c1_84, %c23_85, %c0_86] : memref<1x4x132x4xbf16, #tpu.memory_space<vmem>>, vector<1x1x99x4xbf16>
    %47 = vector.shape_cast %46 : vector<1x1x99x4xbf16> to vector<99x4xbf16>
    %c0_87 = arith.constant 0 : index
    %c0_88 = arith.constant 0 : index
    %c24 = arith.constant 24 : index
    %c0_89 = arith.constant 0 : index
    %48 = vector.load %arg1[%c0_87, %c0_88, %c24, %c0_89] : memref<1x4x132x4xbf16, #tpu.memory_space<vmem>>, vector<1x1x99x4xbf16>
    %49 = vector.shape_cast %48 : vector<1x1x99x4xbf16> to vector<99x4xbf16>
    %c0_90 = arith.constant 0 : index
    %c0_91 = arith.constant 0 : index
    %c0_92 = arith.constant 0 : index
    %c0_93 = arith.constant 0 : index
    %50 = vector.load %arg1[%c0_90, %c0_91, %c0_92, %c0_93] : memref<1x4x132x4xbf16, #tpu.memory_space<vmem>>, vector<1x1x99x4xbf16>
    %51 = vector.shape_cast %50 : vector<1x1x99x4xbf16> to vector<99x4xbf16>
    %c0_94 = arith.constant 0 : index
    %c0_95 = arith.constant 0 : index
    %c0_96 = arith.constant 0 : index
    %c0_97 = arith.constant 0 : index
    %52 = vector.load %arg1[%c0_94, %c0_95, %c0_96, %c0_97] : memref<1x4x132x4xbf16, #tpu.memory_space<vmem>>, vector<1x1x99x4xbf16>
    %53 = vector.shape_cast %52 : vector<1x1x99x4xbf16> to vector<99x4xbf16>
    %c0_98 = arith.constant 0 : index
    %c0_99 = arith.constant 0 : index
    %c0_100 = arith.constant 0 : index
    %c0_101 = arith.constant 0 : index
    %54 = vector.load %arg1[%c0_98, %c0_99, %c0_100, %c0_101] : memref<1x4x132x4xbf16, #tpu.memory_space<vmem>>, vector<1x1x99x4xbf16>
    %55 = vector.shape_cast %54 : vector<1x1x99x4xbf16> to vector<99x4xbf16>
    %c0_102 = arith.constant 0 : index
    %c0_103 = arith.constant 0 : index
    %c0_104 = arith.constant 0 : index
    %c0_105 = arith.constant 0 : index
    %56 = vector.load %arg1[%c0_102, %c0_103, %c0_104, %c0_105] : memref<1x4x132x4xbf16, #tpu.memory_space<vmem>>, vector<1x1x99x4xbf16>
    %57 = vector.shape_cast %56 : vector<1x1x99x4xbf16> to vector<99x4xbf16>
    %c0_106 = arith.constant 0 : index
    %c0_107 = arith.constant 0 : index
    %c0_108 = arith.constant 0 : index
    %c0_109 = arith.constant 0 : index
    %58 = vector.load %arg1[%c0_106, %c0_107, %c0_108, %c0_109] : memref<1x4x132x4xbf16, #tpu.memory_space<vmem>>, vector<1x1x99x4xbf16>
    %59 = vector.shape_cast %58 : vector<1x1x99x4xbf16> to vector<99x4xbf16>
    %c0_110 = arith.constant 0 : index
    %c0_111 = arith.constant 0 : index
    %c0_112 = arith.constant 0 : index
    %c0_113 = arith.constant 0 : index
    %60 = vector.load %arg1[%c0_110, %c0_111, %c0_112, %c0_113] : memref<1x4x132x4xbf16, #tpu.memory_space<vmem>>, vector<1x1x99x4xbf16>
    %61 = vector.shape_cast %60 : vector<1x1x99x4xbf16> to vector<99x4xbf16>
    %c0_114 = arith.constant 0 : index
    %c0_115 = arith.constant 0 : index
    %c0_116 = arith.constant 0 : index
    %c0_117 = arith.constant 0 : index
    %62 = vector.load %arg1[%c0_114, %c0_115, %c0_116, %c0_117] : memref<1x4x132x4xbf16, #tpu.memory_space<vmem>>, vector<1x1x99x4xbf16>
    %63 = vector.shape_cast %62 : vector<1x1x99x4xbf16> to vector<99x4xbf16>
    %64 = tpu.concatenate %1, %3, %5, %7, %9, %11, %13, %15, %17, %19, %21, %23, %25, %27, %29, %31 in 1 : vector<99x4xbf16>, vector<99x4xbf16>, vector<99x4xbf16>, vector<99x4xbf16>, vector<99x4xbf16>, vector<99x4xbf16>, vector<99x4xbf16>, vector<99x4xbf16>, vector<99x4xbf16>, vector<99x4xbf16>, vector<99x4xbf16>, vector<99x4xbf16>, vector<99x4xbf16>, vector<99x4xbf16>, vector<99x4xbf16>, vector<99x4xbf16> -> vector<99x64xbf16>
    %65 = tpu.concatenate %33, %35, %37, %39, %41, %43, %45, %47, %49, %51, %53, %55, %57, %59, %61, %63 in 1 : vector<99x4xbf16>, vector<99x4xbf16>, vector<99x4xbf16>, vector<99x4xbf16>, vector<99x4xbf16>, vector<99x4xbf16>, vector<99x4xbf16>, vector<99x4xbf16>, vector<99x4xbf16>, vector<99x4xbf16>, vector<99x4xbf16>, vector<99x4xbf16>, vector<99x4xbf16>, vector<99x4xbf16>, vector<99x4xbf16>, vector<99x4xbf16> -> vector<99x64xbf16>
    %66 = tpu.concatenate %64, %65 in 1 : vector<99x64xbf16>, vector<99x64xbf16> -> vector<99x128xbf16>
    %c0_118 = arith.constant 0 : index
    %c0_119 = arith.constant 0 : index
    %c0_120 = arith.constant 0 : index
    %67 = vector.load %arg2[%c0_118, %c0_119, %c0_120] : memref<1x128x64xbf16, #tpu.memory_space<vmem>>, vector<1x128x64xbf16>
    %68 = vector.shape_cast %67 : vector<1x128x64xbf16> to vector<128x64xbf16>
    %cst = arith.constant dense<0.000000e+00> : vector<99x64xf32>
    %69 = tpu.matmul %66, %68, %cst {dimension_numbers = #tpu.dot_dimension_numbers<[1], [0], [0], [1], [0, 0, 1, 1], [], []>} : vector<99x128xbf16>, vector<128x64xbf16>, vector<99x64xf32> -> vector<99x64xf32>
    %70 = tpu.iota {dimensions = array<i32: 0>} : vector<99x1xi32>
    %c11_i32 = arith.constant 11 : i32
    %c0_i32 = arith.constant 0 : i32
    %71 = arith.cmpi eq, %c11_i32, %c0_i32 : i32
    %c1_i32 = arith.constant 1 : i32
    %72 = arith.select %71, %c1_i32, %c11_i32 : i32
    %73 = vector.broadcast %72 : i32 to vector<99x1xi32>
    %74 = arith.remsi %70, %73 : vector<99x1xi32>
    %c0_i32_121 = arith.constant 0 : i32
    %75 = vector.broadcast %c0_i32_121 : i32 to vector<99x1xi32>
    %76 = arith.cmpi ne, %74, %75 : vector<99x1xi32>
    %c0_i32_122 = arith.constant 0 : i32
    %77 = vector.broadcast %c0_i32_122 : i32 to vector<99x1xi32>
    %78 = arith.cmpi slt, %74, %77 : vector<99x1xi32>
    %c0_i32_123 = arith.constant 0 : i32
    %79 = arith.cmpi slt, %72, %c0_i32_123 : i32
    %80 = vector.broadcast %79 : i1 to vector<99x1xi1>
    %81 = vector.broadcast %80 : vector<99x1xi1> to vector<99x1xi1>
    %82 = arith.xori %78, %81 : vector<99x1xi1>
    %83 = arith.andi %82, %76 : vector<99x1xi1>
    %84 = vector.broadcast %72 : i32 to vector<99x1xi32>
    %85 = arith.addi %74, %84 : vector<99x1xi32>
    %86 = arith.select %83, %85, %74 : vector<99x1xi1>, vector<99x1xi32>
    %c9_i32 = arith.constant 9 : i32
    %87 = vector.broadcast %c9_i32 : i32 to vector<99x1xi32>
    %88 = arith.cmpi slt, %86, %87 : vector<99x1xi32>
    %89 = arith.extui %88 : vector<99x1xi1> to vector<99x1xi32>
    %90 = arith.sitofp %89 : vector<99x1xi32> to vector<99x1xf32>
    %91 = vector.broadcast %90 : vector<99x1xf32> to vector<99x64xf32>
    %92 = arith.mulf %69, %91 : vector<99x64xf32>
    %cst_124 = arith.constant dense<0.000000e+00> : vector<64xf32>
    %93 = vector.multi_reduction <add>, %92, %cst_124 [0] : vector<99x64xf32> to vector<64xf32>
    %94 = vector.shape_cast %93 : vector<64xf32> to vector<1x64xf32>
    %95 = arith.mulf %69, %69 : vector<99x64xf32>
    %96 = vector.broadcast %90 : vector<99x1xf32> to vector<99x64xf32>
    %97 = arith.mulf %95, %96 : vector<99x64xf32>
    %cst_125 = arith.constant dense<0.000000e+00> : vector<64xf32>
    %98 = vector.multi_reduction <add>, %97, %cst_125 [0] : vector<99x64xf32> to vector<64xf32>
    %99 = vector.shape_cast %98 : vector<64xf32> to vector<1x64xf32>
    %100 = vector.extract_strided_slice %69 {offsets = [0, 0], sizes = [9, 64], strides = [1, 1]} : vector<99x64xf32> to vector<9x64xf32>
    %c0_126 = arith.constant 0 : index
    %c0_127 = arith.constant 0 : index
    %c0_128 = arith.constant 0 : index
    %c0_129 = arith.constant 0 : index
    %101 = vector.load %arg3[%c0_126, %c0_127, %c0_128, %c0_129] : memref<1x9x9x64xf32, #tpu.memory_space<vmem>>, vector<1x1x9x64xf32>
    %102 = vector.shape_cast %101 : vector<1x1x9x64xf32> to vector<9x64xf32>
    %103 = vector.shape_cast %100 : vector<9x64xf32> to vector<1x1x9x64xf32>
    tpu.vector_store %arg3[%c0_126, %c0_127, %c0_128, %c0_129], %103 {strides = array<i32>} : memref<1x9x9x64xf32, #tpu.memory_space<vmem>>, vector<1x1x9x64xf32>,
    %104 = vector.extract_strided_slice %69 {offsets = [11, 0], sizes = [9, 64], strides = [1, 1]} : vector<99x64xf32> to vector<9x64xf32>
    %c0_130 = arith.constant 0 : index
    %c1_131 = arith.constant 1 : index
    %c0_132 = arith.constant 0 : index
    %c0_133 = arith.constant 0 : index
    %105 = vector.load %arg3[%c0_130, %c1_131, %c0_132, %c0_133] : memref<1x9x9x64xf32, #tpu.memory_space<vmem>>, vector<1x1x9x64xf32>
    %106 = vector.shape_cast %105 : vector<1x1x9x64xf32> to vector<9x64xf32>
    %107 = vector.shape_cast %104 : vector<9x64xf32> to vector<1x1x9x64xf32>
    tpu.vector_store %arg3[%c0_130, %c1_131, %c0_132, %c0_133], %107 {strides = array<i32>} : memref<1x9x9x64xf32, #tpu.memory_space<vmem>>, vector<1x1x9x64xf32>,
    %108 = vector.extract_strided_slice %69 {offsets = [22, 0], sizes = [9, 64], strides = [1, 1]} : vector<99x64xf32> to vector<9x64xf32>
    %c0_134 = arith.constant 0 : index
    %c2_135 = arith.constant 2 : index
    %c0_136 = arith.constant 0 : index
    %c0_137 = arith.constant 0 : index
    %109 = vector.load %arg3[%c0_134, %c2_135, %c0_136, %c0_137] : memref<1x9x9x64xf32, #tpu.memory_space<vmem>>, vector<1x1x9x64xf32>
    %110 = vector.shape_cast %109 : vector<1x1x9x64xf32> to vector<9x64xf32>
    %111 = vector.shape_cast %108 : vector<9x64xf32> to vector<1x1x9x64xf32>
    tpu.vector_store %arg3[%c0_134, %c2_135, %c0_136, %c0_137], %111 {strides = array<i32>} : memref<1x9x9x64xf32, #tpu.memory_space<vmem>>, vector<1x1x9x64xf32>,
    %112 = vector.extract_strided_slice %69 {offsets = [33, 0], sizes = [9, 64], strides = [1, 1]} : vector<99x64xf32> to vector<9x64xf32>
    %c0_138 = arith.constant 0 : index
    %c3_139 = arith.constant 3 : index
    %c0_140 = arith.constant 0 : index
    %c0_141 = arith.constant 0 : index
    %113 = vector.load %arg3[%c0_138, %c3_139, %c0_140, %c0_141] : memref<1x9x9x64xf32, #tpu.memory_space<vmem>>, vector<1x1x9x64xf32>
    %114 = vector.shape_cast %113 : vector<1x1x9x64xf32> to vector<9x64xf32>
    %115 = vector.shape_cast %112 : vector<9x64xf32> to vector<1x1x9x64xf32>
    tpu.vector_store %arg3[%c0_138, %c3_139, %c0_140, %c0_141], %115 {strides = array<i32>} : memref<1x9x9x64xf32, #tpu.memory_space<vmem>>, vector<1x1x9x64xf32>,
    %116 = vector.extract_strided_slice %69 {offsets = [44, 0], sizes = [9, 64], strides = [1, 1]} : vector<99x64xf32> to vector<9x64xf32>
    %c0_142 = arith.constant 0 : index
    %c4 = arith.constant 4 : index
    %c0_143 = arith.constant 0 : index
    %c0_144 = arith.constant 0 : index
    %117 = vector.load %arg3[%c0_142, %c4, %c0_143, %c0_144] : memref<1x9x9x64xf32, #tpu.memory_space<vmem>>, vector<1x1x9x64xf32>
    %118 = vector.shape_cast %117 : vector<1x1x9x64xf32> to vector<9x64xf32>
    %119 = vector.shape_cast %116 : vector<9x64xf32> to vector<1x1x9x64xf32>
    tpu.vector_store %arg3[%c0_142, %c4, %c0_143, %c0_144], %119 {strides = array<i32>} : memref<1x9x9x64xf32, #tpu.memory_space<vmem>>, vector<1x1x9x64xf32>,
    %120 = vector.extract_strided_slice %69 {offsets = [55, 0], sizes = [9, 64], strides = [1, 1]} : vector<99x64xf32> to vector<9x64xf32>
    %c0_145 = arith.constant 0 : index
    %c5 = arith.constant 5 : index
    %c0_146 = arith.constant 0 : index
    %c0_147 = arith.constant 0 : index
    %121 = vector.load %arg3[%c0_145, %c5, %c0_146, %c0_147] : memref<1x9x9x64xf32, #tpu.memory_space<vmem>>, vector<1x1x9x64xf32>
    %122 = vector.shape_cast %121 : vector<1x1x9x64xf32> to vector<9x64xf32>
    %123 = vector.shape_cast %120 : vector<9x64xf32> to vector<1x1x9x64xf32>
    tpu.vector_store %arg3[%c0_145, %c5, %c0_146, %c0_147], %123 {strides = array<i32>} : memref<1x9x9x64xf32, #tpu.memory_space<vmem>>, vector<1x1x9x64xf32>,
    %124 = vector.extract_strided_slice %69 {offsets = [66, 0], sizes = [9, 64], strides = [1, 1]} : vector<99x64xf32> to vector<9x64xf32>
    %c0_148 = arith.constant 0 : index
    %c6 = arith.constant 6 : index
    %c0_149 = arith.constant 0 : index
    %c0_150 = arith.constant 0 : index
    %125 = vector.load %arg3[%c0_148, %c6, %c0_149, %c0_150] : memref<1x9x9x64xf32, #tpu.memory_space<vmem>>, vector<1x1x9x64xf32>
    %126 = vector.shape_cast %125 : vector<1x1x9x64xf32> to vector<9x64xf32>
    %127 = vector.shape_cast %124 : vector<9x64xf32> to vector<1x1x9x64xf32>
    tpu.vector_store %arg3[%c0_148, %c6, %c0_149, %c0_150], %127 {strides = array<i32>} : memref<1x9x9x64xf32, #tpu.memory_space<vmem>>, vector<1x1x9x64xf32>,
    %128 = vector.extract_strided_slice %69 {offsets = [77, 0], sizes = [9, 64], strides = [1, 1]} : vector<99x64xf32> to vector<9x64xf32>
    %c0_151 = arith.constant 0 : index
    %c7 = arith.constant 7 : index
    %c0_152 = arith.constant 0 : index
    %c0_153 = arith.constant 0 : index
    %129 = vector.load %arg3[%c0_151, %c7, %c0_152, %c0_153] : memref<1x9x9x64xf32, #tpu.memory_space<vmem>>, vector<1x1x9x64xf32>
    %130 = vector.shape_cast %129 : vector<1x1x9x64xf32> to vector<9x64xf32>
    %131 = vector.shape_cast %128 : vector<9x64xf32> to vector<1x1x9x64xf32>
    tpu.vector_store %arg3[%c0_151, %c7, %c0_152, %c0_153], %131 {strides = array<i32>} : memref<1x9x9x64xf32, #tpu.memory_space<vmem>>, vector<1x1x9x64xf32>,
    %132 = vector.extract_strided_slice %69 {offsets = [88, 0], sizes = [9, 64], strides = [1, 1]} : vector<99x64xf32> to vector<9x64xf32>
    %c0_154 = arith.constant 0 : index
    %c8 = arith.constant 8 : index
    %c0_155 = arith.constant 0 : index
    %c0_156 = arith.constant 0 : index
    %133 = vector.load %arg3[%c0_154, %c8, %c0_155, %c0_156] : memref<1x9x9x64xf32, #tpu.memory_space<vmem>>, vector<1x1x9x64xf32>
    %134 = vector.shape_cast %133 : vector<1x1x9x64xf32> to vector<9x64xf32>
    %135 = vector.shape_cast %132 : vector<9x64xf32> to vector<1x1x9x64xf32>
    tpu.vector_store %arg3[%c0_154, %c8, %c0_155, %c0_156], %135 {strides = array<i32>} : memref<1x9x9x64xf32, #tpu.memory_space<vmem>>, vector<1x1x9x64xf32>,
    %136 = tpu.concatenate %94, %99 in 0 : vector<1x64xf32>, vector<1x64xf32> -> vector<2x64xf32>
    %c0_157 = arith.constant 0 : index
    %c0_158 = arith.constant 0 : index
    %c0_159 = arith.constant 0 : index
    %137 = vector.load %arg4[%c0_157, %c0_158, %c0_159] : memref<1x2x64xf32, #tpu.memory_space<vmem>>, vector<1x2x64xf32>
    %138 = vector.shape_cast %137 : vector<1x2x64xf32> to vector<2x64xf32>
    %139 = vector.shape_cast %136 : vector<2x64xf32> to vector<1x2x64xf32>
    tpu.vector_store %arg4[%c0_157, %c0_158, %c0_159], %139 {strides = array<i32>} : memref<1x2x64xf32, #tpu.memory_space<vmem>>, vector<1x2x64xf32>,
    return
  }
  func.func @transform_0(%arg0: i32) -> (i32, i32, i32, i32) {
    %c0_i32 = arith.constant 0 : i32
    %c0_i32_0 = arith.constant 0 : i32
    %c0_i32_1 = arith.constant 0 : i32
    %c0_i32_2 = arith.constant 0 : i32
    return %arg0, %c0_i32, %c0_i32_0, %c0_i32_1 : i32, i32, i32, i32
  }
  func.func @transform_1(%arg0: i32) -> (i32, i32, i32) {
    %c0_i32 = arith.constant 0 : i32
    %c0_i32_0 = arith.constant 0 : i32
    %c0_i32_1 = arith.constant 0 : i32
    %c0_i32_2 = arith.constant 0 : i32
    return %c0_i32, %c0_i32_0, %c0_i32_1 : i32, i32, i32
  }
  func.func @transform_2(%arg0: i32) -> (i32, i32, i32, i32) {
    %c0_i32 = arith.constant 0 : i32
    %c0_i32_0 = arith.constant 0 : i32
    %c0_i32_1 = arith.constant 0 : i32
    %c0_i32_2 = arith.constant 0 : i32
    return %arg0, %c0_i32, %c0_i32_0, %c0_i32_1 : i32, i32, i32, i32
  }
  func.func @transform_3(%arg0: i32) -> (i32, i32, i32) {
    %c0_i32 = arith.constant 0 : i32
    %c0_i32_0 = arith.constant 0 : i32
    %c0_i32_1 = arith.constant 0 : i32
    return %arg0, %c0_i32, %c0_i32_0 : i32, i32, i32
  }
}

</mosaic_0001>

<bundles_post_ra>
// kernel: tpu_custom_call.1
= control target key start
LH: loop header
LB: loop body
LE: loop exit
PB: predicated region body
PF: predicated region fallthrough
CT: control target
= control target key end

     0   :  { %9 = vsyncpa [#allocation3], 0  ;;  %s5967_s0 = inlined_call_operand.vmem [shape: bf16[2,4,132,4], index: 0, kind: input, shape index: {}]   ;;  %s5968_s1 = inlined_call_operand.vmem [shape: bf16[1,128,64], index: 1, kind: input, shape index: {}]   ;;  %s5969_s2 = inlined_call_operand.vmem [shape: f32[2,9,9,64], index: 2, kind: output, shape index: {0}]   ;;  %s5970_s3 = inlined_call_operand.hbm [shape: f32[2,2,64], index: 3, kind: output, shape index: {1}]  }
   0x1   :  { %11 = vsyncpa [#allocation3 + $0x1], 0  ;;  %s3446_s12 = smov 0   ;;  %s3448_s13 = smov 0  }
   0x2   :  { %s3450_s14 = smov 0   ;;  %s3452_s15 = smov 0  }
   0x3 LB: > { %s3467_s16 = sadd.s32 4294967295, %s3405_s15   ;;  %s2895_s17 = sadd.s32 4294967294, %s3405_s15   ;;  %s3405_s15 = sphi %s3452_s15, %s6493_s15   ;;  %s3401_s14 = sphi %s3450_s14, %s6492_s14   ;;  %s3397_s13 = sphi %s3448_s13, %s6491_s13   ;;  %s3393_s12 = sphi %s3446_s12, %s6490_s12  }
   0x4   : > { %s3471_s18 = sadd.s32 1, %s3405_s15   ;;  %s97_s19 = sadd.s32 1, %s3401_s14 }
   0x5   : > { %s94_s20 = ssub.s32 %s3405_s15, %s3471_s18  ;;  %p107_p0 = scmp.ne.s32.totalorder %s3401_s14, %s3397_s13 }
   0x6   : > { %p95_p1 = scmp.eq.s32.totalorder %s94_s20, 0  ;;  %p108_p2 = scmp.eq.s32.totalorder %s3467_s16, 1 }
   0x7   : > { %p113_p3 = scmp.ne.s32.totalorder %s3397_s13, %s3393_s12  ;;  %p114_p4 = scmp.eq.s32.totalorder %s2895_s17, 1 }
   0x8   : > { %s3482_s21 = scalar_select %p95_p1, %s3401_s14, %s97_s19  }
   0x9   : > { %p3484_p5 = por %p108_p2, %p107_p0  ;;  %p3488_p6 = por %p114_p4, %p113_p3 }
   0xa   : > { %p2898_p7 = scmp.ge.s32.totalorder %s3405_s15, 1  ;;  %p143_p8 = scmp.lt.s32.totalorder %s3405_s15, 3 }
   0xc   : > { %p144_p9 = pnand %p2898_p7, %p143_p8 }
   0xe   : > { %147 = sbr.rel (%p144_p9) target bundleno = 823 (0x337), region = 28 }
  0x15   : > { %p172_p10 = scmp.lt.s32.totalorder %s3467_s16, 1  ;;  %s3407_s29 = smov 4   ;;  %vm349_vm0 = vsmask.f32 7424  ;;  %vm494_vm1 = vcmask 1046528   ;;  %vm972_vm3 = vcmask 1045504  }
  0x16   : > { %s3408_s30 = smov 8   ;;  %vm800_vm2 = vsmask.f32 6400  ;;  %s3409_s4 = smov 12   ;;  %vm1752_vm4 = vsmask.f32 1280 }
  0x17   : > { %s3496_s24 = scalar_select %p172_p10, %s3467_s16, 1  ;;  %vm6083_vm5 = vcmask 31744   ;;  %vm6077_vm6 = vcmask 64512   ;;  %vm1204_vm7 = vcmask 97280   ;;  %vm6078_vm8 = vcmask 130048  }
  0x18   : > { %s3410_s5 = smov 16   ;;  %s3411_s6 = smov 20   ;;  %vm1234_vm9 = vcmask 162816   ;;  %vm1249_vm10 = vcmask 195584   ;;  %vm6097_vm11 = vcmask 228352   ;;  %vm6084_vm12 = vcmask 261120  }
  0x19   : > { %s3153_s25 = smul.u32 272, %s3496_s24  ;;  %s3412_s7 = smov 24   ;;  %vm6079_vm13 = vcmask 293888   ;;  %vm6080_vm14 = vcmask 326656   ;;  %vm1354_vm15 = vcmask 424960  }
  0x1a   : > { %s3413_s8 = smov 28   ;;  %s3414_s9 = smov 32  }
  0x1b   : > { %s3502_s28 = scalar_lea.vmem %s5967_s0, %s3153_s25  ;;  %s3415_s10 = smov 36  }
  0x1c   : > { %v2906_v0 = vld [vmem:[%s3502_s28 + $0x54] sm:$0xf]  ;;  %v2907_v1 = vld [vmem:[%s3502_s28 + $0x58] sm:$0xf]  ;;  %v3239_v3 = vld [vmem:[%s3502_s28 + $0x44] sm:$0xff]   ;;  %s3416_s11 = smov 40  }
  0x1d   : > { %v3506_v2 = vcombine.low %v2906_v0, %v2907_v1  ;;  %v2908_v4 = vld [vmem:[%s3502_s28 + $0x5c] sm:$0xf]  ;;  %v2909_v5 = vld [vmem:[%s3502_s28 + $0x60] sm:$0xf]  ;;  %v2904_v7 = vld [vmem:[%s3502_s28 + $0x4c] sm:$0xf]  ;;  %335 = vrot.lane.b32.xlu0 %v3239_v3, %s3407_s29 }
  0x1e   : > { %v3511_v6 = vcombine.low %v2907_v1, %v2908_v4  ;;  %v3515_v8 = vld [vmem:[%s3502_s28 + $0x50] sm:$0xf]  ;;  %v3520_v9 = vcombine.low %v2908_v4, %v2909_v5  ;;  %v2912_v12 = vld [vmem:[%s3502_s28 + $0x6c] sm:$0xf]  ;;  %v3531_v14 = vld [vmem:[%s3502_s28 + $0x74] sm:$0xf] }
  0x1f   : > { %339 = vrot.lane.b32.xlu1 %v3506_v2, %s3407_s29  ;;  %v3523_v10 = vcombine.low %v2904_v7, %v3515_v8  ;;  %v3526_v11 = vcombine.low %v3515_v8, %v2906_v0  ;;  %v2913_v13 = vld [vmem:[%s3502_s28 + $0x70] sm:$0xf]  ;;  %v2910_v16 = vld [vmem:[%s3502_s28 + $0x64] sm:$0xf]  ;;  %v2911_v17 = vld [vmem:[%s3502_s28 + $0x68] sm:$0xf] }
  0x20   : > { %6102 = vst [vmem:[#allocation5_spill] sm:$0xff] %v3520_v9  ;;  %v3534_v15 = vcombine.low %v2913_v13, %v3531_v14  ;;  %v3538_v18 = vcombine.low %v2909_v5, %v2910_v16  ;;  %v183_v19 = vld [vmem:[%s3502_s28] sm:$0xf]  ;;  %v3545_v20 = vcombine.low %v2912_v12, %v2913_v13  ;;  %v3547_v21 = vcombine.low %v2910_v16, %v2911_v17  ;;  %v184_v23 = vld [vmem:[%s3502_s28 + $0x4] sm:$0xf]  ;;  %s3417_s17 = smov 44  }
  0x21   : > { %6103 = vst [vmem:[#allocation6_spill] sm:$0xff] %v3523_v10  ;;  %6104 = vst [vmem:[#allocation7_spill] sm:$0xff] %v3526_v11  ;;  %337 = vrot.lane.b32.xlu0 %v3523_v10, %s3407_s29  ;;  %v3549_v22 = vcombine.low %v2911_v17, %v2912_v12  ;;  %v185_v24 = vld [vmem:[%s3502_s28 + $0x8] sm:$0xf]  ;;  %v3554_v25 = vld [vmem:[%s3502_s28 + $0xc] sm:$0xf]  ;;  %v3556_v26 = vcombine.low %v183_v19, %v184_v23 }
  0x22   : > { %6105 = vst [vmem:[#allocation8_spill] sm:$0xff] %v3534_v15  ;;  %6106 = vst [vmem:[#allocation9_spill] sm:$0xff] %v3545_v20  ;;  %v3559_v27 = vld [vmem:[%s3502_s28 + $0x10] sm:$0xf]  ;;  %v3562_v28 = vcombine.low %v185_v24, %v3554_v25  ;;  %v3565_v29 = vld [vmem:[%s3502_s28 + $0x14] sm:$0xf] }
  0x23   : > { %341 = vrot.lane.b32.xlu1 %v3520_v9, %s3407_s29  ;;  %6107 = vst [vmem:[#allocation10_spill] sm:$0xff] %v3547_v21  ;;  %6108 = vst [vmem:[#allocation11_spill] sm:$0xff] %v3549_v22  ;;  %v3568_v30 = vld [vmem:[%s3502_s28 + $0x18] sm:$0xf]  ;;  %v5975_v31 = vshrl.u32 %v3556_v26, 16  ;;  %v5974_v32 = vshll.u32 %v3556_v26, 16  ;;  %v3574_v33 = vcombine.low %v3559_v27, %v3565_v29 }
  0x24   : > { %6109 = vst [vmem:[#allocation12_spill] sm:$0xff] %v3556_v26  ;;  %6110 = vst [vmem:[#allocation13_spill] sm:$0xff] %v3562_v28  ;;  %v190_v34 = vld [vmem:[%s3502_s28 + $0x1c] sm:$0xf]  ;;  %v191_v35 = vld [vmem:[%s3502_s28 + $0x20] sm:$0xf] }
  0x25   : > { %6111 = vst [vmem:[#allocation14_spill] sm:$0xff] %v3574_v33  ;;  %343 = vrot.lane.b32.xlu0 %v3547_v21, %s3407_s29  ;;  %v3252_v36 = vld [vmem:[%s3502_s28 + $0x74] ss:$0 sps:$4 sm:$0x33]   ;;  %v5973_v37 = vshll.u32 %v3562_v28, 16  ;;  %v5972_v38 = vshrl.u32 %v3562_v28, 16  ;;  %v3586_v39 = vcombine.low %v3568_v30, %v190_v34  ;;  %v3588_v40 = vcombine.low %v190_v34, %v191_v35 }
  0x26   : > { %v355_v41 = vrot.slane %v5974_v32, 1  ;;  %v3593_v42 = vshll.u32 %v3574_v33, 16  ;;  %v3596_v43 = vld [vmem:[%s3502_s28 + $0x24] sm:$0xf]  ;;  %v3601_v45 = vshrl.u32 %v3574_v33, 16  ;;  %s3418_s19 = smov 48  }
  0x27   : > { %345 = vrot.lane.b32.xlu1 %v3545_v20, %s3407_s29  ;;  %6112 = vst [vmem:[#allocation15_spill] sm:$0xff] %v3586_v39  ;;  %6113 = vst [vmem:[#allocation16_spill] sm:$0xff] %v3588_v40  ;;  %v360_v44 = vrot.slane %v5973_v37, 1  ;;  %v3604_v46 = vld [vmem:[%s3502_s28 + $0x28] sm:$0xf]  ;;  %v3619_v52 = vshll.u32 %v3586_v39, 16  ;;  %v3624_v55 = vcombine.low %v191_v35, %v3596_v43 }
  0x28   : > { %v356_v47 = vor.u32 %v355_v41, %v5975_v31  ;;  %v368_v48 = vrot.slane %v3593_v42, 1  ;;  %v3610_v49 = vld [vmem:[%s3502_s28 + $0x2c] sm:$0xf]  ;;  %v3613_v50 = vld [vmem:[%s3502_s28 + $0x30] ss:$0 sps:$4 sm:$0x33]  }
  0x29   : > { %6114 = vst [vmem:[#allocation17_spill] sm:$0xff] %v3613_v50  ;;  %347 = vrot.lane.b32.xlu0 %v3252_v36, %s3407_s29  ;;  %v364_v51 = vor.u32 %v5972_v38, %v360_v44  ;;  %6115 = vst [vmem:[#allocation18_spill] sm:$0xff] %v3624_v55  ;;  %v3627_v56 = vshrl.u32 %v3586_v39, 16  ;;  %v376_v58 = vrot.slane %v3619_v52, 1  ;;  %v3634_v59 = vcombine.low %v3604_v46, %v3610_v49  ;;  %v3644_v63 = vld [vmem:[%s3502_s28 + $0x90] sm:$0xf] }
  0x2a   : > { %v361_v53 = vsel %vm349_vm0, %v356_v47, %v360_v44  ;;  %v372_v54 = vor.u32 %v3601_v45, %v368_v48  ;;  %v3637_v60 = vshll.u32 %v3624_v55, 16  ;;  %v3640_v61 = vshrl.u32 %v3624_v55, 16  ;;  %v3647_v0 = vld [vmem:[%s3502_s28 + $0x94] sm:$0xf]  ;;  %v2919_v7 = vld [vmem:[%s3502_s28 + $0x98] sm:$0xf] }
  0x2b   : > { %405 = vrot.lane.b32.xlu1 %v361_v53, %s3408_s30  ;;  %v369_v57 = vsel %vm349_vm0, %v364_v51, %v368_v48  ;;  %6116 = vst [vmem:[#allocation19_spill] sm:$0xff] %v3634_v59  ;;  %v5971_v62 = vshll.u32 %v3613_v50, 16  ;;  %v380_v3 = vor.u32 %v3627_v56, %v376_v58  ;;  %v3653_v4 = vshll.u32 %v3634_v59, 16  ;;  %v2954_v12 = vld [vmem:[%s3502_s28 + $0x8c] sm:$0xc]  ;;  %s3419_s20 = smov 52  }
  0x2c   : > { %v377_v1 = vsel %vm349_vm0, %v372_v54, %v376_v58  ;;  %v3656_v5 = vshrl.u32 %v3634_v59, 16  ;;  %v384_v13 = vrot.slane %v3637_v60, 1  ;;  %v2920_v16 = vld [vmem:[%s3502_s28 + $0x9c] sm:$0xf]  ;;  %v3663_v17 = vld [vmem:[%s3502_s28 + $0xa0] sm:$0xf]  ;;  %v3679_v47 = vcombine.low %v3647_v0, %v2919_v7 }
  0x2d   : > { %407 = vrot.lane.b32.xlu0 %v369_v57, %s3408_s30  ;;  %v392_v19 = vrot.slane %v3653_v4, 1  ;;  %v3669_v23 = vrot.slane %v5971_v62, 1  ;;  %v2931_v24 = vld [vmem:[%s3502_s28 + $0xd8] sm:$0xf]  ;;  %v2932_v34 = vld [vmem:[%s3502_s28 + $0xdc] sm:$0xf]  ;;  %v3025_v48 = vcombine.low %v2954_v12, %v3644_v63  ;;  %v3685_v57 = vcombine.low %v2919_v7, %v2920_v16 }
  0x2e   : > { %v2958_v35 = vld [vmem:[%s3502_s28 + $0x4c] sm:$0x8]  ;;  %v385_v36 = vsel %vm349_vm0, %v380_v3, %v384_v13  ;;  %v388_v41 = vor.u32 %v3640_v61, %v384_v13  ;;  %6118 = vst [vmem:[#allocation21_spill] sm:$0xff] %v3679_v47  ;;  %v2930_v51 = vld [vmem:[%s3502_s28 + $0xd4] sm:$0xf]  ;;  %v3688_v58 = vcombine.low %v2920_v16, %v3663_v17  ;;  %v5976_v62 = vshll.u32 %v3679_v47, 16 }
  0x2f   : > { %409 = vrot.lane.b32.xlu1 %v377_v1, %s3408_s30  ;;  %6117 = vst [vmem:[#allocation20_spill] sm:$0xff] %v3669_v23  ;;  %v396_v44 = vor.u32 %v3656_v5, %v392_v19  ;;  %v2956_v53 = vld [vmem:[%s3502_s28 + $0xd0] sm:$0xc]  ;;  %6119 = vst [vmem:[#allocation22_spill] sm:$0xff] %v3685_v57  ;;  %v3690_v1 = vcombine.low %v2931_v24, %v2932_v34  ;;  %v2933_v3 = vld [vmem:[%s3502_s28 + $0xe0] sm:$0xf] }
  0x30   : > { %v393_v54 = vsel %vm349_vm0, %v388_v41, %v392_v19  ;;  %6120 = vst [vmem:[#allocation23_spill] sm:$0xff] %v3688_v58  ;;  %v2934_v13 = vld [vmem:[%s3502_s28 + $0xe4] sm:$0xf]  ;;  %v1419_v7 = vshrl.u32 %v3025_v48, 16  ;;  %v1421_v19 = vshll.u32 %v3025_v48, 16  ;;  %v5982_v16 = vshrl.u32 %v3679_v47, 16 }
  0x31   : > { %411 = vrot.lane.b32.xlu0 %v385_v36, %s3408_s30  ;;  %6121 = vst [vmem:[#allocation24_spill] sm:$0xff] %v3690_v1  ;;  %v3695_v36 = vcombine.low %v2958_v35, %v3515_v8  ;;  %v401_v12 = vsel %vm349_vm0, %v396_v44, %v3669_v23  ;;  %v5978_v24 = vshll.u32 %v3688_v58, 16  ;;  %v3027_v34 = vcombine.low %v2956_v53, %v2930_v51  ;;  %v262_v31 = vld [vmem:[%s3502_s28 + $0x8] sm:$0x8]  ;;  %s3420_s25 = smov 56   ;;  %s3421_s26 = smov 60  }
  0x32   : > { %v1425_v8 = vrot.slane %v5976_v62, 1  ;;  %v1476_v35 = vshll.u32 %v3690_v1, 16  ;;  %v3707_v41 = vcombine.low %v2933_v3, %v2934_v13  ;;  %v1480_v44 = vshrl.u32 %v3690_v1, 16  ;;  %s3424_s27 = smov 64  }
  0x33   : > { %413 = vrot.lane.b32.xlu1 %v393_v54, %s3408_s30  ;;  %v1423_v54 = vrot.slane %v1421_v19, 1  ;;  %v3712_v38 = vrot.slane %v5978_v24, 1  ;;  %v1469_v37 = vshrl.u32 %v3027_v34, 16  ;;  %v1471_v32 = vshll.u32 %v3027_v34, 16 }
  0x34   : > { %6122 = vst [vmem:[#allocation25_spill] sm:$0xff] %v3707_v41  ;;  %v1427_v51 = vor.u32 %v1425_v8, %v5982_v16  ;;  %v1478_v53 = vrot.slane %v1476_v35, 1  ;;  %v1537_v23 = vrot.slane %v3025_v48, 1  ;;  %v5989_v19 = vshrl.u32 %v3506_v2, 16 }
  0x35   : > { %415 = vrot.lane.b32.xlu0 %v401_v12, %s3408_s30  ;;  %v1484_v12 = vshll.u32 %v3707_v41, 16  ;;  %v1424_v3 = vor.u32 %v1423_v54, %v1419_v7  ;;  %v1473_v13 = vrot.slane %v1471_v32, 1  ;;  %v3725_v34 = vcombine.low %v262_v31, %v3554_v25 }
  0x36   : > { %v1429_v24 = vsel %vm349_vm0, %v1427_v51, %v3712_v38  ;;  %v1482_v1 = vor.u32 %v1480_v44, %v1478_v53  ;;  %v1538_v7 = vrot.slane %v3679_v47, 1  ;;  %v5992_v32 = vrot.slane %v3688_v58, 1 }
  0x37   : > { %v3722_v10 = vrot.slane %v1484_v12, 1  ;;  %v1426_v35 = vsel %vm349_vm0, %v1424_v3, %v1425_v8  ;;  %v1474_v16 = vor.u32 %v1473_v13, %v1469_v37  ;;  %v1574_v44 = vshrl.u32 %v3725_v34, 16 }
  0x38   : > { %1448 = vrot.lane.b32.xlu1 %v1426_v35, %s3407_s29  ;;  %v1577_v54 = vshll.u32 %v3725_v34, 16  ;;  %v1581_v31 = vrot.slane %v3601_v45, 1  ;;  %v1585_v37 = vrot.slane %v3627_v56, 1  ;;  %v1586_v51 = vrot.slane %v3619_v52, 2 }
  0x39   : > { %1450 = vrot.lane.b32.xlu0 %v1429_v24, %s3407_s29  ;;  %v1487_v48 = vsel %vm349_vm0, %v1482_v1, %v3722_v10  ;;  %v1479_v8 = vsel %vm349_vm0, %v1474_v16, %v1478_v53  ;;  %v1582_v24 = vrot.slane %v3593_v42, 2  ;;  %v1576_v12 = vrot.slane %v1574_v44, 1 }
  0x3a   : > { %v1579_v3 = vrot.slane %v1577_v54, 2  ;;  %v1639_v13 = vshrl.u32 %v3695_v36, 16  ;;  %v1642_v1 = vshll.u32 %v3695_v36, 16  ;;  %v1539_v35 = vsel %vm494_vm1, %v1537_v23, %v1538_v7 }
  0x3b   : > { %v1541_v16 = vsel %vm494_vm1, %v1538_v7, %v5992_v32  ;;  %v1583_v53 = vor.u32 %v1582_v24, %v1581_v31  ;;  %v3749_v62 = vor.u32 %v1586_v51, %v1585_v37  ;;  %v1646_v44 = vrot.slane %v5989_v19, 1 }
  0x3c   : > { %1523 = vrot.lane.b32.xlu1 %v1479_v8, %s3408_s30  ;;  %v6123_v54 = vshll.u32 %v3506_v2, 16  ;;  %v1580_v15 = vor.u32 %v1579_v3, %v1576_v12  ;;  %v1641_v23 = vrot.slane %v1639_v13, 1  ;;  %v1644_v22 = vrot.slane %v1642_v1, 2 }
  0x3d   : > { %1525 = vrot.lane.b32.xlu0 %v1487_v48, %s3408_s30  ;;  %v5988_v48 = vshll.u32 %v3520_v9, 16  ;;  %v5987_v7 = vshrl.u32 %v3520_v9, 16  ;;  %v1588_v24 = vsel %vm800_vm2, %v1583_v53, %v3749_v62  ;;  %v3767_v37 = vcombine.low %v3565_v29, %v3568_v30 }
  0x3e   : > { %v1647_v47 = vrot.slane %v6123_v54, 2  ;;  %v1584_v51 = vsel %vm800_vm2, %v1580_v15, %v1583_v53  ;;  %v1645_v12 = vor.u32 %v1644_v22, %v1641_v23  ;;  %v3774_v1 = vcombine.low %v3554_v25, %v3559_v27  ;;  %v2923_v27 = vld [vmem:[%s3502_s28 + $0xa8] sm:$0xf] }
  0x3f   : > { %v1651_v31 = vrot.slane %v5988_v48, 2  ;;  %v1650_v8 = vrot.slane %v5987_v7, 1  ;;  %6124 = vst [vmem:[#allocation26_spill] sm:$0xff] %v3767_v37  ;;  %v5990_v22 = vrot.slane %v3586_v39, 2  ;;  %v3786_v29 = vshrl.u32 %v3767_v37, 16 }
  0x40   : > { %1550 = vrot.lane.b32.xlu1 %v1539_v35, %s3409_s4  ;;  %v1648_v3 = vor.u32 %v1647_v47, %v1646_v44  ;;  %v3789_v25 = vshll.u32 %v3767_v37, 16  ;;  %v1694_v47 = vrot.slane %v3725_v34, 2  ;;  %v3796_v53 = vshrl.u32 %v3774_v1, 16 }
  0x41   : > { %1552 = vrot.lane.b32.xlu0 %v1541_v16, %s3409_s4  ;;  %v3770_v13 = vor.u32 %v1651_v31, %v1650_v8  ;;  %v2922_v16 = vld [vmem:[%s3502_s28 + $0xa4] sm:$0xf]  ;;  %6126 = vst [vmem:[#allocation28_spill] sm:$0xff] %v3786_v29  ;;  %v3799_v44 = vshll.u32 %v3774_v1, 16  ;;  %v1812_v54 = vrot.slane %v3593_v42, 7  ;;  %v1811_v23 = vrot.slane %v3601_v45, 6 }
  0x42   : > { %v3779_v35 = vcombine.low %v3663_v17, %v2922_v16  ;;  %6127 = vst [vmem:[#allocation29_spill] sm:$0xff] %v3789_v25  ;;  %v1649_v30 = vsel %vm800_vm2, %v1645_v12, %v1648_v3  ;;  %v1695_v17 = vrot.slane %v3574_v33, 2  ;;  %v5991_v31 = vrot.slane %v3520_v9, 2 }
  0x43   : > { %v1653_v15 = vsel %vm800_vm2, %v1648_v3, %v3770_v13  ;;  %v1756_v8 = vrot.slane %v3786_v29, 6  ;;  %v1721_v42 = vrot.slane %v3695_v36, 2  ;;  %v1722_v45 = vrot.slane %v3506_v2, 2  ;;  %v2935_v3 = vld [vmem:[%s3502_s28 + $0xe8] sm:$0xf] }
  0x44   : > { %6125 = vst [vmem:[#allocation27_spill] sm:$0xff] %v3779_v35  ;;  %1615 = vrot.lane.b32.xlu1 %v1584_v51, %s3410_s5  ;;  %v1698_v34 = vsel %vm972_vm3, %v1695_v17, %v5990_v22  ;;  %v1696_v51 = vsel %vm972_vm3, %v1694_v47, %v1695_v17  ;;  %v3814_v12 = vcombine.low %v2922_v16, %v2923_v27  ;;  %v1754_v7 = vrot.slane %v3799_v44, 7  ;;  %v2943_v29 = vld [vmem:[%s3502_s28 + $0x48] sm:$0xe] }
  0x45   : > { %1617 = vrot.lane.b32.xlu0 %v1588_v24, %s3410_s5  ;;  %v1757_v24 = vrot.slane %v3789_v25, 7  ;;  %v1725_v36 = vsel %vm972_vm3, %v1722_v45, %v5991_v31  ;;  %v1723_v27 = vsel %vm972_vm3, %v1721_v42, %v1722_v45  ;;  %v5993_v17 = vshrl.u32 %v3688_v58, 16  ;;  %v3844_v45 = vld [vmem:[%s3502_s28 + $0xb0] sm:$0xf]  ;;  %v3322_v25 = vld [vmem:[%s3502_s28 + $0x44] sm:$0xff]  }
  0x46   : > { %6128 = vst [vmem:[#allocation30_spill] sm:$0xff] %v3814_v12  ;;  %v5994_v48 = vshll.u32 %v3814_v12, 16  ;;  %v6130_v19 = vshrl.u32 %v3556_v26, 16  ;;  %v6131_v31 = vshll.u32 %v3556_v26, 16 }
  0x47   : > { %v3825_v47 = vor.u32 %v1757_v24, %v1756_v8  ;;  %v6132_v8 = vshll.u32 %v3562_v28, 16 }
  0x48   : > { %1680 = vrot.lane.b32.xlu1 %v1649_v30, %s3411_s6  ;;  %v1753_v30 = vrot.slane %v3796_v53, 6  ;;  %v1804_v22 = vrot.slane %v6130_v19, 6  ;;  %v1805_v32 = vrot.slane %v6131_v31, 7  ;;  %v1488_v19 = vshrl.u32 %v3707_v41, 16  ;;  %v3853_v31 = vld [vmem:[%s3502_s28 + $0xb4] sm:$0xf] }
  0x49   : > { %1682 = vrot.lane.b32.xlu0 %v1653_v15, %s3411_s6  ;;  %v2936_v15 = vld [vmem:[%s3502_s28 + $0xec] sm:$0xf]  ;;  %v1808_v24 = vrot.slane %v6132_v8, 7 }
  0x4a   : > { %v3827_v16 = vcombine.low %v2935_v3, %v2936_v15  ;;  %v6133_v3 = vshrl.u32 %v3562_v28, 16  ;;  %v1430_v15 = vor.u32 %v3712_v38, %v5993_v17  ;;  %v3867_v8 = vor.u32 %v1805_v32, %v1804_v22 }
  0x4b   : > { %v1490_v38 = vor.u32 %v1488_v19, %v3722_v10  ;;  %v1726_v22 = vrot.slane %v3547_v21, 2  ;;  %v3907_v19 = vcombine.low %v3596_v43, %v3604_v46  ;;  %v5997_v46 = vshll.u32 %v3547_v21, 16 }
  0x4c   : > { %1707 = vrot.lane.b32.xlu1 %v1696_v51, %s3412_s7  ;;  %6129 = vst [vmem:[#allocation31_spill] sm:$0xff] %v3827_v16  ;;  %v1755_v51 = vor.u32 %v1754_v7, %v1753_v30  ;;  %v1807_v42 = vrot.slane %v6133_v3, 6  ;;  %v3860_v30 = vrot.slane %v5994_v48, 1 }
  0x4d   : > { %1709 = vrot.lane.b32.xlu0 %v1698_v34, %s3412_s7  ;;  %v3832_v34 = vor.u32 %v1812_v54, %v1811_v23  ;;  %v1492_v54 = vshll.u32 %v3827_v16, 16  ;;  %v1593_v23 = vrot.slane %v3656_v5, 1  ;;  %6135 = vst [vmem:[#allocation33_spill] sm:$0xff] %v3907_v19 }
  0x4e   : > { %v1759_v7 = vsel %vm1752_vm4, %v1755_v51, %v3825_v47  ;;  %v3876_v48 = vor.u32 %v1808_v24, %v1807_v42  ;;  %v1432_v26 = vsel %vm349_vm0, %v1430_v15, %v3860_v30  ;;  %v1589_v24 = vrot.slane %v3640_v61, 1 }
  0x4f   : > { %v3874_v17 = vrot.slane %v1492_v54, 1  ;;  %v1816_v54 = vrot.slane %v3619_v52, 7  ;;  %v5996_v52 = vshrl.u32 %v3547_v21, 16 }
  0x50   : > { %1734 = vrot.lane.b32.xlu1 %v1723_v27, %s3413_s8  ;;  %v3865_v27 = vcombine.low %v3844_v45, %v3853_v31  ;;  %v3888_v10 = vsel %vm1752_vm4, %v3867_v8, %v3876_v48 }
  0x51   : > { %1736 = vrot.lane.b32.xlu0 %v1725_v36, %s3413_s8  ;;  %v1594_v36 = vrot.slane %v3653_v4, 2  ;;  %v1495_v32 = vsel %vm349_vm0, %v1490_v38, %v3874_v17 }
  0x52   : > { %6134 = vst [vmem:[#allocation32_spill] sm:$0xff] %v3865_v27 }
  0x53   : > { %v3870_v3 = vor.u32 %v1594_v36, %v1593_v23  ;;  %v1815_v23 = vrot.slane %v3627_v56, 6  ;;  %v6136_v36 = vrot.slane %v3688_v58, 1 }
  0x54   : > { %1790 = vrot.lane.b32.xlu1 %v1755_v51, %s3414_s9  ;;  %v5998_v51 = vrot.slane %v3545_v20, 2 }
  0x55   : > { %1792 = vrot.lane.b32.xlu0 %v1759_v7, %s3414_s9  ;;  %v6000_v7 = vrot.slane %v3814_v12, 1  ;;  %v1817_v56 = vor.u32 %v1816_v54, %v1815_v23  ;;  %v1819_v54 = vrot.slane %v3640_v61, 6  ;;  %v1824_v23 = vrot.slane %v3653_v4, 7 }
  0x56   : > { %v3902_v42 = vsel %vm972_vm3, %v1726_v22, %v5998_v51  ;;  %v5999_v61 = vrot.slane %v3624_v55, 2  ;;  %v2937_v51 = vld [vmem:[%s3502_s28 + $0xf0] sm:$0xf] }
  0x57   : > { %v1543_v43 = vsel %vm494_vm1, %v6136_v36, %v6000_v7  ;;  %v1820_v36 = vrot.slane %v3637_v60, 7 }
  0x58   : > { %1452 = vrot.lane.b32.xlu1 %v1432_v26, %s3407_s29  ;;  %v1590_v26 = vrot.slane %v3637_v60, 2 }
  0x59   : > { %1831 = vrot.lane.b32.xlu0 %v3867_v8, %s3415_s10 }
  0x5a   : > { %v3915_v15 = vor.u32 %v1590_v26, %v1589_v24  ;;  %v1655_v24 = vrot.slane %v5997_v46, 2  ;;  %v3936_v26 = vsel %vm1752_vm4, %v3832_v34, %v1817_v56 }
  0x5c   : > { %1833 = vrot.lane.b32.xlu1 %v3888_v10, %s3415_s10  ;;  %v1592_v38 = vsel %vm800_vm2, %v3749_v62, %v3915_v15 }
  0x5d   : > { %1527 = vrot.lane.b32.xlu0 %v1495_v32, %s3408_s30  ;;  %v1654_v32 = vrot.slane %v5996_v52, 1  ;;  %v1821_v52 = vor.u32 %v1820_v36, %v1819_v54  ;;  %v2924_v36 = vld [vmem:[%s3502_s28 + $0xac] sm:$0xf] }
  0x5e   : > { %v3987_v46 = vcombine.low %v2924_v36, %v3844_v45  ;;  %v6004_v36 = vshrl.u32 %v3814_v12, 16 }
  0x5f   : > { %v3945_v62 = vor.u32 %v1655_v24, %v1654_v32  ;;  %v3953_v4 = vsel %vm1752_vm4, %v1817_v56, %v1821_v52  ;;  %v6001_v32 = vshrl.u32 %v3613_v50, 16  ;;  %v6137_v56 = vrot.slane %v3586_v39, 2 }
  0x60   : > { %1845 = vrot.lane.b32.xlu1 %v3867_v8, %s3416_s11  ;;  %6141 = vst [vmem:[#allocation36_spill] sm:$0xff] %v3987_v46 }
  0x61   : > { %1847 = vrot.lane.b32.xlu0 %v3888_v10, %s3416_s11  ;;  %v1700_v24 = vsel %vm972_vm3, %v6137_v56, %v5999_v61  ;;  %v1827_v54 = vrot.slane %v6001_v32, 6  ;;  %v2938_v61 = vld [vmem:[%s3502_s28 + $0xf4] sm:$0xf] }
  0x64   : > { %1554 = vrot.lane.b32.xlu1 %v1543_v43, %s3409_s4  ;;  %v1823_v43 = vrot.slane %v3656_v5, 6  ;;  %v1657_v5 = vsel %vm800_vm2, %v3770_v13, %v3945_v62  ;;  %v3971_v13 = vshrl.u32 %v3588_v40, 16 }
  0x65   : > { %1859 = vrot.lane.b32.xlu0 %v3867_v8, %s3417_s17 }
  0x66   : > { %v1825_v60 = vor.u32 %v1824_v23, %v1823_v43  ;;  %6138 = vst [vmem:[#allocation34_spill] sm:$0xff] %v3971_v13  ;;  %v6140_v23 = vshll.u32 %v3613_v50, 16  ;;  %v6149_v50 = vshll.u32 %v3545_v20, 16 }
  0x68   : > { %1861 = vrot.lane.b32.xlu1 %v3888_v10, %s3417_s17  ;;  %v1828_v43 = vrot.slane %v6140_v23, 7  ;;  %v6142_v23 = vrot.slane %v3520_v9, 2 }
  0x69   : > { %1619 = vrot.lane.b32.xlu0 %v1592_v38, %s3410_s5  ;;  %v3959_v38 = vsel %vm1752_vm4, %v1821_v52, %v1825_v60  ;;  %v3974_v52 = vshll.u32 %v3588_v40, 16  ;;  %v4181_v40 = vld [vmem:[%s3502_s28 + $0x7c] sm:$0x1f]  }
  0x6a   : > { %v1829_v7 = vor.u32 %v1828_v43, %v1827_v54  ;;  %v1727_v45 = vsel %vm972_vm3, %v6142_v23, %v1726_v22  ;;  %v6002_v54 = vshll.u32 %v3987_v46, 16  ;;  %v4004_v43 = vcombine.low %v2937_v51, %v2938_v61 }
  0x6b   : > { %6139 = vst [vmem:[#allocation35_spill] sm:$0xff] %v3974_v52  ;;  %v1761_v56 = vrot.slane %v3974_v52, 7  ;;  %v1433_v22 = vor.u32 %v3860_v30, %v6004_v36  ;;  %v1496_v61 = vshrl.u32 %v3827_v16, 16 }
  0x6c   : > { %1873 = vrot.lane.b32.xlu1 %v3867_v8, %s3418_s19  ;;  %6143 = vst [vmem:[#allocation37_spill] sm:$0xff] %v4004_v43  ;;  %v4009_v32 = vsel %vm1752_vm4, %v1825_v60, %v1829_v7  ;;  %v1434_v51 = vrot.slane %v6002_v54, 1  ;;  %v2949_v7 = vld [vmem:[%s3502_s28 + $0xb8] sm:$0xf]  ;;  %v6009_v54 = vshrl.u32 %v3545_v20, 16 }
  0x6d   : > { %1875 = vrot.lane.b32.xlu0 %v3888_v10, %s3418_s19  ;;  %v4032_v30 = vcombine.low %v3853_v31, %v2949_v7  ;;  %v2939_v31 = vld [vmem:[%s3502_s28 + $0xf8] sm:$0xf]  ;;  %v6146_v7 = vrot.slane %v3814_v12, 1 }
  0x6e   : > { %v1435_v60 = vsel %vm349_vm0, %v1433_v22, %v1434_v51 }
  0x6f   : > { %6144 = vst [vmem:[#allocation38_spill] sm:$0xff] %v4032_v30  ;;  %v6007_v22 = vshrl.u32 %v4032_v30, 16 }
  0x70   : > { %1684 = vrot.lane.b32.xlu1 %v1657_v5, %s3411_s6  ;;  %v1760_v5 = vrot.slane %v3971_v13, 6  ;;  %v4184_v13 = vshrl.u32 %v3907_v19, 16 }
  0x71   : > { %1887 = vrot.lane.b32.xlu0 %v3867_v8, %s3419_s20 }
  0x72   : > { %6163 = vst [vmem:[#allocation51_spill] sm:$0xff] %v4184_v13 }
  0x74   : > { %1889 = vrot.lane.b32.xlu1 %v3888_v10, %s3419_s20 }
  0x75   : > { %1711 = vrot.lane.b32.xlu0 %v1700_v24, %s3412_s7  ;;  %v3995_v24 = vor.u32 %v1761_v56, %v1760_v5  ;;  %v1498_v56 = vor.u32 %v1496_v61, %v3874_v17 }
  0x77   : > { %v1763_v5 = vsel %vm1752_vm4, %v3825_v47, %v3995_v24  ;;  %v4029_v47 = vsel %vm1752_vm4, %v3876_v48, %v3832_v34  ;;  %v6005_v34 = vrot.slane %v3987_v46, 1 }
  0x78   : > { %1901 = vrot.lane.b32.xlu1 %v3867_v8, %s3420_s25 }
  0x79   : > { %1903 = vrot.lane.b32.xlu0 %v3888_v10, %s3420_s25 }
  0x7c   : > { %1738 = vrot.lane.b32.xlu1 %v1727_v45, %s3413_s8  ;;  %v4041_v45 = vld [vmem:[%s3502_s28 + $0xbc] ss:$0 sps:$4 sm:$0xff]  }
  0x7d   : > { %1915 = vrot.lane.b32.xlu0 %v3867_v8, %s3421_s26  ;;  %v1500_v8 = vshll.u32 %v4004_v43, 16  ;;  %v1441_v61 = vshll.u32 %v4041_v45, 16 }
  0x7f   : > { %v1502_v23 = vrot.slane %v1500_v8, 1  ;;  %v4073_v36 = vrot.slane %v1441_v61, 1 }
  0x80   : > { %1917 = vrot.lane.b32.xlu1 %v3888_v10, %s3421_s26  ;;  %v6003_v10 = vshll.u32 %v4032_v30, 16 }
  0x81   : > { %1794 = vrot.lane.b32.xlu0 %v1763_v5, %s3414_s9  ;;  %v1503_v48 = vsel %vm349_vm0, %v1498_v56, %v1502_v23  ;;  %v2952_v5 = vld [vmem:[%s3502_s28 + $0xfc] sm:$0xf]  ;;  %v6008_v56 = vshrl.u32 %v3987_v46, 16 }
  0x82   : > { %v1437_v17 = vrot.slane %v6003_v10, 1  ;;  %v4054_v8 = vcombine.low %v2939_v31, %v2952_v5 }
  0x84   : > { %1454 = vrot.lane.b32.xlu1 %v1435_v60, %s3407_s29  ;;  %6145 = vst [vmem:[#allocation39_spill] sm:$0xff] %v4054_v8  ;;  %v1545_v60 = vsel %vm494_vm1, %v6146_v7, %v6005_v34  ;;  %v1439_v5 = vor.u32 %v1437_v17, %v6007_v22  ;;  %v1508_v7 = vshll.u32 %v4054_v8, 16  ;;  %v4077_v34 = vld [vmem:[%s3502_s28 + $0x100] ss:$0 sps:$4 sm:$0xff]  }
  0x85   : > { %1835 = vrot.lane.b32.xlu0 %v4029_v47, %s3415_s10 }
  0x88   : > { %1529 = vrot.lane.b32.xlu1 %v1503_v48, %s3408_s30  ;;  %v1596_v48 = vsel %vm800_vm2, %v3915_v15, %v3870_v3  ;;  %v1444_v15 = vsel %vm349_vm0, %v1439_v5, %v4073_v36 }
  0x89   : > { %1849 = vrot.lane.b32.xlu0 %v4029_v47, %s3416_s11 }
  0x8c   : > { %1556 = vrot.lane.b32.xlu1 %v1545_v60, %s3409_s4  ;;  %v1436_v60 = vor.u32 %v1434_v51, %v6008_v56  ;;  %v1510_v51 = vrot.slane %v1508_v7, 1  ;;  %v1512_v56 = vshrl.u32 %v4054_v8, 16 }
  0x8d   : > { %1863 = vrot.lane.b32.xlu0 %v4029_v47, %s3417_s17 }
  0x8f   : > { %v4069_v31 = vpop.permute.xlu0 %335 }
  0x90   : > { %6148 = vst [vmem:[#allocation41_spill] sm:$0xff] %v4069_v31  ;;  %v1659_v31 = vrot.slane %v6149_v50, 2  ;;  %1621 = vrot.lane.b32.xlu1 %v1596_v48, %s3410_s5  ;;  %v1516_v50 = vshll.u32 %v4077_v34, 16 }
  0x91   : > { %v4067_v10 = vpop.permute.xlu1 %339  ;;  %1877 = vrot.lane.b32.xlu0 %v4029_v47, %s3418_s19 }
  0x92   : > { %6147 = vst [vmem:[#allocation40_spill] sm:$0xff] %v4067_v10  ;;  %v1658_v10 = vrot.slane %v6009_v54, 1  ;;  %v1438_v54 = vsel %vm349_vm0, %v1436_v60, %v1437_v17  ;;  %v4109_v8 = vrot.slane %v1516_v50, 1 }
  0x93   : > { %v4093_v22 = vpop.permute.xlu0 %337 }
  0x94   : > { %6151 = vst [vmem:[#allocation43_spill] sm:$0xff] %v4093_v22  ;;  %v4100_v48 = vor.u32 %v1659_v31, %v1658_v10  ;;  %1456 = vrot.lane.b32.xlu1 %v1438_v54, %s3407_s29  ;;  %v1514_v22 = vor.u32 %v1512_v56, %v1510_v51  ;;  %v4115_v10 = vld [vmem:[%s3502_s28 + $0x38] sm:$0xf]  ;;  %v264_v31 = vld [vmem:[%s3502_s28 + $0x3c] sm:$0x1] }
  0x95   : > { %v4091_v61 = vpop.permute.xlu1 %341  ;;  %1458 = vrot.lane.b32.xlu0 %v1444_v15, %s3407_s29  ;;  %v4122_v15 = vld [vmem:[%s3502_s28 + $0x34] sm:$0xf]  ;;  %v2947_v54 = vld [vmem:[%s3502_s28 + $0x78] sm:$0xf] }
  0x96   : > { %6150 = vst [vmem:[#allocation42_spill] sm:$0xff] %v4091_v61  ;;  %v1504_v61 = vshrl.u32 %v4004_v43, 16  ;;  %v1661_v17 = vsel %vm800_vm2, %v3945_v62, %v4100_v48  ;;  %v4119_v43 = vld [vmem:[%s3502_s28 + $0x30] sm:$0xf]  ;;  %v1519_v50 = vsel %vm349_vm0, %v1514_v22, %v4109_v8  ;;  %v4133_v62 = vcombine.low %v4115_v10, %v264_v31 }
  0x97   : > { %v4107_v7 = vpop.permute.xlu0 %343  ;;  %v1546_v31 = vrot.slane %v4032_v30, 1 }
  0x98   : > { %6153 = vst [vmem:[#allocation45_spill] sm:$0xff] %v4107_v7  ;;  %v1506_v60 = vor.u32 %v1504_v61, %v1502_v23  ;;  %1686 = vrot.lane.b32.xlu1 %v1661_v17, %s3411_s6  ;;  %v4144_v17 = vcombine.low %v3531_v14, %v2947_v54  ;;  %v1610_v61 = vshll.u32 %v4133_v62, 16  ;;  %v6158_v14 = vrot.slane %v3624_v55, 2 }
  0x99   : > { %v4105_v5 = vpop.permute.xlu1 %345  ;;  %1891 = vrot.lane.b32.xlu0 %v4029_v47, %s3419_s20 }
  0x9a   : > { %6152 = vst [vmem:[#allocation44_spill] sm:$0xff] %v4105_v5  ;;  %v1511_v23 = vsel %vm349_vm0, %v1506_v60, %v1510_v51  ;;  %v4139_v5 = vcombine.low %v4119_v43, %v4122_v15  ;;  %v1607_v60 = vshrl.u32 %v4133_v62, 16  ;;  %v1666_v30 = vshll.u32 %v4144_v17, 16 }
  0x9b   : > { %v4128_v56 = vpop.permute.xlu0 %347  ;;  %v1612_v16 = vrot.slane %v1610_v61, 2 }
  0x9c   : > { %6154 = vst [vmem:[#allocation46_spill] sm:$0xff] %v4128_v56  ;;  %1531 = vrot.lane.b32.xlu1 %v1511_v23, %s3408_s30  ;;  %v6157_v56 = vrot.slane %v3634_v59, 2  ;;  %v1601_v23 = vshll.u32 %v4139_v5, 16 }
  0x9d   : > { %v4141_v7 = vpop.permute.xlu1 %405  ;;  %1533 = vrot.lane.b32.xlu0 %v1519_v50, %s3408_s30  ;;  %v1598_v50 = vshrl.u32 %v4139_v5, 16 }
  0x9e   : > { %6155 = vst [vmem:[#allocation47_spill] sm:$0xff] %v4141_v7  ;;  %v1702_v54 = vsel %vm972_vm3, %v6158_v14, %v6157_v56  ;;  %v1663_v7 = vshrl.u32 %v4144_v17, 16  ;;  %v6160_v56 = vrot.slane %v3987_v46, 1  ;;  %v1603_v52 = vrot.slane %v1601_v23, 2 }
  0x9f   : > { %v4148_v22 = vpop.permute.xlu0 %407  ;;  %v1600_v27 = vrot.slane %v1598_v50, 1  ;;  %v1668_v46 = vrot.slane %v1666_v30, 2  ;;  %v1672_v50 = vshrl.u32 %v4181_v40, 16  ;;  %v1675_v23 = vshll.u32 %v4181_v40, 16 }
  0xa0   : > { %6156 = vst [vmem:[#allocation48_spill] sm:$0xff] %v4148_v22  ;;  %v4163_v22 = vcombine.low %v3644_v63, %v3647_v0  ;;  %1713 = vrot.lane.b32.xlu1 %v1702_v54, %s3412_s7  ;;  %v1547_v14 = vsel %vm494_vm1, %v6160_v56, %v1546_v31  ;;  %v6162_v63 = vrot.slane %v4041_v45, 1  ;;  %v4187_v54 = vshll.u32 %v3907_v19, 16 }
  0xa1   : > { %v4165_v51 = vpop.permute.xlu1 %409  ;;  %1905 = vrot.lane.b32.xlu0 %v4029_v47, %s3420_s25  ;;  %v1764_v19 = vrot.slane %v4184_v13, 6 }
  0xa2   : > { %6159 = vst [vmem:[#allocation49_spill] sm:$0xff] %v4165_v51  ;;  %v1549_v0 = vsel %vm494_vm1, %v1546_v31, %v6162_v63  ;;  %v1609_v51 = vrot.slane %v1607_v60, 1  ;;  %6164 = vst [vmem:[#allocation52_spill] sm:$0xff] %v4187_v54  ;;  %v624_v56 = vshll.u32 %v4163_v22, 16  ;;  %v1604_v63 = vor.u32 %v1603_v52, %v1600_v27 }
  0xa3   : > { %v4175_v12 = vpop.permute.xlu0 %411  ;;  %v1765_v55 = vrot.slane %v4187_v54, 7  ;;  %v628_v30 = vshrl.u32 %v4163_v22, 16  ;;  %v1674_v52 = vrot.slane %v1672_v50, 1  ;;  %v899_v50 = vshrl.u32 %v3526_v11, 16 }
  0xa4   : > { %6161 = vst [vmem:[#allocation50_spill] sm:$0xff] %v4175_v12  ;;  %v1665_v12 = vrot.slane %v1663_v7, 1  ;;  %1558 = vrot.lane.b32.xlu1 %v1547_v14, %s3409_s4  ;;  %v4196_v60 = vor.u32 %v1612_v16, %v1609_v51  ;;  %v632_v16 = vshll.u32 %v3685_v57, 16  ;;  %v1677_v51 = vrot.slane %v1675_v23, 2 }
  0xa5   : > { %1560 = vrot.lane.b32.xlu0 %v1549_v0, %s3409_s4  ;;  %v4192_v31 = vpop.permute.xlu1 %413  ;;  %v4202_v0 = vrot.slane %v624_v56, 1  ;;  %v1605_v56 = vsel %vm800_vm2, %v3870_v3, %v1604_v63  ;;  %v902_v23 = vshll.u32 %v3526_v11, 16  ;;  %v1730_v54 = vrot.slane %v4144_v17, 2 }
  0xa6   : > { %6165 = vst [vmem:[#allocation53_spill] sm:$0xff] %v4192_v31  ;;  %v1669_v7 = vor.u32 %v1668_v46, %v1665_v12  ;;  %v1614_v27 = vsel %vm800_vm2, %v1604_v63, %v4196_v60  ;;  %v4217_v31 = vor.u32 %v1765_v55, %v1764_v19  ;;  %v4219_v12 = vrot.slane %v632_v16, 1 }
  0xa7   : > { %v4194_v61 = vpop.permute.xlu0 %415  ;;  %v630_v14 = vor.u32 %v628_v30, %v4202_v0  ;;  %v4231_v3 = vor.u32 %v1677_v51, %v1674_v52  ;;  %v4244_v30 = vcombine.low %v3610_v49, %v4119_v43  ;;  %v6040_v16 = vrot.slane %v4133_v62, 2 }
  0xa8   : > { %6166 = vst [vmem:[#allocation54_spill] sm:$0xff] %v4194_v61  ;;  %1740 = vrot.lane.b32.xlu1 %v3902_v42, %s3413_s8  ;;  %v1767_v55 = vsel %vm1752_vm4, %v3995_v24, %v4217_v31  ;;  %v6034_v52 = vrot.slane %v4163_v22, 1  ;;  %v6035_v51 = vrot.slane %v3685_v57, 1  ;;  %v901_v43 = vrot.slane %v899_v50, 1 }
  0xa9   : > { %1919 = vrot.lane.b32.xlu0 %v4029_v47, %s3421_s26  ;;  %v4226_v42 = vsel %vm349_vm0, %v630_v14, %v4219_v12  ;;  %v1670_v47 = vsel %vm800_vm2, %v4100_v48, %v1669_v7  ;;  %6168 = vst [vmem:[#allocation56_spill] sm:$0xff] %v4244_v30  ;;  %v1703_v48 = vrot.slane %v4139_v5, 2  ;;  %v1679_v24 = vsel %vm800_vm2, %v1669_v7, %v4231_v3 }
  0xaa   : > { %v4221_v46 = vpop.permute.xlu1 %1448  ;;  %6167 = vst [vmem:[#allocation55_spill] sm:$0xff] %v4226_v42  ;;  %v904_v14 = vrot.slane %v902_v23, 2  ;;  %v908_v5 = vshrl.u32 %v3511_v6, 16  ;;  %v4282_v58 = vshrl.u32 %v4244_v30, 16 }
  0xab   : > { %v4215_v61 = vpop.permute.xlu0 %1450  ;;  %v1706_v23 = vsel %vm972_vm3, %v1703_v48, %v6040_v16 }
  0xac   : > { %1623 = vrot.lane.b32.xlu1 %v1605_v56, %s3410_s5  ;;  %v911_v56 = vshll.u32 %v3511_v6, 16  ;;  %6171 = vst [vmem:[#allocation58_spill] sm:$0xff] %v4282_v58 }
  0xad   : > { %1625 = vrot.lane.b32.xlu0 %v1614_v27, %s3410_s5  ;;  %v3035_v27 = vcombine.low %v4122_v15, %v4115_v10  ;;  %v4267_v10 = vsel %vm494_vm1, %v6034_v52, %v6035_v51  ;;  %v6170_v15 = vrot.slane %v3634_v59, 2  ;;  %v4285_v59 = vshll.u32 %v4244_v30, 16 }
  0xae   : > { %v4240_v63 = vpop.permute.xlu1 %1523  ;;  %6169 = vst [vmem:[#allocation57_spill] sm:$0xff] %v4267_v10  ;;  %v913_v50 = vrot.slane %v911_v56, 2  ;;  %v6050_v30 = vrot.slane %v3526_v11, 2 }
  0xaf   : > { %v4236_v19 = vpop.permute.xlu0 %1525  ;;  %v1704_v7 = vsel %vm972_vm3, %v6170_v15, %v1703_v48  ;;  %v1773_v13 = vshrl.u32 %v3035_v27, 16  ;;  %v1776_v52 = vshll.u32 %v3035_v27, 16  ;;  %6172 = vst [vmem:[#allocation59_spill] sm:$0xff] %v4285_v59  ;;  %v6174_v48 = vrot.slane %v3545_v20, 2 }
  0xb0   : > { %1796 = vrot.lane.b32.xlu1 %v1767_v55, %s3414_s9  ;;  %v910_v55 = vrot.slane %v908_v5, 1  ;;  %v4287_v5 = vor.u32 %v904_v14, %v901_v43  ;;  %v636_v20 = vshrl.u32 %v3685_v57, 16 }
  0xb1   : > { %1688 = vrot.lane.b32.xlu0 %v1670_v47, %s3411_s6  ;;  %v1731_v27 = vsel %vm972_vm3, %v6174_v48, %v1730_v54  ;;  %v1775_v15 = vrot.slane %v1773_v13, 6  ;;  %v1778_v43 = vrot.slane %v1776_v52, 7 }
  0xb2   : > { %v4260_v47 = vpop.permute.xlu1 %1550  ;;  %v4289_v56 = vor.u32 %v913_v50, %v910_v55  ;;  %v6047_v55 = vrot.slane %v4181_v40, 2  ;;  %v1768_v50 = vrot.slane %v4282_v58, 6 }
  0xb3   : > { %v4256_v49 = vpop.permute.xlu0 %1552 }
  0xb4   : > { %1690 = vrot.lane.b32.xlu1 %v1679_v24, %s3411_s6  ;;  %v4297_v17 = vsel %vm800_vm2, %v4287_v5, %v4289_v56  ;;  %v1733_v13 = vsel %vm972_vm3, %v1730_v54, %v6047_v55 }
  0xb5   : > { %1837 = vrot.lane.b32.xlu0 %v3936_v26, %s3415_s10  ;;  %6173 = vst [vmem:[#allocation60_spill] sm:$0xff] %v4297_v17 }
  0xb6   : > { %v4291_v24 = vpop.permute.xlu1 %1615 }
  0xb7   : > { %v4279_v51 = vpop.permute.xlu0 %1617 }
  0xb8   : > { %1715 = vrot.lane.b32.xlu1 %v1704_v7, %s3412_s7  ;;  %v4313_v7 = vor.u32 %v1778_v43, %v1775_v15 }
  0xb9   : > { %1717 = vrot.lane.b32.xlu0 %v1706_v23, %s3412_s7  ;;  %v1769_v23 = vrot.slane %v4285_v59, 7  ;;  %v6051_v59 = vrot.slane %v3511_v6, 2 }
  0xba   : > { %v4308_v16 = vpop.permute.xlu1 %1680 }
  0xbb   : > { %v4303_v14 = vpop.permute.xlu0 %1682  ;;  %v1770_v48 = vor.u32 %v1769_v23, %v1768_v50  ;;  %v4332_v54 = vsel %vm972_vm3, %v6050_v30, %v6051_v59  ;;  %v640_v30 = vshll.u32 %v3779_v35, 16  ;;  %v638_v59 = vor.u32 %v636_v20, %v4219_v12 }
  0xbc   : > { %1851 = vrot.lane.b32.xlu1 %v3936_v26, %s3416_s11  ;;  %6175 = vst [vmem:[#allocation61_spill] sm:$0xff] %v4332_v54 }
  0xbd   : > { %1742 = vrot.lane.b32.xlu0 %v1731_v27, %s3413_s8  ;;  %v1445_v27 = vshrl.u32 %v4041_v45, 16  ;;  %v1780_v15 = vsel %vm1752_vm4, %v1770_v48, %v4313_v7  ;;  %v1771_v43 = vsel %vm1752_vm4, %v4217_v31, %v1770_v48  ;;  %v4351_v54 = vrot.slane %v640_v30, 1 }
  0xbe   : > { %v4322_v58 = vpop.permute.xlu1 %1707  ;;  %v1520_v48 = vshrl.u32 %v4077_v34, 16  ;;  %v6055_v30 = vrot.slane %v3779_v35, 1  ;;  %v917_v35 = vshrl.u32 %v3538_v18, 16 }
  0xbf   : > { %v4318_v52 = vpop.permute.xlu0 %1709  ;;  %v1447_v55 = vor.u32 %v1445_v27, %v4073_v36  ;;  %6176 = vst [vmem:[#allocation62_spill] sm:$0xff] %v4351_v54  ;;  %v4359_v36 = vsel %vm349_vm0, %v638_v59, %v4351_v54  ;;  %v6183_v54 = vrot.slane %v4041_v45, 1 }
  0xc0   : > { %1744 = vrot.lane.b32.xlu1 %v1733_v13, %s3413_s8  ;;  %6177 = vst [vmem:[#allocation63_spill] sm:$0xff] %v4359_v36  ;;  %v1522_v20 = vor.u32 %v1520_v48, %v4109_v8  ;;  %v6180_v8 = vrot.slane %v3685_v57, 1  ;;  %v920_v36 = vshll.u32 %v3538_v18, 16 }
  0xc1   : > { %1865 = vrot.lane.b32.xlu0 %v3936_v26, %s3417_s17 }
  0xc2   : > { %v4341_v23 = vpop.permute.xlu1 %1734  ;;  %v922_v57 = vrot.slane %v920_v36, 2 }
  0xc3   : > { %v4339_v50 = vpop.permute.xlu0 %1736 }
  0xc4   : > { %1798 = vrot.lane.b32.xlu1 %v1771_v43, %s3414_s9  ;;  %v4391_v43 = vsel %vm494_vm1, %v6180_v8, %v6055_v30 }
  0xc5   : > { %1800 = vrot.lane.b32.xlu0 %v1780_v15, %s3414_s9  ;;  %6181 = vst [vmem:[#allocation66_spill] sm:$0xff] %v4391_v43  ;;  %v919_v43 = vrot.slane %v917_v35, 1 }
  0xc6   : > { %v4353_v31 = vpop.permute.xlu1 %1790 }
  0xc7   : > { %v4348_v13 = vpop.permute.xlu0 %1792 }
  0xc8   : > { %1879 = vrot.lane.b32.xlu1 %v3936_v26, %s3418_s19 }
  0xc9   : > { %1460 = vrot.lane.b32.xlu0 %v1447_v55, %s3407_s29 }
  0xca   : > { %v4365_v15 = vpop.permute.xlu1 %1452 }
  0xcb   : > { %v4363_v27 = vpop.permute.xlu0 %1831  ;;  %6178 = vst [vmem:[#allocation64_spill] sm:$0xff] %v4365_v15 }
  0xcc   : > { %1839 = vrot.lane.b32.xlu1 %v3953_v4, %s3415_s10 }
  0xcd   : > { %1841 = vrot.lane.b32.xlu0 %v3959_v38, %s3415_s10 }
  0xce   : > { %v4374_v12 = vpop.permute.xlu1 %1833 }
  0xcf   : > { %v4372_v34 = vpop.permute.xlu0 %1527 }
  0xd0   : > { %6179 = vst [vmem:[#allocation65_spill] sm:$0xff] %v4372_v34  ;;  %1893 = vrot.lane.b32.xlu1 %v3936_v26, %s3419_s20 }
  0xd1   : > { %1535 = vrot.lane.b32.xlu0 %v1522_v20, %s3408_s30 }
  0xd2   : > { %v4382_v55 = vpop.permute.xlu1 %1845 }
  0xd3   : > { %v4379_v59 = vpop.permute.xlu0 %1847 }
  0xd4   : > { %1853 = vrot.lane.b32.xlu1 %v3953_v4, %s3416_s11 }
  0xd5   : > { %1855 = vrot.lane.b32.xlu0 %v3959_v38, %s3416_s11 }
  0xd6   : > { %v4397_v20 = vpop.permute.xlu1 %1554 }
  0xd7   : > { %v4395_v48 = vpop.permute.xlu0 %1859  ;;  %6182 = vst [vmem:[#allocation67_spill] sm:$0xff] %v4397_v20  ;;  %v6197_v20 = vrot.slane %v4133_v62, 2  ;;  %v6201_v62 = vld [vmem:[#allocation11_spill] sm:$0xff] }
  0xd8   : > { %1907 = vrot.lane.b32.xlu1 %v3936_v26, %s3420_s25 }
  0xd9   : > { %1562 = vrot.lane.b32.xlu0 %v6183_v54, %s3409_s4  ;;  %v4416_v54 = vor.u32 %v922_v57, %v919_v43  ;;  %v3289_v57 = vld [vmem:[%s3502_s28 + $0x3c] ss:$0 sps:$4 sm:$0x33]  }
  0xda   : > { %v4408_v30 = vpop.permute.xlu1 %1861 }
  0xdb   : > { %v4406_v8 = vpop.permute.xlu0 %1619  ;;  %6185 = vst [vmem:[#allocation69_spill] sm:$0xff] %v4408_v30  ;;  %v4425_v35 = vsel %vm800_vm2, %v4289_v56, %v4416_v54  ;;  %v1785_v56 = vshll.u32 %v3289_v57, 16 }
  0xdc   : > { %6184 = vst [vmem:[#allocation68_spill] sm:$0xff] %v4406_v8  ;;  %1867 = vrot.lane.b32.xlu1 %v3953_v4, %s3417_s17  ;;  %6188 = vst [vmem:[#allocation72_spill] sm:$0xff] %v4425_v35  ;;  %v6062_v35 = vrot.slane %v3538_v18, 2 }
  0xdd   : > { %1869 = vrot.lane.b32.xlu0 %v3959_v38, %s3417_s17 }
  0xde   : > { %v4418_v17 = vpop.permute.xlu1 %1873 }
  0xdf   : > { %v4414_v45 = vpop.permute.xlu0 %1875  ;;  %6187 = vst [vmem:[#allocation71_spill] sm:$0xff] %v4418_v17 }
  0xe0   : > { %6186 = vst [vmem:[#allocation70_spill] sm:$0xff] %v4414_v45  ;;  %1921 = vrot.lane.b32.xlu1 %v3936_v26, %s3421_s26  ;;  %v1782_v26 = vshrl.u32 %v3289_v57, 16  ;;  %v1787_v57 = vrot.slane %v1785_v56, 7  ;;  %v6203_v56 = vld [vmem:[#allocation8_spill] sm:$0xff] }
  0xe1   : > { %1627 = vrot.lane.b32.xlu0 %v4196_v60, %s3410_s5  ;;  %v938_v10 = vshll.u32 %v6203_v56, 16 }
  0xe2   : > { %v4431_v21 = vpop.permute.xlu1 %1684 }
  0xe3   : > { %v4429_v36 = vpop.permute.xlu0 %1887  ;;  %6190 = vst [vmem:[#allocation74_spill] sm:$0xff] %v4431_v21 }
  0xe4   : > { %6189 = vst [vmem:[#allocation73_spill] sm:$0xff] %v4429_v36  ;;  %1881 = vrot.lane.b32.xlu1 %v3953_v4, %s3418_s19  ;;  %v4567_v36 = vld [vmem:[%s3502_s28 + $0x8] sm:$0xf] }
  0xe5   : > { %1883 = vrot.lane.b32.xlu0 %v3959_v38, %s3418_s19 }
  0xe6   : > { %v4440_v43 = vpop.permute.xlu1 %1889 }
  0xe7   : > { %v4438_v60 = vpop.permute.xlu0 %1711  ;;  %6192 = vst [vmem:[#allocation76_spill] sm:$0xff] %v4440_v43  ;;  %v2941_v43 = vld [vmem:[%s3502_s28 + $0x88] sm:$0xe] }
  0xe8   : > { %6191 = vst [vmem:[#allocation75_spill] sm:$0xff] %v4438_v60  ;;  %1692 = vrot.lane.b32.xlu1 %v4231_v3, %s3411_s6  ;;  %v6195_v60 = vrot.slane %v3511_v6, 2  ;;  %v1784_v3 = vrot.slane %v1782_v26, 6 }
  0xe9   : > { %1895 = vrot.lane.b32.xlu0 %v3953_v4, %s3419_s20 }
  0xea   : > { %v4449_v37 = vpop.permute.xlu1 %1901  ;;  %v4456_v8 = vsel %vm972_vm3, %v6195_v60, %v6062_v35  ;;  %v1788_v6 = vor.u32 %v1787_v57, %v1784_v3  ;;  %v929_v35 = vshll.u32 %v6201_v62, 16  ;;  %v6204_v3 = vrot.slane %v4181_v40, 2 }
  0xeb   : > { %v4447_v21 = vpop.permute.xlu0 %1903  ;;  %6194 = vst [vmem:[#allocation78_spill] sm:$0xff] %v4449_v37  ;;  %6196 = vst [vmem:[#allocation79_spill] sm:$0xff] %v4456_v8  ;;  %v935_v8 = vshrl.u32 %v6203_v56, 16 }
  0xec   : > { %6193 = vst [vmem:[#allocation77_spill] sm:$0xff] %v4447_v21  ;;  %1897 = vrot.lane.b32.xlu1 %v3959_v38, %s3419_s20  ;;  %v931_v15 = vrot.slane %v929_v35, 2  ;;  %v1789_v57 = vsel %vm1752_vm4, %v4313_v7, %v1788_v6  ;;  %v940_v35 = vrot.slane %v938_v10, 2  ;;  %v2915_v7 = vld [vmem:[%s3502_s28 + $0x88] sm:$0xf]  ;;  %vm1339_vm4 = vcmask 392192  }
  0xed   : > { %1719 = vrot.lane.b32.xlu0 %v6197_v20, %s3412_s7  ;;  %v926_v20 = vshrl.u32 %v6201_v62, 16  ;;  %v937_v39 = vrot.slane %v935_v8, 1  ;;  %v4500_v6 = vld [vmem:[%s3502_s28 + $0x8c] sm:$0xf] }
  0xee   : > { %v4465_v41 = vpop.permute.xlu1 %1738 }
  0xef   : > { %v4463_v34 = vpop.permute.xlu0 %1915  ;;  %6199 = vst [vmem:[#allocation81_spill] sm:$0xff] %v4465_v41  ;;  %v928_v41 = vrot.slane %v926_v20, 1  ;;  %v4502_v8 = vor.u32 %v940_v35, %v937_v39  ;;  %v4517_v39 = vcombine.low %v2915_v7, %v4500_v6 }
  0xf0   : > { %6198 = vst [vmem:[#allocation80_spill] sm:$0xff] %v4463_v34  ;;  %1909 = vrot.lane.b32.xlu1 %v3953_v4, %s3420_s25 }
  0xf1   : > { %1911 = vrot.lane.b32.xlu0 %v3959_v38, %s3420_s25  ;;  %v4492_v20 = vor.u32 %v931_v15, %v928_v41  ;;  %6208 = vst [vmem:[#allocation86_spill] sm:$0xff] %v4502_v8  ;;  %v6210_v41 = vld [vmem:[#allocation6_spill] sm:$0xff]  ;;  %v619_v7 = vshll.u32 %v4517_v39, 16 }
  0xf2   : > { %v4475_v26 = vpop.permute.xlu1 %1917  ;;  %v427_v10 = vshll.u32 %v6210_v41, 16 }
  0xf3   : > { %v4471_v60 = vpop.permute.xlu0 %1794  ;;  %6202 = vst [vmem:[#allocation11_spill] sm:$0xff] %v4475_v26 }
  0xf4   : > { %6200 = vst [vmem:[#allocation82_spill] sm:$0xff] %v4471_v60  ;;  %1746 = vrot.lane.b32.xlu1 %v6204_v3, %s3413_s8  ;;  %v4526_v35 = vrot.slane %v427_v10, 1  ;;  %v4547_v10 = vld [vmem:[%s3502_s28 + $0xd4] sm:$0xf] }
  0xf5   : > { %1923 = vrot.lane.b32.xlu0 %v3953_v4, %s3421_s26  ;;  %v422_v4 = vshll.u32 %v3322_v25, 16 }
  0xf6   : > { %v4488_v9 = vpop.permute.xlu1 %1454 }
  0xf7   : > { %v4485_v60 = vpop.permute.xlu0 %1835  ;;  %6206 = vst [vmem:[#allocation84_spill] sm:$0xff] %v4488_v9  ;;  %v420_v9 = vshrl.u32 %v3322_v25, 16 }
  0xf8   : > { %6205 = vst [vmem:[#allocation83_spill] sm:$0xff] %v4485_v60  ;;  %1925 = vrot.lane.b32.xlu1 %v3959_v38, %s3421_s26  ;;  %v424_v60 = vrot.slane %v422_v4, 1  ;;  %v4512_v38 = vsel %vm800_vm2, %v4492_v20, %v4502_v8  ;;  %v4529_v8 = vld [vmem:[%s3502_s28 + $0xcc] sm:$0xff]  }
  0xf9   : > { %1802 = vrot.lane.b32.xlu0 %v1789_v57, %s3414_s9  ;;  %6211 = vst [vmem:[#allocation6_spill] sm:$0xff] %v4512_v38  ;;  %v210_v57 = vld [vmem:[%s3502_s28] sm:$0xe] }
  0xfa   : > { %v4504_v3 = vpop.permute.xlu1 %1529  ;;  %v425_v4 = vor.u32 %v424_v60, %v420_v9  ;;  %v3324_v60 = vld [vmem:[%s3502_s28 + $0xd8] sm:$0xf] }
  0xfb   : > { %v4496_v40 = vpop.permute.xlu0 %1849  ;;  %6209 = vst [vmem:[#allocation87_spill] sm:$0xff] %v4504_v3  ;;  %v3323_v3 = vld [vmem:[%s3502_s28 + $0x4] sm:$0xf]  ;;  %v4550_v42 = vcombine.low %v4547_v10, %v3324_v60  ;;  %v6073_v60 = vrot.slane %v6203_v56, 2 }
  0xfc   : > { %6207 = vst [vmem:[#allocation85_spill] sm:$0xff] %v4496_v40  ;;  %1843 = vrot.lane.b32.xlu1 %v4009_v32, %s3415_s10  ;;  %v242_v40 = vld [vmem:[%s3502_s28 + $0x4] sm:$0xe]  ;;  %v430_v9 = vsel %vm349_vm0, %v425_v4, %v4526_v35  ;;  %v617_v4 = vshrl.u32 %v4517_v39, 16 }
  0xfd   : > { %1857 = vrot.lane.b32.xlu0 %v4009_v32, %s3416_s11  ;;  %v2993_v45 = vcombine.low %v242_v40, %v4567_v36  ;;  %v686_v40 = vshrl.u32 %v4529_v8, 16 }
  0xfe   : > { %v4521_v15 = vpop.permute.xlu1 %1556 }
  0xff   : > { %v4519_v25 = vpop.permute.xlu0 %1863  ;;  %6213 = vst [vmem:[#allocation89_spill] sm:$0xff] %v4521_v15  ;;  %v2975_v15 = vcombine.low %v210_v57, %v3323_v3  ;;  %v688_v3 = vshll.u32 %v4529_v8, 16  ;;  %v3306_v57 = vld [vmem:[%s5968_s1] sm:$0xff]   ;;  %v802_v11 = vshrl.u32 %v2993_v45, 16  ;;  %v805_v30 = vshll.u32 %v2993_v45, 16 }
 0x100   : > { %6212 = vst [vmem:[#allocation88_spill] sm:$0xff] %v4519_v25  ;;  %1871 = vrot.lane.b32.xlu1 %v4009_v32, %s3417_s17 }
 0x101   : > { %1885 = vrot.lane.b32.xlu0 %v4009_v32, %s3418_s19  ;;  %v495_v21 = vrot.slane %v2975_v15, 1  ;;  %v6218_v15 = vrot.slane %v6201_v62, 2 }
 0x102   : > { %v4537_v25 = vpop.permute.xlu1 %1621 }
 0x103   : > { %v4534_v38 = vpop.permute.xlu0 %1877  ;;  %6215 = vst [vmem:[#allocation91_spill] sm:$0xff] %v4537_v25  ;;  %v621_v25 = vrot.slane %v619_v7, 1  ;;  %v4572_v7 = vld [vmem:[%s3502_s28 + $0x4c] sm:$0xf]  ;;  %v4583_v37 = vsel %vm972_vm3, %v6218_v15, %v6073_v60  ;;  %v693_v15 = vshll.u32 %v4550_v42, 16 }
 0x104   : > { %6214 = vst [vmem:[#allocation90_spill] sm:$0xff] %v4534_v38  ;;  %1899 = vrot.lane.b32.xlu1 %v4009_v32, %s3419_s20  ;;  %v6075_v38 = vmov 0.0   ;;  %v3000_v26 = vcombine.low %v2943_v29, %v4572_v7  ;;  %6219 = vst [vmem:[#allocation94_spill] sm:$0xff] %v4583_v37  ;;  %v3307_v29 = vld [vmem:[%s5968_s1 + $0x8] sm:$0xff]  }
 0x105   : > { %1913 = vrot.lane.b32.xlu0 %v4009_v32, %s3420_s25  ;;  %3093 = vmatprep.subr.bf16.mxu0 %v6075_v38  ;;  %v622_v56 = vor.u32 %v621_v25, %v617_v4  ;;  %v6223_v4 = vmov 0.0  }
 0x106   : > { %3094 = vmatpush3.bf16.msra.mxu0 %v3306_v57  ;;  %3137 = vmatprep.subr.bf16.mxu1 %v6075_v38  ;;  %v4575_v17 = vpop.permute.xlu1 %1456  ;;  %v891_v25 = vshrl.u32 %v3000_v26, 16 }
 0x107   : > { %v4562_v34 = vpop.permute.xlu0 %1458  ;;  %6217 = vst [vmem:[#allocation93_spill] sm:$0xff] %v4575_v17  ;;  %3095 = vmatprep.subr.bf16.mxu0 %v6075_v38  ;;  %3145 = vmatpush3.bf16.msra.mxu1 %v3306_v57  ;;  %v690_v17 = vrot.slane %v688_v3, 1  ;;  %v2991_v57 = vcombine.low %v2941_v43, %v4500_v6  ;;  %v894_v3 = vshll.u32 %v3000_v26, 16  ;;  %v627_v45 = vsel %vm349_vm0, %v622_v56, %v4202_v0 }
 0x108   : > { %6216 = vst [vmem:[#allocation92_spill] sm:$0xff] %v4562_v34  ;;  %3138 = vmatprep.subr.bf16.mxu1 %v6075_v38  ;;  %v2951_v34 = vld [vmem:[%s3502_s28 + $0xd0] sm:$0xe]  ;;  %1927 = vrot.lane.b32.xlu1 %v4009_v32, %s3421_s26  ;;  %v431_v38 = vshrl.u32 %v6210_v41, 16  ;;  %v248_v41 = vld [vmem:[%s3502_s28 + $0x4] sm:$0xc] }
 0x109   : > { %474 = vrot.lane.b32.xlu0 %v430_v9, %s3409_s4  ;;  %v6220_v9 = vrot.slane %v3562_v28, 1  ;;  %v3018_v43 = vcombine.low %v2951_v34, %v4547_v10  ;;  %v691_v26 = vor.u32 %v690_v17, %v686_v40  ;;  %v4615_v34 = vrot.slane %v693_v15, 1 }
 0x10a   : > { %3096 = vmatpush3.bf16.msra.mxu0 %v3307_v29  ;;  %v4602_v32 = vpop.permute.xlu1 %1686  ;;  %v760_v6 = vrot.slane %v2991_v57, 1  ;;  %v6224_v0 = vshll.u32 %v3506_v2, 16  ;;  %v893_v56 = vrot.slane %v891_v25, 1  ;;  %v896_v40 = vrot.slane %v894_v3, 2  ;;  %v2946_v3 = vld [vmem:[%s3502_s28 + $0x48] sm:$0xc] }
 0x10b   : > { %v497_v60 = vsel %vm494_vm1, %v495_v21, %v6220_v9  ;;  %v4599_v37 = vpop.permute.xlu0 %1891  ;;  %6222 = vst [vmem:[#allocation96_spill] sm:$0xff] %v4602_v32  ;;  %3097 = vmatprep.subr.bf16.mxu0 %v6223_v4  ;;  %3146 = vmatpush3.bf16.msra.mxu1 %v3307_v29  ;;  %v3308_v21 = vld [vmem:[%s5968_s1 + $0x10] sm:$0xff]   ;;  %v807_v29 = vrot.slane %v805_v30, 2  ;;  %v812_v9 = vrot.slane %v3796_v53, 1  ;;  %v815_v32 = vrot.slane %v3799_v44, 2 }
 0x10c   : > { %6221 = vst [vmem:[#allocation95_spill] sm:$0xff] %v4599_v37  ;;  %3139 = vmatprep.subr.bf16.mxu1 %v6223_v4  ;;  %508 = vrot.lane.b32.xlu1 %v497_v60, %s3410_s5  ;;  %v433_v60 = vor.u32 %v431_v38, %v4526_v35  ;;  %v4627_v17 = vrot.slane %v6224_v0, 1  ;;  %v4637_v30 = vsel %vm800_vm2, %v4416_v54, %v4492_v20  ;;  %v3310_v38 = vld [vmem:[%s5968_s1 + $0x18] sm:$0xff]  }
 0x10d   : > { %555 = vrot.lane.b32.xlu0 %v4517_v39, %s3411_s6  ;;  %v804_v39 = vrot.slane %v802_v11, 1  ;;  %v4632_v11 = vcombine.low %v248_v41, %v4567_v36  ;;  %6225 = vst [vmem:[#allocation97_spill] sm:$0xff] %v4637_v30  ;;  %v1931_v35 = vsel %vm6083_vm5, %v3018_v43, %v4221_v46  ;;  %v6226_v36 = vrot.slane %v4163_v22, 1  ;;  %v6227_v46 = vld [vmem:[#allocation24_spill] sm:$0xff] }
 0x10e   : > { %3098 = vmatpush3.bf16.msra.mxu0 %v3308_v21  ;;  %v4622_v37 = vpop.permute.xlu1 %1531  ;;  %v696_v54 = vsel %vm349_vm0, %v691_v26, %v4615_v34  ;;  %v4654_v25 = vor.u32 %v815_v32, %v812_v9  ;;  %v1933_v43 = vsel %vm6083_vm5, %v6227_v46, %v4215_v61  ;;  %v1946_v32 = vsel %vm6077_vm6, %v1931_v35, %v4240_v63  ;;  %v3312_v41 = vld [vmem:[%s5968_s1 + $0x20] sm:$0xff]  }
 0x10f   : > { %v4618_v10 = vpop.permute.xlu0 %1533  ;;  %3099 = vmatprep.subr.bf16.mxu0 %v6223_v4  ;;  %3147 = vmatpush3.bf16.msra.mxu1 %v3308_v21  ;;  %v762_v15 = vsel %vm494_vm1, %v760_v6, %v6226_v36  ;;  %v808_v57 = vor.u32 %v807_v29, %v804_v39  ;;  %v438_v21 = vsel %vm349_vm0, %v433_v60, %v4627_v17  ;;  %v498_v61 = vrot.slane %v3574_v33, 1 }
 0x110   : > { %3140 = vmatprep.subr.bf16.mxu1 %v6223_v4  ;;  %602 = vrot.lane.b32.xlu1 %v4529_v8, %s3412_s7  ;;  %v1948_v26 = vsel %vm6077_vm6, %v1933_v43, %v4236_v19  ;;  %v973_v6 = vrot.slane %v4632_v11, 2  ;;  %v1960_v39 = vsel %vm1204_vm7, %v1946_v32, %v4260_v47  ;;  %vm1369_vm6 = vcmask 457728  }
 0x111   : > { %671 = vrot.lane.b32.xlu0 %v627_v45, %s3413_s8  ;;  %v897_v45 = vor.u32 %v896_v40, %v893_v56  ;;  %v1962_v63 = vsel %vm1204_vm7, %v1948_v26, %v4256_v49  ;;  %v974_v19 = vrot.slane %v3774_v1, 2  ;;  %v3009_v29 = vcombine.low %v2946_v3, %v4572_v7 }
 0x112   : > { %3100 = vmatpush3.bf16.msra.mxu0 %v3310_v38  ;;  %v4660_v8 = vpop.permute.xlu1 %1713  ;;  %v1974_v9 = vsel %vm6078_vm8, %v1960_v39, %v4291_v24  ;;  %v1976_v60 = vsel %vm6078_vm8, %v1962_v63, %v4279_v51  ;;  %v817_v47 = vsel %vm800_vm2, %v808_v57, %v4654_v25  ;;  %v1035_v49 = vshrl.u32 %v4632_v11, 16  ;;  %v3329_v63 = vld [vmem:[%s3502_s28 + $0xdc] sm:$0xf] }
 0x113   : > { %v4652_v20 = vpop.permute.xlu0 %1905  ;;  %3101 = vmatprep.subr.bf16.mxu0 %v6223_v4  ;;  %3148 = vmatpush3.bf16.msra.mxu1 %v3310_v38  ;;  %v1988_v56 = vsel %vm1234_vm9, %v1974_v9, %v4308_v16  ;;  %v1990_v7 = vsel %vm1234_vm9, %v1976_v60, %v4303_v14  ;;  %v906_v24 = vsel %vm800_vm2, %v897_v45, %v4287_v5  ;;  %v1038_v51 = vshll.u32 %v4632_v11, 16  ;;  %v2948_v38 = vld [vmem:[%s3502_s28 + $0x8c] sm:$0xe]  ;;  %v6237_v60 = vld [vmem:[#allocation71_spill] sm:$0xff] }
 0x114   : > { %3141 = vmatprep.subr.bf16.mxu1 %v6223_v4  ;;  %740 = vrot.lane.b32.xlu1 %v696_v54, %s3414_s9  ;;  %v2002_v35 = vsel %vm1249_vm10, %v1988_v56, %v4322_v58  ;;  %v2004_v16 = vsel %vm1249_vm10, %v1990_v7, %v4318_v52  ;;  %vm1384_vm8 = vcmask 490496   ;;  %v6228_v5 = vrot.slane %v3562_v28, 1  ;;  %v3313_v11 = vld [vmem:[%s5968_s1 + $0x28] sm:$0xff]   ;;  %v3337_v28 = vld [vmem:[%s3502_s28 + $0xf4] sm:$0xf] }
 0x115   : > { %773 = vrot.lane.b32.xlu0 %v762_v15, %s3415_s10  ;;  %v2016_v58 = vsel %vm6097_vm11, %v2002_v35, %v4341_v23  ;;  %v2018_v52 = vsel %vm6097_vm11, %v2004_v16, %v4339_v50  ;;  %v975_v36 = vsel %vm972_vm3, %v973_v6, %v974_v19  ;;  %v1006_v15 = vrot.slane %v3009_v29, 2  ;;  %v3328_v23 = vld [vmem:[%s3502_s28 + $0x90] sm:$0xf]  ;;  %v3330_v29 = vld [vmem:[%s3502_s28 + $0xe0] sm:$0xf] }
 0x116   : > { %3102 = vmatpush3.bf16.msra.mxu0 %v3312_v41  ;;  %v4696_v40 = vpop.permute.xlu1 %1558  ;;  %v499_v14 = vsel %vm494_vm1, %v6228_v5, %v498_v61  ;;  %v2030_v54 = vsel %vm6084_vm12, %v2016_v58, %v4353_v31  ;;  %v2032_v57 = vsel %vm6084_vm12, %v2018_v52, %v4348_v13  ;;  %v4731_v46 = vrot.slane %v1035_v49, 2  ;;  %v6238_v49 = vld [vmem:[#allocation70_spill] sm:$0xff]  ;;  %v6240_v35 = vld [vmem:[#allocation76_spill] sm:$0xff]  ;;  %v6242_v52 = vld [vmem:[#allocation77_spill] sm:$0xff] }
 0x117   : > { %v4689_v0 = vpop.permute.xlu0 %1560  ;;  %3103 = vmatprep.subr.bf16.mxu0 %v6223_v4  ;;  %3149 = vmatpush3.bf16.msra.mxu1 %v3312_v41  ;;  %v3011_v43 = vcombine.low %v2948_v38, %v3328_v23  ;;  %v2044_v50 = vsel %vm6079_vm13, %v2030_v54, %v4363_v27  ;;  %v4740_v31 = vrot.slane %v1038_v51, 3  ;;  %v1042_v13 = vrot.slane %v3796_v53, 2  ;;  %v3315_v53 = vld [vmem:[%s5968_s1 + $0x30] sm:$0xff]  }
 0x118   : > { %3142 = vmatprep.subr.bf16.mxu1 %v6223_v4  ;;  %863 = vrot.lane.b32.xlu1 %v817_v47, %s3416_s11  ;;  %v2058_v32 = vsel %vm6080_vm14, %v2044_v50, %v4382_v55  ;;  %v6229_v26 = vrot.slane %v6201_v62, 2  ;;  %v6230_v6 = vrot.slane %v3538_v18, 2  ;;  %v6233_v55 = vld [vmem:[#allocation69_spill] sm:$0xff]  ;;  %v4771_v9 = vcombine.low %v3329_v63, %v3330_v29 }
 0x119   : > { %476 = vrot.lane.b32.xlu0 %v438_v21, %s3409_s4  ;;  %v2046_v21 = vsel %vm6079_vm13, %v2032_v57, %v4374_v12  ;;  %v1043_v12 = vrot.slane %v3799_v44, 3  ;;  %vm6232_vm13 = vcmask 359424   ;;  %v6235_v44 = vld [vmem:[#allocation7_spill] sm:$0xff]  ;;  %v1099_v7 = vshrl.u32 %v3011_v43, 16 }
 0x11a   : > { %3104 = vmatpush3.bf16.msra.mxu0 %v3313_v11  ;;  %v4738_v45 = vpop.permute.xlu1 %1740  ;;  %v2060_v27 = vsel %vm6080_vm14, %v2046_v21, %v4379_v59  ;;  %v4755_v41 = vsel %vm972_vm3, %v6230_v6, %v6229_v26  ;;  %v2072_v59 = vsel %vm6232_vm13, %v2058_v32, %v4395_v48  ;;  %vm6234_vm14 = vmmov %vm6232_vm13  ;;  %v6236_v62 = vrot.slane %v6235_v44, 2  ;;  %v3317_v57 = vld [vmem:[%s5968_s1 + $0x38] sm:$0xff]  }
 0x11b   : > { %v4729_v3 = vpop.permute.xlu0 %1919  ;;  %3105 = vmatprep.subr.bf16.mxu0 %v6223_v4  ;;  %3150 = vmatpush3.bf16.msra.mxu1 %v3313_v11  ;;  %6231 = vst [vmem:[#allocation24_spill] sm:$0xff] %v4755_v41  ;;  %v2074_v39 = vsel %vm6234_vm14, %v2060_v27, %v6233_v55  ;;  %v2086_v47 = vsel %vm1339_vm4, %v2072_v59, %v6237_v60  ;;  %v1102_v51 = vshll.u32 %v3011_v43, 16  ;;  %v6241_v11 = vld [vmem:[#allocation78_spill] sm:$0xff]  ;;  %v6244_v43 = vld [vmem:[#allocation11_spill] sm:$0xff]  ;;  %v697_v21 = vshrl.u32 %v4550_v42, 16  ;;  %v6245_v27 = vld [vmem:[#allocation21_spill] sm:$0xff] }
 0x11c   : > { %3143 = vmatprep.subr.bf16.mxu1 %v6223_v4  ;;  %952 = vrot.lane.b32.xlu1 %v906_v24, %s3417_s17  ;;  %v1008_v18 = vsel %vm972_vm3, %v1006_v15, %v6236_v62  ;;  %v2088_v56 = vsel %vm1339_vm4, %v2074_v39, %v6238_v49  ;;  %v6239_v24 = vld [vmem:[#allocation73_spill] sm:$0xff]  ;;  %v4794_v54 = vor.u32 %v1043_v12, %v1042_v13  ;;  %v1101_v13 = vrot.slane %v1099_v7, 1 }
 0x11d   : > { %510 = vrot.lane.b32.xlu0 %v499_v14, %s3410_s5  ;;  %v2100_v38 = vsel %vm1354_vm15, %v2086_v47, %v6239_v24  ;;  %v2102_v16 = vsel %vm1354_vm15, %v2088_v56, %v6240_v35  ;;  %v1041_v14 = vor.u32 %v4740_v31, %v4731_v46  ;;  %v6243_v46 = vld [vmem:[#allocation80_spill] sm:$0xff]  ;;  %v1104_v32 = vrot.slane %v1102_v51, 2 }
 0x11e   : > { %3106 = vmatpush3.bf16.msra.mxu0 %v3315_v53  ;;  %v4783_v5 = vpop.permute.xlu1 %1623  ;;  %v2114_v58 = vsel %vm1369_vm6, %v2100_v38, %v6241_v11  ;;  %v2116_v15 = vsel %vm1369_vm6, %v2102_v16, %v6242_v52  ;;  %v6246_v12 = vshrl.u32 %v6245_v27, 16  ;;  %v6247_v6 = vshll.u32 %v6245_v27, 16  ;;  %v6249_v16 = vld [vmem:[#allocation28_spill] sm:$0xff]  ;;  %v6250_v11 = vld [vmem:[#allocation29_spill] sm:$0xff] }
 0x11f   : > { %v4777_v48 = vpop.permute.xlu0 %1625  ;;  %3107 = vmatprep.subr.bf16.mxu0 %v6223_v4  ;;  %3151 = vmatpush3.bf16.msra.mxu1 %v3315_v53  ;;  %v2128_v23 = vsel %vm1384_vm8, %v2114_v58, %v6243_v46  ;;  %v2130_v50 = vsel %vm1384_vm8, %v2116_v15, %v6244_v43  ;;  %vm1033_vm13 = vsmask.f32 5376  ;;  %vm6081_vm14 = vmmov 0   ;;  %v6252_v43 = vld [vmem:[#allocation5_spill] sm:$0xff] }
 0x120   : > { %3144 = vmatprep.subr.bf16.mxu1 %v6223_v4  ;;  %986 = vrot.lane.b32.xlu1 %v975_v36, %s3418_s19  ;;  %v1109_v26 = vrot.slane %v6246_v12, 1  ;;  %v1112_v53 = vrot.slane %v6247_v6, 2  ;;  %v2141_v36 = vshrl.u32 %v2128_v23, 16  ;;  %v2144_v55 = vshll.u32 %v2128_v23, 16  ;;  %v6254_v12 = vld [vmem:[#allocation57_spill] sm:$0xff] }
 0x121   : > { %557 = vrot.lane.b32.xlu0 %v4163_v22, %s3411_s6  ;;  %v701_v22 = vshll.u32 %v4771_v9, 16  ;;  %v2148_v39 = vshrl.u32 %v2130_v50, 16  ;;  %v2151_v44 = vshll.u32 %v2130_v50, 16  ;;  %3109 = vmatprep.mubr.msk.bf16.mxu0 %vm6081_vm14, %v6223_v4  ;;  %v699_v62 = vor.u32 %v697_v21, %v4615_v34  ;;  %v6248_v34 = vld [vmem:[#allocation55_spill] sm:$0xff] }
 0x122   : > { %3108 = vmatpush3.bf16.msra.mxu0 %v3317_v57  ;;  %v4813_v59 = vpop.permute.xlu1 %1796  ;;  %3125 = vmatprep.mubr.msk.bf16.mxu1 %vm6081_vm14, %v6223_v4  ;;  %v1045_v29 = vsel %vm1033_vm13, %v1041_v14, %v4794_v54  ;;  %v1105_v47 = vor.u32 %v1104_v32, %v1101_v13  ;;  %v2143_v56 = vrot.slane %v2141_v36, 1  ;;  %v2146_v7 = vrot.slane %v2144_v55, 2  ;;  %v6256_v36 = vld [vmem:[#allocation64_spill] sm:$0xff]  ;;  %v6257_v55 = vld [vmem:[#allocation25_spill] sm:$0xff]  ;;  %v3338_v4 = vld [vmem:[%s3502_s28 + $0xf8] sm:$0xf] }
 0x123   : > { %v4807_v31 = vpop.permute.xlu0 %1688  ;;  %3152 = vmatpush3.bf16.msra.mxu1 %v3317_v57  ;;  %v4821_v63 = vrot.slane %v701_v22, 1  ;;  %v2153_v51 = vrot.slane %v2151_v44, 2  ;;  %v821_v14 = vrot.slane %v6249_v16, 1  ;;  %v824_v58 = vrot.slane %v6250_v11, 2 }
 0x124   : > { %1019 = vrot.lane.b32.xlu1 %v1008_v18, %s3419_s20  ;;  %v2150_v18 = vrot.slane %v2148_v39, 1  ;;  %v2147_v15 = vor.u32 %v2146_v7, %v2143_v56  ;;  %v6251_v46 = vshrl.u32 %v3506_v2, 16  ;;  %v6253_v50 = vshll.u32 %v6252_v43, 16  ;;  %v6261_v7 = vld [vmem:[#allocation68_spill] sm:$0xff] }
 0x125   : > { %604 = vrot.lane.b32.xlu0 %v4550_v42, %s3412_s7  ;;  %v4829_v42 = vor.u32 %v1112_v53, %v1109_v26  ;;  %v704_v24 = vsel %vm349_vm0, %v699_v62, %v4821_v63  ;;  %v4859_v13 = vor.u32 %v824_v58, %v821_v14  ;;  %v1935_v39 = vsel %vm6083_vm5, %v6257_v55, %v6256_v36  ;;  %v6258_v62 = vld [vmem:[#allocation65_spill] sm:$0xff] }
 0x126   : > { %v4831_v49 = vpop.permute.xlu1 %1690  ;;  %v4846_v57 = vor.u32 %v2153_v51, %v2150_v18  ;;  %v441_v23 = vor.u32 %v6251_v46, %v4627_v17  ;;  %v4855_v21 = vrot.slane %v6253_v50, 1  ;;  %v6255_v17 = vld [vmem:[#allocation15_spill] sm:$0xff]  ;;  %vm6259_vm14 = vcmask 64512  }
 0x127   : > { %v4827_v60 = vpop.permute.xlu0 %1837  ;;  %v1114_v38 = vsel %vm800_vm2, %v1105_v47, %v4829_v42  ;;  %v6087_v26 = vrot.slane %v6255_v17, 1  ;;  %v826_v6 = vsel %vm800_vm2, %v4654_v25, %v4859_v13  ;;  %v6260_v47 = vld [vmem:[#allocation67_spill] sm:$0xff]  ;;  %vm6262_vm5 = vcmask 130048  }
 0x128   : > { %1071 = vrot.lane.b32.xlu1 %v1045_v29, %s3420_s25  ;;  %v2155_v27 = vsel %vm800_vm2, %v2147_v15, %v4846_v57  ;;  %v446_v2 = vsel %vm349_vm0, %v441_v23, %v4855_v21  ;;  %v1950_v29 = vsel %vm6259_vm14, %v1935_v39, %v6258_v62  ;;  %v6265_v15 = vld [vmem:[#allocation75_spill] sm:$0xff]  ;;  %v6266_v23 = vld [vmem:[#allocation10_spill] sm:$0xff]  ;;  %v1046_v62 = vrot.slane %v6249_v16, 2 }
 0x129   : > { %673 = vrot.lane.b32.xlu0 %v6248_v34, %s3413_s8  ;;  %v1964_v56 = vsel %vm1204_vm7, %v1950_v29, %v6260_v47  ;;  %v501_v25 = vsel %vm494_vm1, %v498_v61, %v6087_v26  ;;  %v6263_v34 = vld [vmem:[#allocation26_spill] sm:$0xff]  ;;  %v6267_v50 = vshll.u32 %v6266_v23, 16  ;;  %v1047_v29 = vrot.slane %v6250_v11, 3  ;;  %v6272_v47 = vld [vmem:[#allocation83_spill] sm:$0xff]  ;;  %v6280_v11 = vld [vmem:[#allocation88_spill] sm:$0xff] }
 0x12a   : > { %v4844_v52 = vpop.permute.xlu1 %1715  ;;  %v1978_v18 = vsel %vm6262_vm5, %v1964_v56, %v6261_v7  ;;  %vm6273_vm5 = vcmask 293888   ;;  %v6274_v7 = vld [vmem:[#allocation85_spill] sm:$0xff]  ;;  %vm6275_vm14 = vcmask 326656   ;;  %v6277_v1 = vshrl.u32 %v6266_v23, 16  ;;  %v6285_v23 = vld [vmem:[#allocation90_spill] sm:$0xff] }
 0x12b   : > { %v4840_v35 = vpop.permute.xlu0 %1717  ;;  %v4906_v61 = vrot.slane %v6267_v50, 1  ;;  %v6282_v50 = vld [vmem:[#allocation23_spill] sm:$0xff]  ;;  %v5034_v41 = vcombine.low %v3337_v28, %v3338_v4 }
 0x12c   : > { %1160 = vrot.lane.b32.xlu1 %v1114_v38, %s3421_s26  ;;  %v6264_v38 = vld [vmem:[#allocation74_spill] sm:$0xff] }
 0x12d   : > { %742 = vrot.lane.b32.xlu0 %v704_v24, %s3414_s9  ;;  %v6086_v24 = vrot.slane %v6263_v34, 2  ;;  %v1992_v14 = vsel %vm1234_vm9, %v1978_v18, %v6264_v38  ;;  %v6276_v38 = vld [vmem:[#allocation22_spill] sm:$0xff]  ;;  %6300 = vst [vmem:[#allocation77_spill] sm:$0xff] %v5034_v41 }
 0x12e   : > { %v4861_v32 = vpop.permute.xlu1 %1851  ;;  %v2006_v46 = vsel %vm1249_vm10, %v1992_v14, %v6265_v15  ;;  %v6278_v14 = vld [vmem:[#allocation9_spill] sm:$0xff] }
 0x12f   : > { %v4857_v22 = vpop.permute.xlu0 %1742  ;;  %v977_v55 = vsel %vm972_vm3, %v974_v19, %v6086_v24  ;;  %v457_v19 = vor.u32 %v6277_v1, %v4906_v61  ;;  %v6279_v15 = vshll.u32 %v6278_v14, 16  ;;  %v4953_v1 = vor.u32 %v1047_v29, %v1046_v62  ;;  %v6287_v62 = vld [vmem:[#allocation61_spill] sm:$0xff]  ;;  %v6297_v24 = vld [vmem:[#allocation35_spill] sm:$0xff] }
 0x130   : > { %2196 = vrot.lane.b32.xlu1 %v2155_v27, %s3424_s27  ;;  %v6268_v27 = vld [vmem:[#allocation81_spill] sm:$0xff]  ;;  %v833_v26 = vrot.slane %v6297_v24, 2 }
 0x131   : > { %775 = vrot.lane.b32.xlu0 %v6254_v12, %s3415_s10  ;;  %v2020_v12 = vsel %vm6097_vm11, %v2006_v46, %v6268_v27  ;;  %v4936_v16 = vrot.slane %v6279_v15, 1  ;;  %v6283_v27 = vshrl.u32 %v6282_v50, 16 }
 0x132   : > { %v4879_v44 = vpop.permute.xlu1 %1744 }
 0x133   : > { %v4874_v53 = vpop.permute.xlu0 %1865 }
 0x134   : > { %865 = vrot.lane.b32.xlu1 %v826_v6, %s3416_s11  ;;  %v6270_v6 = vld [vmem:[#allocation82_spill] sm:$0xff] }
 0x135   : > { %478 = vrot.lane.b32.xlu0 %v446_v2, %s3409_s4  ;;  %v6269_v2 = vld [vmem:[#allocation60_spill] sm:$0xff]  ;;  %v2034_v36 = vsel %vm6084_vm12, %v2020_v12, %v6270_v6  ;;  %vm6281_vm12 = vcmask 359424   ;;  %v1118_v12 = vrot.slane %v6283_v27, 1  ;;  %v705_v27 = vshrl.u32 %v4771_v9, 16 }
 0x136   : > { %v4899_v58 = vpop.permute.xlu1 %1798  ;;  %v2048_v56 = vsel %vm6273_vm5, %v2034_v36, %v6272_v47  ;;  %v3331_v36 = vld [vmem:[%s3502_s28 + $0xe4] sm:$0xf]  ;;  %v3332_v47 = vld [vmem:[%s3502_s28 + $0xe8] sm:$0xf]  ;;  %vm6325_vm5 = vcmask 64512  }
 0x137   : > { %v4894_v51 = vpop.permute.xlu0 %1800  ;;  %v2062_v18 = vsel %vm6275_vm14, %v2048_v56, %v6274_v7  ;;  %v4947_v56 = vcombine.low %v3331_v36, %v3332_v47  ;;  %vm6329_vm14 = vcmask 130048  }
 0x138   : > { %954 = vrot.lane.b32.xlu1 %v6269_v2, %s3417_s17  ;;  %v2076_v46 = vsel %vm6281_vm12, %v2062_v18, %v6280_v11  ;;  %v6284_v2 = vshll.u32 %v6282_v50, 16  ;;  %v6286_v18 = vld [vmem:[#allocation95_spill] sm:$0xff]  ;;  %v462_v50 = vsel %vm349_vm0, %v457_v19, %v4936_v16  ;;  %vm6317_vm12 = vcmask 31744  }
 0x139   : > { %512 = vrot.lane.b32.xlu0 %v501_v25, %s3410_s5  ;;  %v2090_v7 = vsel %vm1339_vm4, %v2076_v46, %v6285_v23 }
 0x13a   : > { %v4925_v25 = vpop.permute.xlu1 %1879  ;;  %v1121_v6 = vrot.slane %v6284_v2, 2  ;;  %v709_v2 = vshll.u32 %v4947_v56, 16 }
 0x13b   : > { %v4919_v39 = vpop.permute.xlu0 %1460 }
 0x13c   : > { %6271 = vst [vmem:[#allocation69_spill] sm:$0xff] %v4919_v39  ;;  %988 = vrot.lane.b32.xlu1 %v977_v55, %s3418_s19  ;;  %v2104_v55 = vsel %vm1354_vm15, %v2090_v7, %v6286_v18  ;;  %v4969_v29 = vor.u32 %v1121_v6, %v1118_v12  ;;  %v4986_v12 = vrot.slane %v709_v2, 1  ;;  %v6290_v6 = vld [vmem:[#allocation18_spill] sm:$0xff]  ;;  %v6291_v18 = vld [vmem:[#allocation19_spill] sm:$0xff]  ;;  %v6302_v39 = vld [vmem:[#allocation32_spill] sm:$0xff] }
 0x13d   : > { %559 = vrot.lane.b32.xlu0 %v6276_v38, %s3411_s6  ;;  %v2118_v11 = vsel %vm1369_vm6, %v2104_v55, %v4652_v20  ;;  %v1049_v20 = vsel %vm1033_vm13, %v4794_v54, %v4953_v1  ;;  %v502_v7 = vrot.slane %v6290_v6, 1  ;;  %v6085_v55 = vrot.slane %v6291_v18, 1 }
 0x13e   : > { %v4957_v15 = vpop.permute.xlu1 %1839  ;;  %v2132_v46 = vsel %vm1384_vm8, %v2118_v11, %v4729_v3  ;;  %v1123_v3 = vsel %vm800_vm2, %v4829_v42, %v4969_v29  ;;  %v6293_v42 = vld [vmem:[#allocation63_spill] sm:$0xff]  ;;  %v656_v30 = vshll.u32 %v6302_v39, 16 }
 0x13f   : > { %v4951_v38 = vpop.permute.xlu0 %1841  ;;  %v2156_v19 = vshrl.u32 %v2132_v46, 16  ;;  %v2159_v23 = vshll.u32 %v2132_v46, 16 }
 0x140   : > { %1021 = vrot.lane.b32.xlu1 %v6287_v62, %s3419_s20  ;;  %v505_v62 = vsel %vm494_vm1, %v502_v7, %v6085_v55 }
 0x141   : > { %606 = vrot.lane.b32.xlu0 %v4771_v9, %s3412_s7  ;;  %v707_v9 = vor.u32 %v705_v27, %v4821_v63  ;;  %v2161_v46 = vrot.slane %v2159_v23, 2  ;;  %v3334_v23 = vld [vmem:[%s3502_s28 + $0xac] sm:$0xf] }
 0x142   : > { %v4978_v47 = vpop.permute.xlu1 %1893 }
 0x143   : > { %v4976_v36 = vpop.permute.xlu0 %1535  ;;  %v712_v63 = vsel %vm349_vm0, %v707_v9, %v4986_v12 }
 0x144   : > { %6288 = vst [vmem:[#allocation7_spill] sm:$0xff] %v4976_v36  ;;  %1073 = vrot.lane.b32.xlu1 %v1049_v20, %s3420_s25 }
 0x145   : > { %482 = vrot.lane.b32.xlu0 %v462_v50, %s3409_s4  ;;  %v2158_v50 = vrot.slane %v2156_v19, 1  ;;  %v3333_v19 = vld [vmem:[%s3502_s28 + $0xa8] sm:$0xf] }
 0x146   : > { %v4992_v11 = vpop.permute.xlu1 %1853 }
 0x147   : > { %v4988_v54 = vpop.permute.xlu0 %1855  ;;  %6292 = vst [vmem:[#allocation70_spill] sm:$0xff] %v4992_v11  ;;  %v5006_v20 = vor.u32 %v2161_v46, %v2158_v50  ;;  %v3335_v46 = vld [vmem:[%s3502_s28 + $0xec] sm:$0xf]  ;;  %v6327_v11 = vld [vmem:[#allocation89_spill] sm:$0xff] }
 0x148   : > { %6289 = vst [vmem:[#allocation71_spill] sm:$0xff] %v4988_v54  ;;  %675 = vrot.lane.b32.xlu1 %v6293_v42, %s3413_s8  ;;  %v6296_v42 = vld [vmem:[#allocation34_spill] sm:$0xff]  ;;  %v6326_v54 = vld [vmem:[#allocation27_spill] sm:$0xff] }
 0x149   : > { %1162 = vrot.lane.b32.xlu0 %v1123_v3, %s3421_s26  ;;  %v5011_v3 = vcombine.low %v3333_v19, %v3334_v23  ;;  %v830_v55 = vrot.slane %v6296_v42, 1  ;;  %v2163_v19 = vsel %vm800_vm2, %v4846_v57, %v5006_v20 }
 0x14a   : > { %v5004_v2 = vpop.permute.xlu1 %1907 }
 0x14b   : > { %v5002_v27 = vpop.permute.xlu0 %1562  ;;  %v648_v33 = vshll.u32 %v5011_v3, 16  ;;  %v652_v57 = vshrl.u32 %v5011_v3, 16 }
 0x14c   : > { %6294 = vst [vmem:[#allocation73_spill] sm:$0xff] %v5002_v27  ;;  %516 = vrot.lane.b32.xlu1 %v505_v62, %s3410_s5  ;;  %v6299_v62 = vshrl.u32 %v6252_v43, 16  ;;  %v6303_v43 = vld [vmem:[#allocation66_spill] sm:$0xff] }
 0x14d   : > { %744 = vrot.lane.b32.xlu0 %v712_v63, %s3414_s9  ;;  %v3336_v63 = vld [vmem:[%s3502_s28 + $0xf0] sm:$0xf] }
 0x14e   : > { %v5019_v50 = vpop.permute.xlu1 %1867  ;;  %v2988_v6 = vcombine.low %v3335_v46, %v3336_v63  ;;  %v449_v23 = vor.u32 %v6299_v62, %v4855_v21  ;;  %v5038_v46 = vor.u32 %v833_v26, %v830_v55  ;;  %v5040_v63 = vrot.slane %v648_v33, 1 }
 0x14f   : > { %v5014_v9 = vpop.permute.xlu0 %1869  ;;  %6298 = vst [vmem:[#allocation78_spill] sm:$0xff] %v5019_v50  ;;  %v725_v33 = vshll.u32 %v5034_v41, 16 }
 0x150   : > { %6295 = vst [vmem:[#allocation76_spill] sm:$0xff] %v5014_v9  ;;  %2198 = vrot.lane.b32.xlu1 %v2163_v19, %s3424_s27  ;;  %v717_v27 = vshll.u32 %v2988_v6, 16  ;;  %v454_v28 = vsel %vm349_vm0, %v449_v23, %v4906_v61  ;;  %v721_v21 = vshrl.u32 %v2988_v6, 16  ;;  %v835_v26 = vsel %vm800_vm2, %v4859_v13, %v5038_v46 }
 0x151   : > { %563 = vrot.lane.b32.xlu0 %v5011_v3, %s3411_s6  ;;  %v654_v62 = vor.u32 %v652_v57, %v5040_v63 }
 0x152   : > { %v5044_v19 = vpop.permute.xlu1 %1921  ;;  %v5051_v4 = vrot.slane %v717_v27, 1 }
 0x153   : > { %v5036_v36 = vpop.permute.xlu0 %1627 }
 0x154   : > { %6301 = vst [vmem:[#allocation80_spill] sm:$0xff] %v5036_v36  ;;  %777 = vrot.lane.b32.xlu1 %v6303_v43, %s3415_s10  ;;  %v5060_v36 = vrot.slane %v656_v30, 1  ;;  %v723_v61 = vor.u32 %v721_v21, %v5051_v4  ;;  %v6309_v30 = vld [vmem:[#allocation72_spill] sm:$0xff]  ;;  %v6310_v43 = vrot.slane %v6255_v17, 1 }
 0x155   : > { %610 = vrot.lane.b32.xlu0 %v2988_v6, %s3412_s7  ;;  %v5067_v6 = vrot.slane %v725_v33, 1  ;;  %v6312_v33 = vld [vmem:[#allocation16_spill] sm:$0xff] }
 0x156   : > { %v5062_v9 = vpop.permute.xlu1 %1881  ;;  %v659_v27 = vsel %vm349_vm0, %v654_v62, %v5060_v36 }
 0x157   : > { %v5057_v55 = vpop.permute.xlu0 %1883  ;;  %6305 = vst [vmem:[#allocation21_spill] sm:$0xff] %v5062_v9  ;;  %6306 = vst [vmem:[#allocation55_spill] sm:$0xff] %v5067_v6  ;;  %v728_v57 = vsel %vm349_vm0, %v723_v61, %v5067_v6  ;;  %v6318_v61 = vld [vmem:[#allocation52_spill] sm:$0xff]  ;;  %v6319_v6 = vld [vmem:[#allocation58_spill] sm:$0xff] }
 0x158   : > { %6304 = vst [vmem:[#allocation11_spill] sm:$0xff] %v5057_v55  ;;  %867 = vrot.lane.b32.xlu1 %v835_v26, %s3416_s11  ;;  %v6096_v26 = vrot.slane %v6312_v33, 2  ;;  %v842_v17 = vrot.slane %v6318_v61, 2  ;;  %v1050_v33 = vrot.slane %v6296_v42, 2  ;;  %v6330_v42 = vrot.slane %v6302_v39, 1 }
 0x159   : > { %480 = vrot.lane.b32.xlu0 %v454_v28, %s3409_s4  ;;  %v503_v28 = vsel %vm494_vm1, %v6310_v43, %v502_v7  ;;  %v848_v7 = vrot.slane %v6319_v6, 1  ;;  %v6320_v43 = vld [vmem:[#allocation59_spill] sm:$0xff] }
 0x15a   : > { %v5073_v23 = vpop.permute.xlu1 %1692 }
 0x15b   : > { %v5071_v13 = vpop.permute.xlu0 %1895  ;;  %6308 = vst [vmem:[#allocation29_spill] sm:$0xff] %v5073_v23  ;;  %v6314_v23 = vld [vmem:[#allocation51_spill] sm:$0xff] }
 0x15c   : > { %6307 = vst [vmem:[#allocation28_spill] sm:$0xff] %v5071_v13  ;;  %679 = vrot.lane.b32.xlu1 %v659_v27, %s3413_s8  ;;  %v839_v41 = vrot.slane %v6314_v23, 1  ;;  %v6316_v13 = vld [vmem:[#allocation31_spill] sm:$0xff] }
 0x15d   : > { %956 = vrot.lane.b32.xlu0 %v6309_v30, %s3417_s17  ;;  %v6315_v30 = vld [vmem:[#allocation84_spill] sm:$0xff] }
 0x15e   : > { %v5086_v62 = vpop.permute.xlu1 %1897  ;;  %v1937_v27 = vsel %vm6317_vm12, %v6316_v13, %v6315_v30  ;;  %v6324_v30 = vld [vmem:[#allocation87_spill] sm:$0xff]  ;;  %vm6335_vm12 = vcmask 261120  }
 0x15f   : > { %v5083_v21 = vpop.permute.xlu0 %1719  ;;  %6313 = vst [vmem:[#allocation57_spill] sm:$0xff] %v5086_v62  ;;  %v6321_v62 = vrot.slane %v6263_v34, 2  ;;  %v1952_v50 = vsel %vm6325_vm5, %v1937_v27, %v6324_v30  ;;  %v1051_v34 = vrot.slane %v6297_v24, 3  ;;  %v5122_v13 = vld [vmem:[%s3502_s28 + $0x74] ss:$0 sps:$4 sm:$0x33]  }
 0x160   : > { %6311 = vst [vmem:[#allocation5_spill] sm:$0xff] %v5083_v21  ;;  %514 = vrot.lane.b32.xlu1 %v503_v28, %s3410_s5  ;;  %v851_v21 = vrot.slane %v6320_v43, 2  ;;  %v467_v27 = vshll.u32 %v5122_v13, 16  ;;  %v6328_v30 = vld [vmem:[#allocation91_spill] sm:$0xff]  ;;  %v6331_v24 = vrot.slane %v5011_v3, 1  ;;  %vm6336_vm5 = vcmask 293888  }
 0x161   : > { %748 = vrot.lane.b32.xlu0 %v728_v57, %s3414_s9  ;;  %v979_v57 = vsel %vm972_vm3, %v6321_v62, %v6096_v26  ;;  %v1966_v62 = vsel %vm1204_vm7, %v1952_v50, %v6327_v11  ;;  %v5117_v26 = vor.u32 %v842_v17, %v839_v41  ;;  %v6332_v50 = vld [vmem:[#allocation96_spill] sm:$0xff] }
 0x162   : > { %v5106_v28 = vpop.permute.xlu1 %1909  ;;  %v5119_v9 = vor.u32 %v851_v21, %v848_v7  ;;  %v6333_v7 = vld [vmem:[#allocation79_spill] sm:$0xff] }
 0x163   : > { %v5102_v55 = vpop.permute.xlu0 %1911  ;;  %6323 = vst [vmem:[#allocation25_spill] sm:$0xff] %v5106_v28  ;;  %v770_v28 = vsel %vm494_vm1, %v6331_v24, %v6330_v42 }
 0x164   : > { %6322 = vst [vmem:[#allocation64_spill] sm:$0xff] %v5102_v55  ;;  %990 = vrot.lane.b32.xlu1 %v979_v57, %s3418_s19  ;;  %v1980_v55 = vsel %vm6329_vm14, %v1966_v62, %v6328_v30  ;;  %v5142_v57 = vor.u32 %v1051_v34, %v1050_v33  ;;  %v6334_v30 = vshrl.u32 %v6278_v14, 16  ;;  %vm6337_vm14 = vcmask 326656  }
 0x165   : > { %561 = vrot.lane.b32.xlu0 %v6326_v54, %s3411_s6  ;;  %v1994_v41 = vsel %vm1234_vm9, %v1980_v55, %v6332_v50  ;;  %v853_v55 = vsel %vm800_vm2, %v5117_v26, %v5119_v9 }
 0x166   : > { %v5136_v17 = vpop.permute.xlu1 %1746  ;;  %v2008_v21 = vsel %vm1249_vm10, %v1994_v41, %v4660_v8  ;;  %v465_v42 = vor.u32 %v6334_v30, %v4936_v16  ;;  %v5153_v8 = vrot.slane %v467_v27, 1  ;;  %v5177_v16 = vld [vmem:[%s3502_s28 + $0x30] ss:$0 sps:$4 sm:$0x77]  }
 0x167   : > { %v5132_v11 = vpop.permute.xlu0 %1923  ;;  %v2022_v62 = vsel %vm6097_vm11, %v2008_v21, %v4738_v45  ;;  %v644_v45 = vshrl.u32 %v6326_v54, 16  ;;  %vm6338_vm11 = vcmask 359424   ;;  %v6339_v41 = vld [vmem:[#allocation62_spill] sm:$0xff] }
 0x168   : > { %781 = vrot.lane.b32.xlu1 %v770_v28, %s3415_s10  ;;  %v2036_v33 = vsel %vm6335_vm12, %v2022_v62, %v4813_v59  ;;  %v1053_v59 = vsel %vm1033_vm13, %v4953_v1, %v5142_v57 }
 0x169   : > { %1023 = vrot.lane.b32.xlu0 %v6333_v7, %s3419_s20  ;;  %v2050_v28 = vsel %vm6336_vm5, %v2036_v33, %v4827_v60  ;;  %v470_v60 = vsel %vm349_vm0, %v465_v42, %v5153_v8  ;;  %v646_v21 = vor.u32 %v644_v45, %v6339_v41  ;;  %v506_v45 = vrot.slane %v5177_v16, 1  ;;  %v6343_v41 = vld [vmem:[#allocation6_spill] sm:$0xff] }
 0x16a   : > { %v5162_v24 = vpop.permute.xlu1 %1925  ;;  %v2064_v50 = vsel %vm6337_vm14, %v2050_v28, %v4861_v32  ;;  %vm6353_vm5 = vcmask 64512  }
 0x16b   : > { %v5157_v34 = vpop.permute.xlu0 %1802  ;;  %v2078_v14 = vsel %vm6338_vm11, %v2064_v50, %v4874_v53  ;;  %v6340_v53 = vld [vmem:[#allocation30_spill] sm:$0xff]  ;;  %v651_v28 = vsel %vm349_vm0, %v646_v21, %v5040_v63  ;;  %vm6349_vm11 = vcmask 31744   ;;  %vm6354_vm14 = vmmov %vm6353_vm5 }
 0x16c   : > { %608 = vrot.lane.b32.xlu1 %v4947_v56, %s3412_s7  ;;  %v2092_v32 = vsel %vm1339_vm4, %v2078_v14, %v4925_v25  ;;  %v6341_v7 = vshrl.u32 %v6340_v53, 16  ;;  %v713_v14 = vshrl.u32 %v4947_v56, 16  ;;  %vm6352_vm12 = vmmov %vm6349_vm11 }
 0x16d   : > { %871 = vrot.lane.b32.xlu0 %v853_v55, %s3416_s11  ;;  %v6342_v55 = vshll.u32 %v6340_v53, 16  ;;  %v2106_v1 = vsel %vm1354_vm15, %v2092_v32, %v4978_v47  ;;  %v6346_v53 = vld [vmem:[#allocation56_spill] sm:$0xff] }
 0x16e   : > { %v1127_v62 = vrot.slane %v6341_v7, 1  ;;  %v5190_v33 = vpop.permute.xlu1 %1843  ;;  %v2120_v42 = vsel %vm1369_vm6, %v2106_v1, %v5004_v2  ;;  %v6098_v56 = vrot.slane %v6346_v53, 2 }
 0x16f   : > { %v5181_v27 = vpop.permute.xlu0 %1857  ;;  %v1130_v30 = vrot.slane %v6342_v55, 2  ;;  %v2134_v25 = vsel %vm1384_vm8, %v2120_v42, %v5044_v19  ;;  %v6344_v19 = vrot.slane %v6291_v18, 1  ;;  %v715_v55 = vor.u32 %v713_v14, %v4986_v12  ;;  %v6347_v12 = vld [vmem:[#allocation93_spill] sm:$0xff] }
 0x170   : > { %1075 = vrot.lane.b32.xlu1 %v1053_v59, %s3420_s25  ;;  %v2164_v2 = vshrl.u32 %v2134_v25, 16  ;;  %v6345_v59 = vld [vmem:[#allocation33_spill] sm:$0xff] }
 0x171   : > { %484 = vrot.lane.b32.xlu0 %v470_v60, %s3409_s4  ;;  %v5203_v47 = vor.u32 %v1130_v30, %v1127_v62  ;;  %v2167_v60 = vshll.u32 %v2134_v25, 16  ;;  %v507_v63 = vsel %vm494_vm1, %v6344_v19, %v506_v45  ;;  %v980_v21 = vrot.slane %v6345_v59, 2  ;;  %v6348_v14 = vld [vmem:[#allocation37_spill] sm:$0xff] }
 0x172   : > { %v5206_v32 = vpop.permute.xlu1 %1871  ;;  %v2166_v1 = vrot.slane %v2164_v2, 1  ;;  %v1939_v2 = vsel %vm6349_vm11, %v6348_v14, %v6347_v12  ;;  %vm6355_vm11 = vcmask 130048  }
 0x173   : > { %v5201_v50 = vpop.permute.xlu0 %1885  ;;  %v1132_v7 = vsel %vm800_vm2, %v4969_v29, %v5203_v47  ;;  %v2169_v42 = vrot.slane %v2167_v60, 2  ;;  %v983_v25 = vsel %vm972_vm3, %v980_v21, %v6098_v56  ;;  %v720_v29 = vsel %vm349_vm0, %v715_v55, %v5051_v4  ;;  %v6350_v60 = vld [vmem:[#allocation92_spill] sm:$0xff] }
 0x174   : > { %677 = vrot.lane.b32.xlu1 %v651_v28, %s3413_s8  ;;  %v1954_v56 = vsel %vm6353_vm5, %v1939_v2, %v4622_v37  ;;  %vm6359_vm5 = vcmask 228352  }
 0x175   : > { %960 = vrot.lane.b32.xlu0 %v6343_v41, %s3417_s17  ;;  %v6351_v41 = vld [vmem:[#allocation39_spill] sm:$0xff]  ;;  %v5252_v55 = vor.u32 %v2169_v42, %v2166_v1  ;;  %v1968_v12 = vsel %vm1204_vm7, %v1954_v56, %v4696_v40  ;;  %v6358_v1 = vrot.slane %v6326_v54, 1 }
 0x176   : > { %v5224_v30 = vpop.permute.xlu1 %1899  ;;  %v1941_v19 = vsel %vm6352_vm12, %v6351_v41, %v6350_v60  ;;  %v1982_v60 = vsel %vm6355_vm11, %v1968_v12, %v4783_v5  ;;  %vm6356_vm12 = vmmov %vm6355_vm11  ;;  %v660_v5 = vshrl.u32 %v6302_v39, 16  ;;  %vm6361_vm11 = vcmask 261120  }
 0x177   : > { %v5221_v62 = vpop.permute.xlu0 %1913  ;;  %v1956_v4 = vsel %vm6354_vm14, %v1941_v19, %v4618_v10  ;;  %v6357_v10 = vrot.slane %v5011_v3, 1  ;;  %v1996_v40 = vsel %vm1234_vm9, %v1982_v60, %v4807_v31  ;;  %v2171_v3 = vsel %vm800_vm2, %v5006_v20, %v5252_v55  ;;  %vm6360_vm14 = vmmov %vm6359_vm5 }
 0x178   : > { %1164 = vrot.lane.b32.xlu1 %v1132_v7, %s3421_s26  ;;  %v5246_v7 = vld [vmem:[%s3502_s28 + $0xb8] ss:$0 sps:$4 sm:$0x33]   ;;  %v1970_v14 = vsel %vm1204_vm7, %v1956_v4, %v4689_v0  ;;  %v1054_v31 = vrot.slane %v6314_v23, 2 }
 0x179   : > { %518 = vrot.lane.b32.xlu0 %v507_v63, %s3410_s5  ;;  %v1984_v37 = vsel %vm6356_vm12, %v1970_v14, %v4777_v48  ;;  %v768_v42 = vsel %vm494_vm1, %v6358_v1, %v6357_v10  ;;  %v664_v48 = vshll.u32 %v5246_v7, 16  ;;  %vm6362_vm12 = vmmov %vm6361_vm11  ;;  %v6367_v14 = vld [vmem:[#allocation71_spill] sm:$0xff]  ;;  %v6373_v10 = vld [vmem:[#allocation78_spill] sm:$0xff] }
 0x17a   : > { %v5243_v63 = vpop.permute.xlu1 %1927  ;;  %v1998_v0 = vsel %vm1234_vm9, %v1984_v37, %v4831_v49  ;;  %v6375_v1 = vld [vmem:[#allocation76_spill] sm:$0xff] }
 0x17b   : > { %v5235_v28 = vpop.permute.xlu0 %474  ;;  %v2012_v54 = vsel %vm1249_vm10, %v1998_v0, %v4840_v35  ;;  %v1058_v35 = vrot.slane %v6319_v6, 2  ;;  %v5313_v4 = vrot.slane %v664_v48, 1  ;;  %v6377_v0 = vld [vmem:[#allocation38_spill] sm:$0xff] }
 0x17c   : > { %746 = vrot.lane.b32.xlu1 %v720_v29, %s3414_s9  ;;  %v2026_v29 = vsel %vm6360_vm14, %v2012_v54, %v4879_v44  ;;  %v1059_v44 = vrot.slane %v6320_v43, 3 }
 0x17d   : > { %994 = vrot.lane.b32.xlu0 %v983_v25, %s3418_s19  ;;  %v2010_v25 = vsel %vm1249_vm10, %v1996_v40, %v4844_v52  ;;  %v1055_v52 = vrot.slane %v6318_v61, 3  ;;  %v2040_v41 = vsel %vm6362_vm12, %v2026_v29, %v4894_v51  ;;  %v6365_v51 = vld [vmem:[#allocation70_spill] sm:$0xff]  ;;  %v6381_v29 = vld [vmem:[#allocation11_spill] sm:$0xff] }
 0x17e   : > { %v5275_v56 = vpop.permute.xlu1 %508  ;;  %v2024_v49 = vsel %vm6359_vm5, %v2010_v25, %v4857_v22  ;;  %v844_v22 = vsel %vm800_vm2, %v5038_v46, %v5117_v26  ;;  %vm6363_vm5 = vcmask 293888   ;;  %v6369_v26 = vld [vmem:[#allocation94_spill] sm:$0xff]  ;;  %v6379_v25 = vshll.u32 %v6377_v0, 16 }
 0x17f   : > { %v5264_v2 = vpop.permute.xlu0 %555  ;;  %v2038_v20 = vsel %vm6361_vm11, %v2024_v49, %v4899_v58  ;;  %vm6364_vm14 = vmmov %vm6363_vm5  ;;  %v662_v58 = vor.u32 %v660_v5, %v5060_v36  ;;  %vm6366_vm11 = vcmask 326656   ;;  %v6378_v5 = vshrl.u32 %v6377_v0, 16 }
 0x180   : > { %2200 = vrot.lane.b32.xlu1 %v2171_v3, %s3424_s27  ;;  %v2052_v23 = vsel %vm6363_vm5, %v2038_v20, %v4957_v15  ;;  %v2054_v6 = vsel %vm6364_vm14, %v2040_v41, %v4951_v38  ;;  %vm6368_vm12 = vmmov %vm6366_vm11  ;;  %v6370_v15 = vld [vmem:[#allocation36_spill] sm:$0xff]  ;;  %vm6374_vm5 = vcmask 359424   ;;  %v1148_v54 = vrot.slane %v6379_v25, 2  ;;  %v6380_v3 = vld [vmem:[#allocation21_spill] sm:$0xff] }
 0x181   : > { %565 = vrot.lane.b32.xlu0 %v6302_v39, %s3411_s6  ;;  %v2066_v12 = vsel %vm6366_vm11, %v2052_v23, %v6365_v51  ;;  %v2068_v46 = vsel %vm6368_vm12, %v2054_v6, %v6367_v14  ;;  %v6371_v43 = vshrl.u32 %v6370_v15, 16  ;;  %v6372_v38 = vshll.u32 %v6370_v15, 16  ;;  %vm6376_vm14 = vmmov %vm6374_vm5  ;;  %v5345_v51 = vld [vmem:[%s3502_s28 + $0xfc] ss:$0 sps:$4 sm:$0x33]   ;;  %v6383_v14 = vld [vmem:[#allocation57_spill] sm:$0xff] }
 0x182   : > { %v5310_v61 = vpop.permute.xlu1 %602  ;;  %v2080_v36 = vsel %vm6374_vm5, %v2066_v12, %v6373_v10  ;;  %v2082_v40 = vsel %vm6376_vm14, %v2068_v46, %v6375_v1  ;;  %v1145_v48 = vrot.slane %v6378_v5, 1  ;;  %v5340_v23 = vor.u32 %v1055_v52, %v1054_v31  ;;  %v6384_v15 = vld [vmem:[#allocation25_spill] sm:$0xff] }
 0x183   : > { %v5300_v19 = vpop.permute.xlu0 %671  ;;  %v1136_v60 = vrot.slane %v6371_v43, 1  ;;  %v1139_v37 = vrot.slane %v6372_v38, 2  ;;  %v2094_v49 = vsel %vm1339_vm4, %v2080_v36, %v6380_v3  ;;  %v2096_v20 = vsel %vm1339_vm4, %v2082_v40, %v6381_v29  ;;  %v6385_v38 = vld [vmem:[#allocation64_spill] sm:$0xff]  ;;  %v6390_v29 = vld [vmem:[#allocation47_spill] sm:$0xff] }
 0x184   : > { %779 = vrot.lane.b32.xlu1 %v768_v42, %s3415_s10  ;;  %v5342_v6 = vor.u32 %v1059_v44, %v1058_v35  ;;  %v6382_v42 = vld [vmem:[#allocation28_spill] sm:$0xff]  ;;  %v2110_v46 = vsel %vm1354_vm15, %v2096_v20, %v6383_v14  ;;  %v667_v31 = vsel %vm349_vm0, %v662_v58, %v5313_v4  ;;  %v6386_v44 = vld [vmem:[#allocation77_spill] sm:$0xff]  ;;  %v5368_v1 = vor.u32 %v1148_v54, %v1145_v48 }
 0x185   : > { %1027 = vrot.lane.b32.xlu0 %v6369_v26, %s3419_s20  ;;  %v2108_v12 = vsel %vm1354_vm15, %v2094_v49, %v6382_v42  ;;  %v2124_v10 = vsel %vm1369_vm6, %v2110_v46, %v6385_v38  ;;  %v5366_v36 = vor.u32 %v1139_v37, %v1136_v60  ;;  %v729_v58 = vshrl.u32 %v6386_v44, 16  ;;  %v6387_v37 = vld [vmem:[#allocation41_spill] sm:$0xff]  ;;  %v6388_v48 = vld [vmem:[#allocation12_spill] sm:$0xff]  ;;  %v5388_v49 = vld [vmem:[%s3502_s28 + $0xb8] ss:$0 sps:$4 sm:$0x77]  }
 0x186   : > { %v5351_v26 = vpop.permute.xlu1 %740  ;;  %v2122_v43 = vsel %vm1369_vm6, %v2108_v12, %v6384_v15  ;;  %v2138_v35 = vsel %vm1384_vm8, %v2124_v10, %v5162_v24  ;;  %vm6389_vm11 = vcmask 31744   ;;  %vm6391_vm12 = vcmask 64512   ;;  %v6392_v12 = vld [vmem:[#allocation55_spill] sm:$0xff] }
 0x187   : > { %v5338_v41 = vpop.permute.xlu0 %773  ;;  %v2136_v52 = vsel %vm1384_vm8, %v2122_v43, %v5132_v11  ;;  %v733_v11 = vshll.u32 %v5345_v51, 16  ;;  %v2180_v25 = vshrl.u32 %v2138_v35, 16  ;;  %v2183_v60 = vshll.u32 %v2138_v35, 16  ;;  %v3316_v15 = vld [vmem:[%s3502_s28 + $0x34] ss:$0 sps:$4 sm:$0x77]   ;;  %vm6401_vm14 = vmmov %vm6391_vm12 }
 0x188   : > { %612 = vrot.lane.b32.xlu1 %v6386_v44, %s3412_s7  ;;  %v2172_v0 = vshrl.u32 %v2136_v52, 16  ;;  %v2175_v5 = vshll.u32 %v2136_v52, 16  ;;  %v1176_v54 = vsel %vm6389_vm11, %v6388_v48, %v6387_v37  ;;  %v1150_v3 = vsel %vm800_vm2, %v5366_v36, %v5368_v1  ;;  %v6393_v44 = vld [vmem:[#allocation97_spill] sm:$0xff]  ;;  %v3318_v48 = vld [vmem:[%s3502_s28 + $0x78] ss:$0 sps:$4 sm:$0x77]  }
 0x189   : > { %869 = vrot.lane.b32.xlu0 %v844_v22, %s3416_s11  ;;  %v1061_v22 = vsel %vm1033_vm13, %v5340_v23, %v5342_v6  ;;  %v1191_v20 = vsel %vm6391_vm12, %v1176_v54, %v6390_v29  ;;  %v731_v14 = vor.u32 %v729_v58, %v6392_v12  ;;  %v5395_v46 = vrot.slane %v733_v11, 1 }
 0x18a   : > { %v5377_v24 = vpop.permute.xlu1 %863  ;;  %v1206_v43 = vsel %vm1204_vm7, %v1191_v20, %v5235_v28  ;;  %v2174_v10 = vrot.slane %v2172_v0, 1  ;;  %v2182_v52 = vrot.slane %v2180_v25, 1  ;;  %v2185_v35 = vrot.slane %v2183_v60, 2  ;;  %v3300_v28 = vld [vmem:[%s3502_s28 + $0x100] ss:$0 sps:$4 sm:$0x77]  }
 0x18b   : > { %v5373_v40 = vpop.permute.xlu0 %476  ;;  %v771_v37 = vrot.slane %v5388_v49, 1  ;;  %vm6396_vm5 = vcmask 130048   ;;  %v855_v60 = vshrl.u32 %v3316_v15, 16  ;;  %v858_v54 = vshll.u32 %v3316_v15, 16  ;;  %v6398_v15 = vld [vmem:[#allocation69_spill] sm:$0xff] }
 0x18c   : > { %1079 = vrot.lane.b32.xlu1 %v1061_v22, %s3420_s25  ;;  %v6394_v22 = vld [vmem:[#allocation16_spill] sm:$0xff]  ;;  %v1221_v0 = vsel %vm6396_vm5, %v1206_v43, %v5275_v56  ;;  %v6397_v56 = vrot.slane %v6302_v39, 1  ;;  %v944_v12 = vshrl.u32 %v3318_v48, 16  ;;  %vm6410_vm12 = vcmask 261120  }
 0x18d   : > { %681 = vrot.lane.b32.xlu0 %v667_v31, %s3413_s8  ;;  %v2177_v31 = vrot.slane %v2175_v5, 2  ;;  %v6395_v58 = vrot.slane %v6394_v22, 2  ;;  %v736_v5 = vsel %vm349_vm0, %v731_v14, %v5395_v46  ;;  %v1236_v59 = vsel %vm1234_vm9, %v1221_v0, %v5264_v2  ;;  %vm6399_vm0 = vmmov %vm6389_vm11 }
 0x18e   : > { %v953_v38 = vpop.permute.xlu1 %952  ;;  %v772_v20 = vsel %vm494_vm1, %v6397_v56, %v771_v37  ;;  %v947_v14 = vshll.u32 %v3318_v48, 16  ;;  %v1944_v2 = vsel %vm6399_vm0, %v3300_v28, %v6398_v15  ;;  %v1251_v43 = vsel %vm1249_vm10, %v1236_v59, %v5310_v61  ;;  %v6404_v61 = vld [vmem:[#allocation20_spill] sm:$0xff]  ;;  %v6405_v28 = vld [vmem:[#allocation17_spill] sm:$0xff]  ;;  %vm6408_vm1 = vmmov %vm6396_vm5 }
 0x18f   : > { %v5392_v42 = vpop.permute.xlu0 %510  ;;  %v981_v11 = vsel %vm972_vm3, %v6395_v58, %v980_v21  ;;  %v5419_v29 = vor.u32 %v2177_v31, %v2174_v10  ;;  %v5421_v21 = vor.u32 %v2185_v35, %v2182_v52  ;;  %v857_v31 = vrot.slane %v855_v60, 1  ;;  %v6400_v35 = vld [vmem:[#allocation7_spill] sm:$0xff]  ;;  %v6403_v58 = vld [vmem:[#allocation73_spill] sm:$0xff]  ;;  %v6407_v60 = vld [vmem:[#allocation80_spill] sm:$0xff] }
 0x190   : > { %958 = vrot.lane.b32.xlu1 %v6393_v44, %s3417_s17  ;;  %v860_v52 = vrot.slane %v858_v54, 2  ;;  %v1958_v44 = vsel %vm6401_vm14, %v1944_v2, %v6400_v35  ;;  %vm6402_vm11 = vcmask 228352   ;;  %v6406_v0 = vshrl.u32 %v6405_v28, 16  ;;  %v6409_v56 = vld [vmem:[#allocation29_spill] sm:$0xff]  ;;  %vm6414_vm14 = vmmov %vm6410_vm12 }
 0x191   : > { %1168 = vrot.lane.b32.xlu0 %v1150_v3, %s3421_s26  ;;  %v1266_v39 = vsel %vm6402_vm11, %v1251_v43, %v5300_v19  ;;  %v2187_v48 = vsel %vm800_vm2, %v5419_v29, %v5421_v21  ;;  %v946_v19 = vrot.slane %v944_v12, 1  ;;  %v949_v59 = vrot.slane %v947_v14, 2  ;;  %v6411_v35 = vld [vmem:[#allocation5_spill] sm:$0xff]  ;;  %vm6413_vm0 = vmmov %vm6402_vm11 }
 0x192   : > { %v987_v3 = vpop.permute.xlu1 %986  ;;  %v1281_v2 = vsel %vm6410_vm12, %v1266_v39, %v5351_v26  ;;  %vm6412_vm5 = vcmask 293888   ;;  %v471_v12 = vshrl.u32 %v5122_v13, 16  ;;  %vm6416_vm11 = vcmask 326656  }
 0x193   : > { %v5415_v25 = vpop.permute.xlu0 %557  ;;  %v5475_v39 = vor.u32 %v949_v59, %v946_v19  ;;  %vm6418_vm12 = vmmov %vm6412_vm5 }
 0x194   : > { %750 = vrot.lane.b32.xlu1 %v736_v5, %s3414_s9  ;;  %v404_v5 = vor.u32 %v6406_v0, %v6404_v61  ;;  %v3340_v0 = vld [vmem:[%s3502_s28 + $0x34] sm:$0xf] }
 0x195   : > { %992 = vrot.lane.b32.xlu0 %v981_v11, %s3418_s19  ;;  %v1972_v11 = vsel %vm1204_vm7, %v1958_v44, %v6403_v58  ;;  %v1296_v58 = vsel %vm6412_vm5, %v1281_v2, %v5338_v41  ;;  %vm6419_vm5 = vmmov %vm6416_vm11  ;;  %v3321_v2 = vld [vmem:[%s3502_s28 + $0xbc] ss:$0 sps:$4 sm:$0x77]  }
 0x196   : > { %v1020_v22 = vpop.permute.xlu1 %1019  ;;  %v1986_v54 = vsel %vm6408_vm1, %v1972_v11, %v6407_v60  ;;  %v1311_v13 = vsel %vm6416_vm11, %v1296_v58, %v5377_v24  ;;  %vm6417_vm1 = vcmask 359424   ;;  %v6422_v58 = vmov 0.0  }
 0x197   : > { %v5434_v10 = vpop.permute.xlu0 %604  ;;  %v2000_v15 = vsel %vm1234_vm9, %v1986_v54, %v6409_v56  ;;  %v3341_v54 = vld [vmem:[%s3502_s28 + $0x78] sm:$0xf]  ;;  %vm6423_vm11 = vmmov 0  }
 0x198   : > { %2204 = vrot.lane.b32.xlu1 %v2187_v48, %s3424_s27  ;;  %v2014_v44 = vsel %vm1249_vm10, %v2000_v15, %v6411_v35  ;;  %v3010_v19 = vcombine.low %v3341_v54, %v3341_v54  ;;  %v6430_v54 = vld [vmem:[#allocation48_spill] sm:$0xff] }
 0x199   : > { %783 = vrot.lane.b32.xlu0 %v772_v20, %s3415_s10  ;;  %v5458_v20 = vor.u32 %v860_v52, %v857_v31  ;;  %v2028_v14 = vsel %vm6413_vm0, %v2014_v44, %v5136_v17  ;;  %v6415_v31 = vld [vmem:[#allocation24_spill] sm:$0xff]  ;;  %v1057_v52 = vsel %vm1033_vm13, %v5142_v57, %v5340_v23  ;;  %v473_v23 = vor.u32 %v471_v12, %v5153_v8 }
 0x19a   : > { %v1072_v11 = vpop.permute.xlu1 %1071  ;;  %v2042_v26 = vsel %vm6414_vm14, %v2028_v14, %v5157_v34  ;;  %v1326_v34 = vsel %vm6417_vm1, %v1311_v13, %v953_v38  ;;  %vm2210_vm0 = vcmask 523264   ;;  %v6420_v38 = vld [vmem:[#allocation86_spill] sm:$0xff]  ;;  %vm6421_vm14 = vmmov %vm6417_vm1  ;;  %v5528_v12 = vrot.slane %v3010_v19, 2 }
 0x19b   : > { %v5456_v43 = vpop.permute.xlu0 %673  ;;  %v862_v17 = vsel %vm800_vm2, %v5119_v9, %v5458_v20  ;;  %v2056_v61 = vsel %vm6418_vm12, %v2042_v26, %v5190_v33  ;;  %v1341_v57 = vsel %vm1339_vm4, %v1326_v34, %v987_v3  ;;  %v951_v28 = vsel %vm800_vm2, %v6420_v38, %v5475_v39 }
 0x19c   : > { %1025 = vrot.lane.b32.xlu1 %v6415_v31, %s3419_s20  ;;  %v2070_v24 = vsel %vm6419_vm5, %v2056_v61, %v5181_v27  ;;  %v1356_v9 = vsel %vm1354_vm15, %v1341_v57, %v1020_v22  ;;  %v1152_v26 = vshrl.u32 %v3321_v2, 16  ;;  %v1155_v31 = vshll.u32 %v3321_v2, 16 }
 0x19d   : > { %417 = vrot.lane.b32.xlu0 %v404_v5, %s3408_s30  ;;  %v1371_v33 = vsel %vm1369_vm6, %v1356_v9, %v1072_v11  ;;  %v5501_v5 = vcombine.low %v3340_v0, %v3340_v0  ;;  %v2084_v22 = vsel %vm6421_vm14, %v2070_v24, %v5206_v32  ;;  %v1141_v32 = vsel %vm800_vm2, %v5203_v47, %v5366_v36  ;;  %v6428_v0 = vld [vmem:[#allocation13_spill] sm:$0xff] }
 0x19e   : > { %v1161_v48 = vpop.permute.xlu1 %1160  ;;  %v2098_v56 = vsel %vm1339_vm4, %v2084_v22, %v5201_v50  ;;  %v1154_v61 = vrot.slane %v1152_v26, 1  ;;  %v1157_v57 = vrot.slane %v1155_v31, 2  ;;  %v668_v9 = vshrl.u32 %v5246_v7, 16  ;;  %v6437_v26 = vld [vmem:[#allocation18_spill] sm:$0xff] }
 0x19f   : > { %v5482_v41 = vpop.permute.xlu0 %742  ;;  %v1386_v8 = vsel %vm1384_vm8, %v1371_v33, %v1161_v48  ;;  %v1063_v59 = vshrl.u32 %v5501_v5, 16  ;;  %v1066_v15 = vshll.u32 %v5501_v5, 16  ;;  %v984_v44 = vrot.slane %v5501_v5, 2  ;;  %v6427_v33 = vld [vmem:[#allocation43_spill] sm:$0xff] }
 0x1a0   : > { %873 = vrot.lane.b32.xlu1 %v862_v17, %s3416_s11  ;;  %v2112_v50 = vsel %vm1354_vm15, %v2098_v56, %v5224_v30  ;;  %v6425_v17 = vld [vmem:[#allocation8_spill] sm:$0xff]  ;;  %v1158_v38 = vor.u32 %v1157_v57, %v1154_v61  ;;  %vm6431_vm1 = vcmask 64512   ;;  %v737_v56 = vshrl.u32 %v5345_v51, 16 }
 0x1a1   : > { %1077 = vrot.lane.b32.xlu0 %v1057_v52, %s3420_s25  ;;  %v1065_v14 = vrot.slane %v1063_v59, 2  ;;  %v2126_v47 = vsel %vm1369_vm6, %v2112_v50, %v5221_v62  ;;  %v1068_v36 = vrot.slane %v1066_v15, 3  ;;  %v6424_v52 = vrot.slane %v6346_v53, 2 }
 0x1a2   : > { %v2197_v27 = vpop.permute.xlu1 %2196  ;;  %v2140_v62 = vsel %vm1384_vm8, %v2126_v47, %v5243_v63  ;;  %v6426_v34 = vrot.slane %v6425_v17, 2  ;;  %v1159_v59 = vsel %vm800_vm2, %v5368_v1, %v1158_v38  ;;  %vm6433_vm12 = vcmask 228352  }
 0x1a3   : > { %v5498_v3 = vpop.permute.xlu0 %775  ;;  %v2212_v60 = vsel %vm2210_vm0, %v1386_v8, %v2197_v27  ;;  %v985_v30 = vsel %vm972_vm3, %v6424_v52, %v984_v44  ;;  %v5551_v48 = vor.u32 %v1068_v36, %v1065_v14  ;;  %v2188_v24 = vshrl.u32 %v2140_v62, 16  ;;  %v6436_v36 = vld [vmem:[#allocation45_spill] sm:$0xff] }
 0x1a4   : > { %486 = vrot.lane.b32.xlu1 %v473_v23, %s3409_s4  ;;  %3110 = vmatmul.mubr.bf16.vlgmr.msra.gmra.mrb[0].mxu0 %v2212_v60  ;;  %v1018_v53 = vsel %vm972_vm3, %v6426_v34, %v5528_v12  ;;  %vm6429_vm3 = vcmask 31744   ;;  %vm6434_vm5 = vcmask 261120   ;;  %vm6435_vm14 = vcmask 293888  }
 0x1a5   : > { %962 = vrot.lane.b32.xlu0 %v951_v28, %s3417_s17  ;;  %3113 = vmatprep.mubr.msk.bf16.mxu0 %vm6423_vm11, %v6422_v58  ;;  %v1070_v63 = vsel %vm1033_vm13, %v5342_v6, %v5551_v48  ;;  %v1178_v8 = vsel %vm6429_vm3, %v6428_v0, %v6427_v33  ;;  %v2190_v27 = vrot.slane %v2188_v24, 1  ;;  %vm6432_vm13 = vcmask 130048  }
 0x1a6   : > { %v866_v11 = vpop.permute.xlu1 %865  ;;  %v1193_v19 = vsel %vm6431_vm1, %v1178_v8, %v6430_v54  ;;  %v6442_v8 = vld [vmem:[#allocation40_spill] sm:$0xff] }
 0x1a7   : > { %v5518_v35 = vpop.permute.xlu0 %478  ;;  %v1208_v6 = vsel %vm1204_vm7, %v1193_v19, %v5373_v40 }
 0x1a8   : > { %1166 = vrot.lane.b32.xlu1 %v1141_v32, %s3421_s26  ;;  %v1223_v15 = vsel %vm6432_vm13, %v1208_v6, %v5392_v42  ;;  %vm6439_vm13 = vcmask 326656  }
 0x1a9   : > { %520 = vrot.lane.b32.xlu0 %v506_v45, %s3410_s5  ;;  %v2179_v45 = vsel %vm800_vm2, %v5252_v55, %v5419_v29  ;;  %v2191_v55 = vshll.u32 %v2140_v62, 16  ;;  %v1238_v50 = vsel %vm1234_vm9, %v1223_v15, %v5415_v25 }
 0x1aa   : > { %v955_v16 = vpop.permute.xlu1 %954  ;;  %v1253_v40 = vsel %vm1249_vm10, %v1238_v50, %v5434_v10 }
 0x1ab   : > { %v5538_v13 = vpop.permute.xlu0 %512  ;;  %v2193_v22 = vrot.slane %v2191_v55, 2 }
 0x1ac   : > { %996 = vrot.lane.b32.xlu1 %v985_v30, %s3418_s19 }
 0x1ad   : > { %2202 = vrot.lane.b32.xlu0 %v2179_v45, %s3424_s27  ;;  %v2194_v32 = vor.u32 %v2193_v22, %v2190_v27  ;;  %v6443_v27 = vld [vmem:[#allocation14_spill] sm:$0xff]  ;;  %v6445_v22 = vld [vmem:[#allocation49_spill] sm:$0xff] }
 0x1ae   : > { %v989_v29 = vpop.permute.xlu1 %988 }
 0x1af   : > { %v5553_v23 = vpop.permute.xlu0 %559  ;;  %v2195_v10 = vsel %vm800_vm2, %v5421_v21, %v2194_v32  ;;  %vm6441_vm2 = vcmask 130048  }
 0x1b0   : > { %567 = vrot.lane.b32.xlu1 %v5246_v7, %s3411_s6  ;;  %v670_v7 = vor.u32 %v668_v9, %v5313_v4  ;;  %v1268_v4 = vsel %vm6433_vm12, %v1253_v40, %v5456_v43  ;;  %v1184_v43 = vsel %vm6429_vm3, %v6437_v26, %v6436_v36  ;;  %vm6440_vm12 = vcmask 359424  }
 0x1b1   : > { %1029 = vrot.lane.b32.xlu0 %v1018_v53, %s3419_s20  ;;  %v1283_v1 = vsel %vm6434_vm5, %v1268_v4, %v5482_v41  ;;  %vm6444_vm5 = vmmov %vm6429_vm3 }
 0x1b2   : > { %v1022_v60 = vpop.permute.xlu1 %1021  ;;  %v1298_v25 = vsel %vm6435_vm14, %v1283_v1, %v5498_v3  ;;  %vm6446_vm14 = vmmov %vm6431_vm1 }
 0x1b3   : > { %v5562_v28 = vpop.permute.xlu0 %606  ;;  %v1313_v41 = vsel %vm6439_vm13, %v1298_v25, %v866_v11  ;;  %vm6447_vm3 = vmmov %vm6441_vm2  ;;  %vm6449_vm13 = vcmask 261120  }
 0x1b4   : > { %614 = vrot.lane.b32.xlu1 %v5345_v51, %s3412_s7  ;;  %v739_v51 = vor.u32 %v737_v56, %v5395_v46  ;;  %v6438_v46 = vld [vmem:[#allocation53_spill] sm:$0xff]  ;;  %v1328_v3 = vsel %vm6440_vm12, %v1313_v41, %v955_v16  ;;  %vm6450_vm12 = vcmask 293888   ;;  %s3075_s7 = sshll.u32 %s3467_s16, 5 }
 0x1b5   : > { %1081 = vrot.lane.b32.xlu0 %v1070_v63, %s3420_s25  ;;  %v1199_v31 = vsel %vm6431_vm1, %v1184_v43, %v6438_v46  ;;  %v1343_v21 = vsel %vm1339_vm4, %v1328_v3, %v989_v29  ;;  %vm6448_vm1 = vcmask 228352  }
 0x1b6   : > { %v1074_v14 = vpop.permute.xlu1 %1073  ;;  %v1358_v17 = vsel %vm1354_vm15, %v1343_v21, %v1022_v60 }
 0x1b7   : > { %v483_v2 = vpop.permute.xlu0 %482  ;;  %v1373_v11 = vsel %vm1369_vm6, %v1358_v17, %v1074_v14 }
 0x1b8   : > { %683 = vrot.lane.b32.xlu1 %v670_v7, %s3413_s8  ;;  %v1214_v30 = vsel %vm1204_vm7, %v1199_v31, %v483_v2 }
 0x1b9   : > { %1170 = vrot.lane.b32.xlu0 %v1159_v59, %s3421_s26 }
 0x1ba   : > { %v676_v47 = vpop.permute.xlu1 %675 }
 0x1bb   : > { %v1163_v42 = vpop.permute.xlu0 %1162 }
 0x1bc   : > { %752 = vrot.lane.b32.xlu1 %v739_v51, %s3414_s9  ;;  %v1388_v34 = vsel %vm1384_vm8, %v1373_v11, %v1163_v42 }
 0x1bd   : > { %2206 = vrot.lane.b32.xlu0 %v2195_v10, %s3424_s27 }
 0x1be   : > { %v517_v45 = vpop.permute.xlu1 %516 }
 0x1bf   : > { %v745_v52 = vpop.permute.xlu0 %744  ;;  %v5607_v62 = vsel %vm6441_vm2, %v1214_v30, %v517_v45  ;;  %vm6451_vm2 = vcmask 326656  }
 0x1c0   : > { %785 = vrot.lane.b32.xlu1 %v771_v37, %s3415_s10 }
 0x1c1   : > { %875 = vrot.lane.b32.xlu0 %v5458_v20, %s3416_s11 }
 0x1c2   : > { %v2199_v53 = vpop.permute.xlu1 %2198 }
 0x1c3   : > { %v564_v16 = vpop.permute.xlu0 %563  ;;  %v2215_v61 = vsel %vm2210_vm0, %v1388_v34, %v2199_v53 }
 0x1c4   : > { %3114 = vmatmul.mubr.bf16.gmra.mrb[4].mxu0 %v2215_v61  ;;  %964 = vrot.lane.b32.xlu1 %v5475_v39, %s3417_s17  ;;  %v1244_v41 = vsel %vm1234_vm9, %v5607_v62, %v564_v16  ;;  %s5924_s17 = scalar_lea.hbm %s5970_s3, %s3075_s7 }
 0x1c5   : > { %998 = vrot.lane.b32.xlu0 %v984_v44, %s3418_s19  ;;  %3117 = vmatprep.mubr.msk.bf16.mxu0 %vm6423_vm11, %v6422_v58 }
 0x1c6   : > { %v778_v49 = vpop.permute.xlu1 %777 }
 0x1c7   : > { %v611_v20 = vpop.permute.xlu0 %610 }
 0x1c8   : > { %1031 = vrot.lane.b32.xlu1 %v5528_v12, %s3419_s20  ;;  %s3425_s20 = smov [#allocation2]  }
 0x1c9   : > { %1083 = vrot.lane.b32.xlu0 %v5551_v48, %s3420_s25  ;;  %s3347_s25 = sshll.u32 %s3425_s20, 4  ;;  %s3348_s25 = int_to_ptr.vmem [resolvable:$false] %s3347_s25 }
 0x1ca   : > { %v868_v57 = vpop.permute.xlu1 %867 }
 0x1cb   : > { %v5629_v37 = vpop.permute.xlu0 %480 }
 0x1cc   : > { %1172 = vrot.lane.b32.xlu1 %v1158_v38, %s3421_s26  ;;  %v1180_v38 = vsel %vm6444_vm5, %v6443_v27, %v6442_v8  ;;  %vm6452_vm5 = vcmask 359424   ;;  %s3349_s26 = scalar_lea.vmem %s3348_s25, 64 }
 0x1cd   : > { %2208 = vrot.lane.b32.xlu0 %v2194_v32, %s3424_s27  ;;  %v1195_v60 = vsel %vm6446_vm14, %v1180_v38, %v6445_v22  ;;  %vm6453_vm14 = vmmov %vm6448_vm1 }
 0x1ce   : > { %v680_v39 = vpop.permute.xlu1 %679  ;;  %v1210_v19 = vsel %vm1204_vm7, %v1195_v60, %v5518_v35 }
 0x1cf   : > { %v957_v5 = vpop.permute.xlu0 %956  ;;  %v1225_v7 = vsel %vm6447_vm3, %v1210_v19, %v5538_v13  ;;  %vm6454_vm3 = vmmov %vm6449_vm13 }
 0x1d0   : > { %v1240_v59 = vsel %vm1234_vm9, %v1225_v7, %v5553_v23 }
 0x1d1   : > { %v1255_v56 = vsel %vm1249_vm10, %v1240_v59, %v5562_v28 }
 0x1d2   : > { %v5633_v24 = vpop.permute.xlu1 %514  ;;  %v1270_v2 = vsel %vm6448_vm1, %v1255_v56, %v676_v47  ;;  %vm6455_vm1 = vmmov %vm6450_vm12 }
 0x1d3   : > { %v749_v44 = vpop.permute.xlu0 %748  ;;  %v1285_v50 = vsel %vm6449_vm13, %v1270_v2, %v745_v52  ;;  %v1259_v52 = vsel %vm1249_vm10, %v1244_v41, %v611_v20  ;;  %vm6456_vm13 = vmmov %vm6451_vm2 }
 0x1d4   : > { %v1300_v14 = vsel %vm6450_vm12, %v1285_v50, %v778_v49  ;;  %v1274_v30 = vsel %vm6453_vm14, %v1259_v52, %v680_v39  ;;  %vm6457_vm12 = vmmov %vm6452_vm5  ;;  %vm6463_vm14 = vcmask 130048  }
 0x1d5   : > { %v1315_v35 = vsel %vm6451_vm2, %v1300_v14, %v868_v57  ;;  %v1289_v21 = vsel %vm6454_vm3, %v1274_v30, %v749_v44  ;;  %vm6460_vm2 = vcmask 31744   ;;  %vm6464_vm3 = vcmask 228352  }
 0x1d6   : > { %v991_v29 = vpop.permute.xlu1 %990  ;;  %v1330_v13 = vsel %vm6452_vm5, %v1315_v35, %v957_v5  ;;  %vm6462_vm5 = vcmask 64512  }
 0x1d7   : > { %v5635_v55 = vpop.permute.xlu0 %561  ;;  %v1345_v23 = vsel %vm1339_vm4, %v1330_v13, %v991_v29 }
 0x1da   : > { %v782_v48 = vpop.permute.xlu1 %781 }
 0x1db   : > { %v1024_v63 = vpop.permute.xlu0 %1023  ;;  %v1304_v17 = vsel %vm6455_vm1, %v1289_v21, %v782_v48  ;;  %v6459_v48 = vld [vmem:[#allocation15_spill] sm:$0xff]  ;;  %vm6465_vm1 = vcmask 261120  }
 0x1dc   : > { %v1360_v51 = vsel %vm1354_vm15, %v1345_v23, %v1024_v63  ;;  %v6458_v63 = vld [vmem:[#allocation42_spill] sm:$0xff]  ;;  %v6469_v23 = vld [vmem:[#allocation44_spill] sm:$0xff] }
 0x1de   : > { %v5637_v33 = vpop.permute.xlu1 %608 }
 0x1df   : > { %v872_v9 = vpop.permute.xlu0 %871 }
 0x1e0   : > { %v1319_v11 = vsel %vm6456_vm13, %v1304_v17, %v872_v9  ;;  %v1182_v9 = vsel %vm6460_vm2, %v6459_v48, %v6458_v63  ;;  %vm6466_vm13 = vcmask 293888   ;;  %vm6468_vm2 = vcmask 359424  }
 0x1e2   : > { %v1076_v0 = vpop.permute.xlu1 %1075 }
 0x1e3   : > { %v5639_v12 = vpop.permute.xlu0 %484  ;;  %v1375_v28 = vsel %vm1369_vm6, %v1360_v51, %v1076_v0  ;;  %v6461_v0 = vld [vmem:[#allocation50_spill] sm:$0xff] }
 0x1e4   : > { %v1197_v8 = vsel %vm6462_vm5, %v1182_v9, %v6461_v0  ;;  %vm6470_vm5 = vcmask 31744  }
 0x1e5   : > { %v1212_v27 = vsel %vm1204_vm7, %v1197_v8, %v5629_v37  ;;  %v1186_v51 = vsel %vm6470_vm5, %v6291_v18, %v6469_v23  ;;  %vm6478_vm5 = vcmask 359424  }
 0x1e6   : > { %v678_v6 = vpop.permute.xlu1 %677  ;;  %v1227_v22 = vsel %vm6463_vm14, %v1212_v27, %v5633_v24  ;;  %vm6472_vm14 = vcmask 64512  }
 0x1e7   : > { %v961_v54 = vpop.permute.xlu0 %960 }
 0x1e8   : > { %v1334_v53 = vsel %vm6457_vm12, %v1319_v11, %v961_v54  ;;  %v1242_v54 = vsel %vm1234_vm9, %v1227_v22, %v5635_v55  ;;  %vm6467_vm12 = vcmask 326656   ;;  %v3342_v11 = vld [vmem:[%s3502_s28 + $0x30] ss:$0 sps:$4 sm:$0x33]   ;;  %s3154_s28 = smul.u32 144, %s3496_s24  ;;  %s169_s24 = sand.u32 1, %s3397_s13  }
 0x1e9   : > { %v1257_v19 = vsel %vm1249_vm10, %v1242_v54, %v5637_v33  ;;  %s2899_s6 = sshll.u32 %s169_s24, 1  ;;  %s2795_s19 = scalar_lea.sflag [#allocation3], %s169_s24 }
 0x1ea   : > { %v1165_v32 = vpop.permute.xlu1 %1164  ;;  %v1272_v7 = vsel %vm6464_vm3, %v1257_v19, %v678_v6  ;;  %vm6473_vm3 = vcmask 130048   ;;  %s5769_s5 = scalar_lea.vmem %s5969_s2, %s3154_s28  ;;  %s171_s8 = scalar_lea.vmem [#allocation2], %s2899_s6 }
 0x1eb   : > { %v5654_v15 = vpop.permute.xlu0 %518  ;;  %v1390_v42 = vsel %vm1384_vm8, %v1375_v28, %v1165_v32  ;;  %v6471_v28 = vld [vmem:[#allocation54_spill] sm:$0xff]  ;;  %s2811_s9 = sshll.u32 %s171_s8, 4  ;;  %s5926_s9 = int_to_ptr.vmem [resolvable:$true] %s2811_s9 }
 0x1ec   : > { %s3343_s16 = scalar_lea.vmem %s5926_s9, 32  ;;  %p3350_p0 = scmp.lt.s32.totalorder %s5926_s9, %s3348_s25 }
 0x1ed   : > { %p3344_p11 = scmp.ne.s32.totalorder %s5926_s9, %s3343_s16  ;;  %p3351_p1 = scmp.lt.s32.totalorder %s3349_s26, %s3343_s16 }
 0x1ee   : > { %v747_v4 = vpop.permute.xlu1 %746 }
 0x1ef   : > { %v995_v40 = vpop.permute.xlu0 %994  ;;  %v1287_v56 = vsel %vm6465_vm1, %v1272_v7, %v747_v4  ;;  %vm6474_vm1 = vcmask 228352   ;;  %p3345_p12 = pnand %p3344_p11, %p3484_p5  ;;  %p3352_p2 = por %p3351_p1, %p3350_p0 }
 0x1f0   : > { %v1349_v49 = vsel %vm1339_vm4, %v1334_v53, %v995_v40 }
 0x1f1   : > { %p3346_p13 = pneg %p3345_p12 }
 0x1f2   : > { %v2201_v25 = vpop.permute.xlu1 %2200 }
 0x1f3   : > { %v5664_v1 = vpop.permute.xlu0 %565  ;;  %v2218_v47 = vsel %vm2210_vm0, %v1390_v42, %v2201_v25  ;;  %v1201_v42 = vsel %vm6472_vm14, %v1186_v51, %v6471_v28  ;;  %vm6480_vm14 = vcmask 31744   ;;  %p3353_p3 = pnand %p3352_p2, %p3346_p13 }
 0x1f4   : > { %3118 = vmatmul.mubr.bf16.gmra.mrb[8].mxu0 %v2218_v47  ;;  %v1216_v25 = vsel %vm1204_vm7, %v1201_v42, %v5639_v12 }
 0x1f5   : > { %3121 = vmatprep.mubr.msk.bf16.mxu0 %vm6423_vm11, %v6422_v58 }
 0x1f6   : > { %v780_v36 = vpop.permute.xlu1 %779 }
 0x1f7   : > { %v1028_v10 = vpop.permute.xlu0 %1027  ;;  %v1302_v32 = vsel %vm6466_vm13, %v1287_v56, %v780_v36  ;;  %vm6475_vm13 = vcmask 261120  }
 0x1f8   : > { %v1364_v62 = vsel %vm1354_vm15, %v1349_v49, %v1028_v10  ;;  %v1231_v10 = vsel %vm6473_vm3, %v1216_v25, %v5654_v15  ;;  %vm6481_vm3 = vcmask 64512  }
 0x1fa   : > { %v613_v43 = vpop.permute.xlu1 %612 }
 0x1fb   : > { %v870_v26 = vpop.permute.xlu0 %869 }
 0x1fc   : > { %v1317_v37 = vsel %vm6467_vm12, %v1302_v32, %v870_v26  ;;  %v1246_v26 = vsel %vm1234_vm9, %v1231_v10, %v5664_v1  ;;  %vm6476_vm12 = vcmask 293888   ;;  %v6479_v1 = vld [vmem:[#allocation46_spill] sm:$0xff] }
 0x1fe   : > { %v1080_v31 = vpop.permute.xlu1 %1079 }
 0x1ff   : > { %v682_v46 = vpop.permute.xlu0 %681  ;;  %v1379_v16 = vsel %vm1369_vm6, %v1364_v62, %v1080_v31  ;;  %v1261_v31 = vsel %vm1249_vm10, %v1246_v26, %v613_v43  ;;  %v1188_v43 = vsel %vm6480_vm14, %v3342_v11, %v6479_v1 }
 0x200   : > { %v1276_v18 = vsel %vm6474_vm1, %v1261_v31, %v682_v46  ;;  %vm6482_vm1 = vcmask 130048  }
 0x202   : > { %v959_v45 = vpop.permute.xlu1 %958 }
 0x203   : > { %v1169_v3 = vpop.permute.xlu0 %1168  ;;  %v1332_v50 = vsel %vm6468_vm2, %v1317_v37, %v959_v45  ;;  %vm6477_vm2 = vcmask 326656   ;;  %v2384_v37 = vlaneseq }
 0x204   : > { %v1394_v57 = vsel %vm1384_vm8, %v1379_v16, %v1169_v3 }
 0x206   : > { %v751_v61 = vpop.permute.xlu1 %750 }
 0x207   : > { %v993_v34 = vpop.permute.xlu0 %992  ;;  %v1291_v52 = vsel %vm6475_vm13, %v1276_v18, %v751_v61  ;;  %vm6483_vm13 = vcmask 228352  }
 0x208   : > { %v1347_v14 = vsel %vm1339_vm4, %v1332_v50, %v993_v34  ;;  %v5750_v50 = vshrl.u32 %v2384_v37, 7 }
 0x20a   : > { %v2205_v5 = vpop.permute.xlu1 %2204  ;;  %v2387_v10 = vadd.s32 16, %v5750_v50 }
 0x20b   : > { %v784_v20 = vpop.permute.xlu0 %783  ;;  %v2224_v39 = vsel %vm2210_vm0, %v1394_v57, %v2205_v5 }
 0x20c   : > { %3126 = vmatmul.mubr.bf16.vlgmr.msra.gmra.mrb[0].mxu1 %v2224_v39  ;;  %v1306_v30 = vsel %vm6476_vm12, %v1291_v52, %v784_v20  ;;  %v5772_v31 = vmul.u32.u64.low 3123612579, %v2387_v10  ;;  %v5773_v18 = vmul.u32.u64.high 3123612579, %v2387_v10, %v5772_v31 }
 0x20d   : > { %3129 = vmatprep.mubr.msk.bf16.mxu1 %vm6423_vm11, %v6422_v58 }
 0x20e   : > { %v1026_v29 = vpop.permute.xlu1 %1025 }
 0x20f   : > { %v418_v44 = vpop.permute.xlu0 %417  ;;  %v1362_v55 = vsel %vm1354_vm15, %v1347_v14, %v1026_v29 }
 0x210   : > { %v1203_v34 = vsel %vm6481_vm3, %v1188_v43, %v418_v44  ;;  %vm2748_vm3 = vcmask 516096  }
 0x212   : > { %v874_v60 = vpop.permute.xlu1 %873 }
 0x213   : > { %v1078_v38 = vpop.permute.xlu0 %1077  ;;  %v1321_v12 = vsel %vm6477_vm2, %v1306_v30, %v874_v60 }
 0x214   : > { %v1377_v33 = vsel %vm1369_vm6, %v1362_v55, %v1078_v38 }
 0x216   : > { %v487_v2 = vpop.permute.xlu1 %486 }
 0x217   : > { %v963_v59 = vpop.permute.xlu0 %962  ;;  %v1218_v61 = vsel %vm1204_vm7, %v1203_v34, %v487_v2  ;;  %vm6484_vm7 = vcmask 261120  }
 0x218   : > { %v1336_v45 = vsel %vm6478_vm5, %v1321_v12, %v963_v59 }
 0x21a   : > { %v1167_v35 = vpop.permute.xlu1 %1166 }
 0x21b   : > { %v521_v24 = vpop.permute.xlu0 %520  ;;  %v1392_v6 = vsel %vm1384_vm8, %v1377_v33, %v1167_v35  ;;  %v5754_v14 = vmul.u32.u64.low 3123612579, %v5750_v50  ;;  %v5755_v35 = vmul.u32.u64.high 3123612579, %v5750_v50, %v5754_v14 }
 0x21c   : > { %v1233_v16 = vsel %vm6482_vm1, %v1218_v61, %v521_v24  ;;  %v2386_v24 = vadd.s32 8, %v5750_v50  ;;  %vm2751_vm1 = vcmask 523267  }
 0x21e   : > { %v997_v13 = vpop.permute.xlu1 %996  ;;  %v5757_v55 = vmul.u32.u64.low 3123612579, %v2386_v24  ;;  %v5758_v33 = vmul.u32.u64.high 3123612579, %v2386_v24, %v5757_v55 }
 0x21f   : > { %v2203_v40 = vpop.permute.xlu0 %2202  ;;  %v1351_v15 = vsel %vm1339_vm4, %v1336_v45, %v997_v13 }
 0x220   : > { %v2221_v4 = vsel %vm2210_vm0, %v1392_v6, %v2203_v40  ;;  %v2404_v6 = vshrl.u32 %v5755_v35, 3  ;;  %v2415_v40 = vshrl.u32 %v5758_v33, 3 }
 0x221   : > { %3122 = vmatmul.mubr.bf16.gmra.mrb[12].mxu0 %v2221_v4 }
 0x222   : > { %v568_v36 = vpop.permute.xlu1 %567  ;;  %v2405_v13 = vmul.u32 11, %v2404_v6  ;;  %v2416_v4 = vmul.u32 11, %v2415_v40 }
 0x223   : > { %v1030_v47 = vpop.permute.xlu0 %1029  ;;  %v1248_v5 = vsel %vm1234_vm9, %v1233_v16, %v568_v36  ;;  %v2388_v36 = vadd.s32 24, %v5750_v50 }
 0x224   : > { %v1366_v46 = vsel %vm1354_vm15, %v1351_v15, %v1030_v47  ;;  %v2406_v23 = vsub.s32 %v5750_v50, %v2405_v13  ;;  %v2417_v51 = vsub.s32 %v2386_v24, %v2416_v4  ;;  %v2389_v13 = vadd.s32 32, %v5750_v50 }
 0x225   : > { %v2390_v4 = vadd.s32 40, %v5750_v50 }
 0x226   : > { %v615_v3 = vpop.permute.xlu1 %614  ;;  %v2580_v28 = vadd.s32 11, %v2406_v23  ;;  %vm2542_vm9 = vcmp.ne.s32.totalorder %v2417_v51, 0  ;;  %v2581_v42 = vadd.s32 11, %v2417_v51 }
 0x227   : > { %v1082_v41 = vpop.permute.xlu0 %1081  ;;  %v1263_v39 = vsel %vm1249_vm10, %v1248_v5, %v615_v3  ;;  %vm2555_vm10 = vcmp.lt.s32.totalorder %v2417_v51, 0  ;;  %v5776_v3 = vmul.u32.u64.low 3123612579, %v2388_v36  ;;  %v5777_v30 = vmul.u32.u64.high 3123612579, %v2388_v36, %v5776_v3 }
 0x228   : > { %v1381_v53 = vsel %vm1369_vm6, %v1366_v46, %v1082_v41 }
 0x22a   : > { %v684_v17 = vpop.permute.xlu1 %683 }
 0x22b   : > { %v1171_v21 = vpop.permute.xlu0 %1170  ;;  %v1278_v44 = vsel %vm6483_vm13, %v1263_v39, %v684_v17 }
 0x22c   : > { %v1396_v49 = vsel %vm1384_vm8, %v1381_v53, %v1171_v21 }
 0x22e   : > { %v753_v20 = vpop.permute.xlu1 %752 }
 0x22f   : > { %v2207_v62 = vpop.permute.xlu0 %2206  ;;  %v1293_v63 = vsel %vm6484_vm7, %v1278_v44, %v753_v20 }
 0x230   : > { %v2227_v57 = vsel %vm2210_vm0, %v1396_v49, %v2207_v62  ;;  %v2426_v49 = vshrl.u32 %v5773_v18, 3 }
 0x231   : > { %3130 = vmatmul.mubr.bf16.gmra.mrb[4].mxu1 %v2227_v57  ;;  %v2437_v57 = vshrl.u32 %v5777_v30, 3 }
 0x232   : > { %3133 = vmatprep.mubr.msk.bf16.mxu1 %vm6423_vm11, %v6422_v58  ;;  %v786_v48 = vpop.permute.xlu1 %785  ;;  %v2427_v5 = vmul.u32 11, %v2426_v49 }
 0x233   : > { %v876_v29 = vpop.permute.xlu0 %875  ;;  %v1308_v9 = vsel %vm6476_vm12, %v1293_v63, %v786_v48  ;;  %v2438_v39 = vmul.u32 11, %v2437_v57  ;;  %v2391_v57 = vadd.s32 48, %v5750_v50 }
 0x234   : > { %v1323_v0 = vsel %vm6477_vm2, %v1308_v9, %v876_v29  ;;  %v2428_v44 = vsub.s32 %v2387_v10, %v2427_v5 }
 0x235   : > { %v2439_v29 = vsub.s32 %v2388_v36, %v2438_v39 }
 0x236   : > { %v965_v27 = vpop.permute.xlu1 %964  ;;  %vm2543_vm13 = vcmp.ne.s32.totalorder %v2428_v44, 0  ;;  %vm2556_vm7 = vcmp.lt.s32.totalorder %v2428_v44, 0  ;;  %v2582_v63 = vadd.s32 11, %v2428_v44 }
 0x237   : > { %v999_v8 = vpop.permute.xlu0 %998  ;;  %v1338_v38 = vsel %vm6478_vm5, %v1323_v0, %v965_v27  ;;  %vm2544_vm12 = vcmp.ne.s32.totalorder %v2439_v29, 0  ;;  %vm2557_vm2 = vcmp.lt.s32.totalorder %v2439_v29, 0  ;;  %vm2569_vm5 = vmand %vm2556_vm7, %vm2543_vm13  ;;  %v2583_v48 = vadd.s32 11, %v2439_v29 }
 0x238   : > { %v1353_v22 = vsel %vm1339_vm4, %v1338_v38, %v999_v8  ;;  %vm2568_vm4 = vmand %vm2555_vm10, %vm2542_vm9  ;;  %v2595_v9 = vsel %vm2569_vm5, %v2582_v63, %v2428_v44  ;;  %vm2753_vm10 = vcmask 519168   ;;  %v2392_v44 = vadd.s32 56, %v5750_v50 }
 0x239   : > { %v2594_v47 = vsel %vm2568_vm4, %v2581_v42, %v2417_v51  ;;  %vm2758_vm4 = vcmask 522240  }
 0x23a   : > { %v1032_v54 = vpop.permute.xlu1 %1031  ;;  %vm2607_vm14 = vcmp.lt.s32.totalorder %v2594_v47, 9 }
 0x23b   : > { %v1084_v60 = vpop.permute.xlu0 %1083  ;;  %v1368_v19 = vsel %vm1354_vm15, %v1353_v22, %v1032_v54  ;;  %v3046_v52 = vsel %vm2607_vm14, 1.0, %v6422_v58 }
 0x23c   : > { %v1383_v7 = vsel %vm1369_vm6, %v1368_v19, %v1084_v60  ;;  %vm2541_vm6 = vcmp.ne.s32.totalorder %v2406_v23, 0 }
 0x23e   : > { %v1173_v56 = vpop.permute.xlu1 %1172 }
 0x23f   : > { %v2209_v59 = vpop.permute.xlu0 %2208  ;;  %v1398_v2 = vsel %vm1384_vm8, %v1383_v7, %v1173_v56  ;;  %vm2554_vm8 = vcmp.lt.s32.totalorder %v2406_v23, 0 }
 0x240   : > { %v2230_v32 = vsel %vm2210_vm0, %v1398_v2, %v2209_v59  ;;  %vm2567_vm15 = vmand %vm2554_vm8, %vm2541_vm6  ;;  %vm2608_vm8 = vcmp.lt.s32.totalorder %v2595_v9, 9  ;;  %v2394_v9 = vadd.s32 72, %v5750_v50 }
 0x241   : > { %3134 = vmatmul.mubr.bf16.gmra.mrb[8].mxu1 %v2230_v32  ;;  %v2593_v25 = vsel %vm2567_vm15, %v2580_v28, %v2406_v23  ;;  %vm2570_vm6 = vmand %vm2557_vm2, %vm2544_vm12  ;;  %v3047_v8 = vsel %vm2608_vm8, 1.0, %v6422_v58  ;;  %vm2756_vm15 = vcmask 523270   ;;  %vm6099_vm8 = vcmask 517120  }
 0x242   : > { %vm2606_vm11 = vcmp.lt.s32.totalorder %v2593_v25, 9  ;;  %v2596_v0 = vsel %vm2570_vm6, %v2583_v48, %v2439_v29  ;;  %v5801_v23 = vmul.u32.u64.low 3123612579, %v2389_v13  ;;  %v5802_v51 = vmul.u32.u64.high 3123612579, %v2389_v13, %v5801_v23 }
 0x243   : > { %v3045_v26 = vsel %vm2606_vm11, 1.0, %v6422_v58  ;;  %vm2609_vm9 = vcmp.lt.s32.totalorder %v2596_v0, 9  ;;  %v5804_v28 = vmul.u32.u64.low 3123612579, %v2390_v4  ;;  %v5805_v42 = vmul.u32.u64.high 3123612579, %v2390_v4, %v5804_v28 }
 0x244   : > { %v3048_v38 = vsel %vm2609_vm9, 1.0, %v6422_v58  ;;  %v2448_v25 = vshrl.u32 %v5802_v51, 3  ;;  %vm2761_vm6 = vcmask 523265   ;;  %vm2766_vm9 = vcmask 523268  }
 0x245   : > { %v2459_v47 = vshrl.u32 %v5805_v42, 3 }
 0x246   : > { %v2449_v10 = vmul.u32 11, %v2448_v25 }
 0x247   : > { %v2460_v36 = vmul.u32 11, %v2459_v47 }
 0x249   : > { %v2461_v31 = vsub.s32 %v2390_v4, %v2460_v36 }
 0x24b   : > { %vm2559_vm13 = vcmp.lt.s32.totalorder %v2461_v31, 0 }
 0x277   : > { %v2330_v41 = vpop.f32.mrb[0].mxu0 }
 0x278   : > { %v2645_v12 = vmul.f32 %v3045_v26, %v2330_v41  ;;  %v2690_v45 = vmul.f32 %v2330_v41, %v2330_v41  ;;  %2747 = vst.msk [vmem:[%s5769_s5] sm:$0xff] %vm2210_vm0, %v2330_v41  ;;  %v3111_v21 = vpop.f32.mrb[1].mxu0  ;;  %v2585_v41 = vadd.s32 11, %v2461_v31 }
 0x279   : > { %v2333_v15 = vpop.f32.mrb[2].mxu0 }
 0x27a   : > { %v2703_v17 = vmul.f32 %v3045_v26, %v2690_v45  ;;  %v2646_v11 = vmul.f32 %v3046_v52, %v2333_v15  ;;  %v2691_v1 = vmul.f32 %v2333_v15, %v2333_v15  ;;  %2749 = vst.msk [vmem:[%s5769_s5 + $0x8] sm:$0x1] %vm2748_vm3, %v2333_v15  ;;  %v3112_v43 = vpop.f32.mrb[3].mxu0  ;;  %v2658_v46 = vsel %vm2210_vm0, %v2645_v12, 0.0 }
 0x27b   : > { %3058 = vst.msk [vmem:[%s5769_s5 + $0xd] sm:$0xf8] %vm2751_vm1, %v2333_v15  ;;  %v2450_v26 = vsub.s32 %v2389_v13, %v2449_v10  ;;  %vm2546_vm1 = vcmp.ne.s32.totalorder %v2461_v31, 0 }
 0x27c   : > { %v2659_v34 = vsel %vm2210_vm0, %v2646_v11, 0.0  ;;  %v2704_v53 = vmul.f32 %v3046_v52, %v2691_v1  ;;  %v2716_v62 = vsel %vm2210_vm0, %v2703_v17, 0.0  ;;  %vm2572_vm12 = vmand %vm2559_vm13, %vm2546_vm1  ;;  %v2393_v1 = vadd.s32 64, %v5750_v50 }
 0x27d   : > { %v2660_v61 = vadd.f32 %v2659_v34, %v2658_v46  ;;  %vm2545_vm11 = vcmp.ne.s32.totalorder %v2450_v26, 0  ;;  %vm2558_vm14 = vcmp.lt.s32.totalorder %v2450_v26, 0  ;;  %v2584_v18 = vadd.s32 11, %v2450_v26 }
 0x27e   : > { %v2717_v16 = vsel %vm2210_vm0, %v2704_v53, 0.0  ;;  %vm2571_vm7 = vmand %vm2558_vm14, %vm2545_vm11  ;;  %v2598_v3 = vsel %vm2572_vm12, %v2585_v41, %v2461_v31  ;;  %v5824_v63 = vmul.u32.u64.low 3123612579, %v2393_v1  ;;  %v5825_v48 = vmul.u32.u64.high 3123612579, %v2393_v1, %v5824_v63 }
 0x27f   : > { %v2718_v20 = vadd.f32 %v2717_v16, %v2716_v62  ;;  %v2597_v52 = vsel %vm2571_vm7, %v2584_v18, %v2450_v26  ;;  %vm2611_vm5 = vcmp.lt.s32.totalorder %v2598_v3, 9 }
 0x280   : > { %vm2610_vm2 = vcmp.lt.s32.totalorder %v2597_v52, 9  ;;  %v3050_v45 = vsel %vm2611_vm5, 1.0, %v6422_v58 }
 0x281   : > { %v3049_v30 = vsel %vm2610_vm2, 1.0, %v6422_v58 }
 0x297   : > { %v2338_v27 = vpop.f32.mrb[4].mxu0 }
 0x298   : > { %v2647_v22 = vmul.f32 %v3047_v8, %v2338_v27  ;;  %v2692_v60 = vmul.f32 %v2338_v27, %v2338_v27  ;;  %3059 = vst.msk [vmem:[%s5769_s5 + $0x15] sm:$0xf] %vm2753_vm10, %v2338_v27  ;;  %v3115_v54 = vpop.f32.mrb[5].mxu0  ;;  %vm2775_vm10 = vcmask 523266  }
 0x299   : > { %3060 = vst.msk [vmem:[%s5769_s5 + $0x1a] sm:$0xc0] %vm2756_vm15, %v2338_v27  ;;  %v2341_v19 = vpop.f32.mrb[6].mxu0  ;;  %vm2681_vm15 = vcmask 518144  }
 0x29a   : > { %v2661_v7 = vsel %vm2210_vm0, %v2647_v22, 0.0  ;;  %v2705_v59 = vmul.f32 %v3047_v8, %v2692_v60  ;;  %v2648_v56 = vmul.f32 %v3048_v38, %v2341_v19  ;;  %v2693_v2 = vmul.f32 %v2341_v19, %v2341_v19  ;;  %3061 = vst.msk [vmem:[%s5769_s5 + $0x22] sm:$0x7f] %vm2758_vm4, %v2341_v19  ;;  %v3116_v32 = vpop.f32.mrb[7].mxu0 }
 0x29b   : > { %v2662_v37 = vadd.f32 %v2661_v7, %v2660_v61  ;;  %v5830_v8 = vmul.u32.u64.low 3123612579, %v2391_v57  ;;  %v5831_v27 = vmul.u32.u64.high 3123612579, %v2391_v57, %v5830_v8  ;;  %v2492_v19 = vshrl.u32 %v5825_v48, 3 }
 0x29c   : > { %v2719_v24 = vsel %vm2210_vm0, %v2705_v59, 0.0  ;;  %v2663_v14 = vsel %vm2210_vm0, %v2648_v56, 0.0  ;;  %v2706_v35 = vmul.f32 %v3048_v38, %v2693_v2  ;;  %v2395_v32 = vadd.s32 80, %v5750_v50 }
 0x29d   : > { %v2664_v55 = vadd.f32 %v2663_v14, %v2662_v37  ;;  %v2720_v33 = vadd.f32 %v2719_v24, %v2718_v20  ;;  %v5833_v38 = vmul.u32.u64.low 3123612579, %v2392_v44  ;;  %v5834_v22 = vmul.u32.u64.high 3123612579, %v2392_v44, %v5833_v38 }
 0x29e   : > { %v2721_v6 = vsel %vm2210_vm0, %v2706_v35, 0.0  ;;  %v5836_v60 = vmul.u32.u64.low 3123612579, %v2394_v9  ;;  %v5837_v54 = vmul.u32.u64.high 3123612579, %v2394_v9, %v5836_v60  ;;  %v2470_v7 = vshrl.u32 %v5831_v27, 3 }
 0x29f   : > { %v2722_v40 = vadd.f32 %v2721_v6, %v2720_v33  ;;  %v2481_v59 = vshrl.u32 %v5834_v22, 3  ;;  %v2493_v56 = vmul.u32 11, %v2492_v19  ;;  %vm2779_vm4 = vcmask 523269  }
 0x2a0   : > { %v2503_v2 = vshrl.u32 %v5837_v54, 3  ;;  %v2471_v37 = vmul.u32 11, %v2470_v7 }
 0x2a1   : > { %v2482_v24 = vmul.u32 11, %v2481_v59  ;;  %v2494_v14 = vsub.s32 %v2393_v1, %v2493_v56 }
 0x2a2   : > { %v2504_v35 = vmul.u32 11, %v2503_v2  ;;  %v2472_v4 = vsub.s32 %v2391_v57, %v2471_v37 }
 0x2a3   : > { %v2483_v51 = vsub.s32 %v2392_v44, %v2482_v24  ;;  %vm2549_vm11 = vcmp.ne.s32.totalorder %v2494_v14, 0  ;;  %vm2562_vm14 = vcmp.lt.s32.totalorder %v2494_v14, 0  ;;  %v2588_v36 = vadd.s32 11, %v2494_v14 }
 0x2a4   : > { %v2505_v47 = vsub.s32 %v2394_v9, %v2504_v35  ;;  %vm2547_vm1 = vcmp.ne.s32.totalorder %v2472_v4, 0  ;;  %vm2560_vm13 = vcmp.lt.s32.totalorder %v2472_v4, 0  ;;  %vm5859_vm2 = vmand %vm2562_vm14, %vm2549_vm11  ;;  %v2586_v26 = vadd.s32 11, %v2472_v4 }
 0x2a5   : > { %vm2548_vm7 = vcmp.ne.s32.totalorder %v2483_v51, 0  ;;  %vm2561_vm12 = vcmp.lt.s32.totalorder %v2483_v51, 0  ;;  %v2587_v31 = vadd.s32 11, %v2483_v51 }
 0x2a6   : > { %vm2550_vm5 = vcmp.ne.s32.totalorder %v2505_v47, 0  ;;  %v2589_v41 = vadd.s32 11, %v2505_v47 }
 0x2c7   : > { %v2346_v12 = vpop.f32.mrb[8].mxu0 }
 0x2c8   : > { %v2649_v21 = vmul.f32 %v3049_v30, %v2346_v12  ;;  %v2694_v15 = vmul.f32 %v2346_v12, %v2346_v12  ;;  %3062 = vst.msk [vmem:[%s5769_s5 + $0x2f] sm:$0xfe] %vm2761_vm6, %v2346_v12  ;;  %v3119_v17 = vpop.f32.mrb[9].mxu0  ;;  %vm2563_vm6 = vcmp.lt.s32.totalorder %v2505_v47, 0 }
 0x2c9   : > { %v2349_v11 = vpop.f32.mrb[10].mxu0  ;;  %v5868_v17 = vadd.s32 96, %v5750_v50 }
 0x2ca   : > { %v2665_v43 = vsel %vm2210_vm0, %v2649_v21, 0.0  ;;  %v2707_v46 = vmul.f32 %v3049_v30, %v2694_v15  ;;  %v2650_v34 = vmul.f32 %v3050_v45, %v2349_v11  ;;  %v2695_v53 = vmul.f32 %v2349_v11, %v2349_v11  ;;  %3063 = vst.msk [vmem:[%s5769_s5 + $0x37] sm:$0x3] %vm6099_vm8, %v2349_v11  ;;  %v3120_v61 = vpop.f32.mrb[11].mxu0 }
 0x2cb   : > { %3064 = vst.msk [vmem:[%s5769_s5 + $0x3c] sm:$0xf0] %vm2766_vm9, %v2349_v11  ;;  %v2666_v49 = vadd.f32 %v2665_v43, %v2664_v55  ;;  %v2396_v55 = vadd.s32 88, %v5750_v50  ;;  %vm2573_vm9 = vmand %vm2560_vm13, %vm2547_vm1  ;;  %v2601_v30 = vsel %vm5859_vm2, %v2588_v36, %v2494_v14  ;;  %vm2768_vm13 = vcmask 520192  }
 0x2cc   : > { %v2723_v62 = vsel %vm2210_vm0, %v2707_v46, 0.0  ;;  %v2667_v16 = vsel %vm2210_vm0, %v2650_v34, 0.0  ;;  %v2708_v20 = vmul.f32 %v3050_v45, %v2695_v53  ;;  %v2599_v52 = vsel %vm2573_vm9, %v2586_v26, %v2472_v4 }
 0x2cd   : > { %v2724_v5 = vadd.f32 %v2723_v62, %v2722_v40  ;;  %v5820_v39 = vadd.f32 %v2667_v16, %v2666_v49  ;;  %v5845_v6 = vmul.u32.u64.low 3123612579, %v2395_v32  ;;  %v5846_v40 = vmul.u32.u64.high 3123612579, %v2395_v32, %v5845_v6 }
 0x2ce   : > { %v2725_v29 = vsel %vm2210_vm0, %v2708_v20, 0.0  ;;  %v5856_v42 = vmul.u32.u64.low 3123612579, %v2396_v55  ;;  %v5857_v25 = vmul.u32.u64.high 3123612579, %v2396_v55, %v5856_v42  ;;  %vm2612_vm11 = vcmp.lt.s32.totalorder %v2599_v52, 9 }
 0x2cf   : > { %v5828_v0 = vadd.f32 %v2725_v29, %v2724_v5  ;;  %v2514_v18 = vshrl.u32 %v5846_v40, 3  ;;  %vm2614_vm14 = vcmp.lt.s32.totalorder %v2601_v30, 9  ;;  %v3051_v1 = vsel %vm2612_vm11, 1.0, %v6422_v58 }
 0x2d0   : > { %v2525_v3 = vshrl.u32 %v5857_v25, 3  ;;  %v3053_v43 = vsel %vm2614_vm14, 1.0, %v6422_v58  ;;  %v5874_v49 = vmul.u32.u64.low 3123612579, %v5868_v17  ;;  %v5875_v62 = vmul.u32.u64.high 3123612579, %v5868_v17, %v5874_v49 }
 0x2d1   : > { %v2515_v45 = vmul.u32 11, %v2514_v18  ;;  %vm2781_vm11 = vcmask 521216  }
 0x2d2   : > { %v2526_v15 = vmul.u32 11, %v2525_v3  ;;  %v2536_v6 = vshrl.u32 %v5875_v62, 3 }
 0x2d3   : > { %v2516_v11 = vsub.s32 %v2395_v32, %v2515_v45 }
 0x2d4   : > { %v2527_v61 = vsub.s32 %v2396_v55, %v2526_v15  ;;  %v2537_v42 = vmul.u32 11, %v2536_v6 }
 0x2d5   : > { %v2590_v63 = vadd.s32 11, %v2516_v11 }
 0x2d6   : > { %vm2552_vm2 = vcmp.ne.s32.totalorder %v2527_v61, 0  ;;  %v2591_v37 = vadd.s32 11, %v2527_v61  ;;  %v2538_v36 = vsub.s32 %v5868_v17, %v2537_v42 }
 0x2d8   : > { %vm2553_vm14 = vcmp.ne.s32.totalorder %v2538_v36, 0 }
 0x2df   : > { %v2362_v33 = vpop.f32.mrb[0].mxu1 }
 0x2e0   : > { %3068 = vst.msk [vmem:[%s5769_s5 + $0x5e] sm:$0xfc] %vm2775_vm10, %v2362_v33  ;;  %v3127_v13 = vpop.f32.mrb[1].mxu1  ;;  %vm2574_vm10 = vmand %vm2561_vm12, %vm2548_vm7  ;;  %vm2771_vm7 = vcmask 523271   ;;  %v2698_v34 = vmul.f32 %v2362_v33, %v2362_v33  ;;  %vm2551_vm12 = vcmp.ne.s32.totalorder %v2516_v11, 0  ;;  %v2653_v5 = vmul.f32 %v3053_v43, %v2362_v33 }
 0x2e1   : > { %v5849_v23 = vpop.f32.mrb[2].mxu1  ;;  %v2600_v12 = vsel %vm2574_vm10, %v2587_v31, %v2483_v51 }
 0x2e2   : > { %3069 = vst.msk [vmem:[%s5769_s5 + $0x66] sm:$0x7] %vm2681_vm15, %v5849_v23  ;;  %v3128_v28 = vpop.f32.mrb[3].mxu1  ;;  %vm2613_vm8 = vcmp.lt.s32.totalorder %v2600_v12, 9  ;;  %v2699_v44 = vmul.f32 %v5849_v23, %v5849_v23  ;;  %v2711_v22 = vmul.f32 %v3053_v43, %v2698_v34 }
 0x2e3   : > { %3070 = vst.msk [vmem:[%s5769_s5 + $0x6b] sm:$0xe0] %vm2779_vm4, %v5849_v23  ;;  %vm2576_vm4 = vmand %vm2563_vm6, %vm2550_vm5  ;;  %v3052_v46 = vsel %vm2613_vm8, 1.0, %v6422_v58  ;;  %vm2564_vm8 = vcmp.lt.s32.totalorder %v2516_v11, 0  ;;  %vm2565_vm5 = vcmp.lt.s32.totalorder %v2527_v61, 0 }
 0x2e4   : > { %v2602_v21 = vsel %vm2576_vm4, %v2589_v41, %v2505_v47  ;;  %vm5891_vm6 = vmand %vm2564_vm8, %vm2551_vm12  ;;  %v2731_v40 = vsel %vm2210_vm0, %v2711_v22, 0.0 }
 0x2e5   : > { %vm2615_vm1 = vcmp.lt.s32.totalorder %v2602_v21, 9  ;;  %vm2578_vm9 = vmand %vm2565_vm5, %vm2552_vm2  ;;  %v2603_v33 = vsel %vm5891_vm6, %v2590_v63, %v2516_v11 }
 0x2e6   : > { %v3054_v50 = vsel %vm2615_vm1, 1.0, %v6422_v58  ;;  %vm2616_vm10 = vcmp.lt.s32.totalorder %v2603_v33, 9  ;;  %vm2566_vm1 = vcmp.lt.s32.totalorder %v2538_v36, 0 }
 0x2e7   : > { %v2654_v54 = vmul.f32 %v3054_v50, %v5849_v23  ;;  %v2712_v24 = vmul.f32 %v3054_v50, %v2699_v44  ;;  %v2604_v23 = vsel %vm2578_vm9, %v2591_v37, %v2527_v61  ;;  %v3055_v25 = vsel %vm2616_vm10, 1.0, %v6422_v58 }
 0x2e8   : > { %vm2617_vm4 = vcmp.lt.s32.totalorder %v2604_v23, 9 }
 0x2e9   : > { %v2675_v13 = vsel %vm2210_vm0, %v2654_v54, 0.0  ;;  %v2733_v51 = vsel %vm2210_vm0, %v2712_v24, 0.0  ;;  %v3056_v10 = vsel %vm2617_vm4, 1.0, %v6422_v58 }
 0x2f4   : > { %v2354_v53 = vpop.f32.mrb[12].mxu0 }
 0x2f5   : > { %v2651_v16 = vmul.f32 %v3051_v1, %v2354_v53  ;;  %v2696_v20 = vmul.f32 %v2354_v53, %v2354_v53  ;;  %3065 = vst.msk [vmem:[%s5769_s5 + $0x44] sm:$0x1f] %vm2768_vm13, %v2354_v53  ;;  %v3123_v57 = vpop.f32.mrb[13].mxu0  ;;  %vm2579_vm13 = vmand %vm2566_vm1, %vm2553_vm14 }
 0x2f6   : > { %3066 = vst.msk [vmem:[%s5769_s5 + $0x49] sm:$0x80] %vm2771_vm7, %v2354_v53  ;;  %v2357_v29 = vpop.f32.mrb[14].mxu0 }
 0x2f7   : > { %v2669_v48 = vsel %vm2210_vm0, %v2651_v16, 0.0  ;;  %v2709_v9 = vmul.f32 %v3051_v1, %v2696_v20  ;;  %v2652_v8 = vmul.f32 %v3052_v46, %v2357_v29  ;;  %v2697_v27 = vmul.f32 %v2357_v29, %v2357_v29  ;;  %3067 = vst.msk [vmem:[%s5769_s5 + $0x51] sm:$0xff] %vm2210_vm0, %v2357_v29  ;;  %v3124_v38 = vpop.f32.mrb[15].mxu0 }
 0x2f8   : > { %v2670_v60 = vadd.f32 %v2669_v48, %v5820_v39  ;;  %v2673_v39 = vsel %vm2210_vm0, %v2653_v5, 0.0 }
 0x2f9   : > { %v2727_v19 = vsel %vm2210_vm0, %v2709_v9, 0.0  ;;  %v2671_v7 = vsel %vm2210_vm0, %v2652_v8, 0.0  ;;  %v2710_v59 = vmul.f32 %v3052_v46, %v2697_v27  ;;  %v2592_v46 = vadd.s32 11, %v2538_v36 }
 0x2fa   : > { %v2672_v2 = vadd.f32 %v2671_v7, %v2670_v60  ;;  %v2728_v32 = vadd.f32 %v2727_v19, %v5828_v0 }
 0x2fb   : > { %v2729_v14 = vsel %vm2210_vm0, %v2710_v59, 0.0  ;;  %v2605_v61 = vsel %vm2579_vm13, %v2592_v46, %v2538_v36 }
 0x2fc   : > { %v2674_v35 = vadd.f32 %v2673_v39, %v2672_v2  ;;  %v2730_v55 = vadd.f32 %v2729_v14, %v2728_v32  ;;  %vm2618_vm7 = vcmp.lt.s32.totalorder %v2605_v61, 9 }
 0x2fd   : > { %v3057_v49 = vsel %vm2618_vm7, 1.0, %v6422_v58 }
 0x2fe   : > { %v2732_v0 = vadd.f32 %v2731_v40, %v2730_v55  ;;  %v2676_v4 = vadd.f32 %v2675_v13, %v2674_v35 }
 0x300   : > { %v2734_v28 = vadd.f32 %v2733_v51, %v2732_v0 }
 0x304   : > { %v2370_v47 = vpop.f32.mrb[4].mxu1 }
 0x305   : > { %v2655_v26 = vmul.f32 %v3055_v25, %v2370_v47  ;;  %v2700_v31 = vmul.f32 %v2370_v47, %v2370_v47  ;;  %3071 = vst.msk [vmem:[%s5769_s5 + $0x73] sm:$0x3f] %vm2781_vm11, %v2370_v47  ;;  %v3131_v18 = vpop.f32.mrb[5].mxu1 }
 0x306   : > { %v2373_v41 = vpop.f32.mrb[6].mxu1 }
 0x307   : > { %v2677_v52 = vsel %vm2210_vm0, %v2655_v26, 0.0  ;;  %v2713_v3 = vmul.f32 %v3055_v25, %v2700_v31  ;;  %v2656_v30 = vmul.f32 %v3056_v10, %v2373_v41  ;;  %v2701_v12 = vmul.f32 %v2373_v41, %v2373_v41  ;;  %3072 = vst.msk [vmem:[%s5769_s5 + $0x80] sm:$0xff] %vm2210_vm0, %v2373_v41  ;;  %v3132_v45 = vpop.f32.mrb[7].mxu1 }
 0x308   : > { %v2678_v21 = vadd.f32 %v2677_v52, %v2676_v4 }
 0x309   : > { %v2735_v15 = vsel %vm2210_vm0, %v2713_v3, 0.0  ;;  %v2679_v17 = vsel %vm2210_vm0, %v2656_v30, 0.0  ;;  %v2714_v11 = vmul.f32 %v3056_v10, %v2701_v12 }
 0x30a   : > { %v2736_v1 = vadd.f32 %v2735_v15, %v2734_v28  ;;  %v2680_v43 = vadd.f32 %v2679_v17, %v2678_v21 }
 0x30b   : > { %v2737_v34 = vsel %vm2210_vm0, %v2714_v11, 0.0  ;;  %vm2786_vm0 = vcmask 1040384  }
 0x30c   : > { %v2738_v53 = vadd.f32 %v2737_v34, %v2736_v1 }
 0x314   : > { %v2378_v62 = vpop.f32.mrb[8].mxu1 }
 0x315   : > { %v2657_v50 = vmul.f32 %v3057_v49, %v2378_v62  ;;  %v2702_v16 = vmul.f32 %v2378_v62, %v2378_v62  ;;  %3073 = vst.msk [vmem:[%s5769_s5 + $0x88] sm:$0x1] %vm2748_vm3, %v2378_v62  ;;  %v3135_v20 = vpop.f32.mrb[9].mxu1  ;;  %vm6489_vm3 = vcmask 517120  }
 0x316   : > { %v2381_v57 = vpop.f32.mrb[10].mxu1 }
 0x317   : > { %v2682_v5 = vsel %vm2681_vm15, %v2657_v50, 0.0  ;;  %v2715_v44 = vmul.f32 %v3057_v49, %v2702_v16  ;;  %v3136_v29 = vpop.f32.mrb[11].mxu1 }
 0x318   : > { %v2683_v63 = vadd.f32 %v2682_v5, %v2680_v43 }
 0x319   : > { %v2739_v48 = vsel %vm2681_vm15, %v2715_v44, 0.0 }
 0x31a   : > { %v2684_v9 = vrot.slane %v2683_v63, 4  ;;  %v2740_v8 = vadd.f32 %v2739_v48, %v2738_v53 }
 0x31c   : > { %v2685_v27 = vadd.f32 %v2684_v9, %v2683_v63  ;;  %v2741_v58 = vrot.slane %v2740_v8, 4 }
 0x31e   : > { %v2686_v38 = vrot.slane %v2685_v27, 2  ;;  %v2742_v22 = vadd.f32 %v2741_v58, %v2740_v8 }
 0x320   : > { %v2687_v60 = vadd.f32 %v2686_v38, %v2685_v27  ;;  %v2743_v54 = vrot.slane %v2742_v22, 2 }
 0x322   : > { %v2688_v19 = vrot.slane %v2687_v60, 1  ;;  %v2744_v7 = vadd.f32 %v2743_v54, %v2742_v22 }
 0x324   : > { %v2745_v59 = vrot.slane %v2744_v7, 1  ;;  %v2689_v56 = vadd.f32 %v2688_v19, %v2687_v60 }
 0x326   : > { %v2746_v2 = vadd.f32 %v2745_v59, %v2744_v7 }
 0x328   : > { %v2787_v32 = vsel %vm2786_vm0, %v2689_v56, %v2746_v2 }
 0x329   : > { %2788 = vst.msk [vmem:[%s171_s8] sm:$0x3] %vm6489_vm3, %v2787_v32 }
 0x32a   : > { %3356 = shalt.err (!%p3353_p3)
}
 0x32b   : > { %s3357_s29 = scalar_lea.hbm %s5924_s17, 32  ;;  %s3361_s30 = scalar_lea.hbm %s5970_s3, 64 }
 0x32c   : > { %p3358_p4 = scmp.ne.s32.totalorder %s5924_s17, %s3357_s29  ;;  %p3362_p9 = scmp.lt.u32.totalorder %s5924_s17, %s5970_s3 }
 0x32d   : > { %p3363_p10 = scmp.lt.u32.totalorder %s3361_s30, %s3357_s29  ;;  %p3365_p12 = scmp.lt.u32.totalorder %s3357_s29, %s5924_s17 }
 0x32e   : > { %p3359_p7 = pnand %p3358_p4, %p3484_p5 }
 0x32f   : > { %p3364_p11 = por %p3363_p10, %p3362_p9 }
 0x330   : > { %p3360_p8 = pneg %p3359_p7 }
 0x331   : > { %p3366_p13 = por %p3365_p12, %p3364_p11 }
 0x333   : > { %p3367_p0 = pnand %p3366_p13, %p3360_p8 }
 0x335   : > { %3370 = shalt.err (!%p3367_p0)
}
 0x336   : > { %3181 = dma.vmem_to_hbm [thread:$0]  (%p3484_p5), %s5926_s9, 32, %s5924_s17, %s2795_s19  }
 0x337 PF: > { %p3187_p1 = scmp.ge.s32.totalorder %s3405_s15, 2  ;;  %s2831_s24 = sand.u32 1, %s3393_s12  }
 0x338   : > { %s2832_s6 = scalar_lea.sflag [#allocation3], %s2831_s24 }
 0x339   : > { %p3184_p2 = pnand %p3187_p1, %p3488_p6 }
 0x33b   : > { %3388 = dma.done.wait (!%p3184_p2), %s2832_s6, 32  }
 0x33c   : > { %3390 = vsyncadd (!%p3184_p2), %s2832_s6, 4294967264  ;;  %p14_p3 = scmp.ge.s32.totalorder %s3471_s18, 4   ;;  %s6490_s12 = smov %s3397_s13 }
 0x33d   : > { %s6491_s13 = smov %s3401_s14  ;;  %s6492_s14 = smov %s3482_s21 }
 0x33e   : > { %s6493_s15 = smov %s3471_s18  ;;  %16 = sbr.rel (!%p14_p3) target bundleno = 3 (0x3), region = 86 }
 0x345   :  { %2837 = vsyncpa [#allocation3], 1 }
 0x346   :  { %2839 = vsyncpa [#allocation3 + $0x1], 1 }

</bundles_post_ra>
